<compile_context>
chip_gen: v7x
topology: tpu7x:2x2x1
jax: 0.10.0
libtpu: 0.0.40
codegen_flags: <defaults>
</compile_context>

<pallas_src>
from functools import partial

import jax
import jax.numpy as jnp
from jax import lax
from jax.experimental import pallas as pl
from jax.experimental.pallas import tpu as pltpu

K = 31            # conv kernel size used by SEGAN
PAD = 15          # conv padding
STRIDE = 2        # encoder stride / decoder upsample factor
N_EVEN = 16       # number of even taps (k = 0, 2, ..., 30)
N_ODD = 15        # number of odd taps  (k = 1, 3, ..., 29)
# Decoder polyphase input padding: x_pad_dec[i] = x[i - 7], i in [0, T+15)
# (7 = (K - 1 - PAD) // 2, the extra +1 on the right from output_padding).
DEC_PAD_L = 7
DEC_PAD_R = 8

# Tap-stacking thresholds: stack when the per-tap contraction would underuse
# the MXU; fall back to the per-tap loop when the stacked slab would be huge.
STACK_ENC_MAX_CIN = 64
STACK_DEC_MAX_CCAT = 128


# ----------------------------- tiling helpers ------------------------------ #

def _pick_t_tile(t_out, cap=512):
    """Largest time tile <= cap that divides t_out and is a multiple of 128
    (or the full extent)."""
    if t_out <= cap:
        return t_out
    for cand in (512, 384, 256, 128):
        if cand <= cap and t_out % cand == 0:
            return cand
    return t_out


def _pick_c_tile(c_out, bytes_per_cout, cap=128, budget=32 * 2**20):
    """Largest C_out tile <= cap dividing c_out whose double-buffered weight
    slab fits `budget` (raise cap to 256 on v6e/v7x if MXU-bound)."""
    if c_out <= cap:
        return c_out
    chosen = None
    cand = cap
    while cand >= 8:
        if c_out % cand == 0:
            if chosen is None:
                chosen = cand
            if 2 * cand * bytes_per_cout <= budget:
                return cand
        cand //= 2
    return chosen if chosen is not None else c_out


def _vmem_limit(est_bytes):
    # Per-layer scoped VMEM limit from the actual block estimate; capped so
    # it also fits v7x's 64 MiB physical VMEM.
    return int(min(60 * 2**20, max(16 * 2**20, int(est_bytes * 1.4) + 4 * 2**20)))


def _t0(t_tile, time_tiled):
    if not time_tiled:
        return 0                      # static slices for the untiled case
    t0 = pl.program_id(2) * t_tile
    if t_tile % 128 == 0:
        t0 = pl.multiple_of(t0, 128)
    return t0


# ----------------------------- Pallas kernels ------------------------------ #

def _enc_kernel_stacked(xe_ref, xo_ref, w_ref, b_ref, a_ref, o_ref, slab_ref,
                        *, time_tiled):
    # xe_ref/xo_ref: (1, C_in, T_out + 15)  even / odd phases of padded input
    # w_ref: (c_tile, 31*C_in)              taps stacked into the contraction
    # b_ref: (c_tile, 1);  a_ref: (1,) SMEM PReLU alpha
    # o_ref: (1, c_tile, T_tile);  slab_ref: (31*C_in, T_tile) VMEM scratch
    c_in = xe_ref.shape[1]
    t_tile = o_ref.shape[2]
    t0 = _t0(t_tile, time_tiled)
    for m in range(N_EVEN):
        slab_ref[m * c_in:(m + 1) * c_in, :] = (
            xe_ref[0, :, pl.ds(t0 + m, t_tile)].astype(slab_ref.dtype))
    for m in range(N_ODD):
        base = (N_EVEN + m) * c_in
        slab_ref[base:base + c_in, :] = (
            xo_ref[0, :, pl.ds(t0 + m, t_tile)].astype(slab_ref.dtype))
    acc = jnp.dot(w_ref[...], slab_ref[...], preferred_element_type=jnp.float32)
    y = acc + b_ref[...]
    a = a_ref[0]
    o_ref[0] = jnp.where(y > 0, y, a * y)


def _enc_kernel_taps(xe_ref, xo_ref, we_ref, wo_ref, b_ref, a_ref, o_ref,
                     *, time_tiled):
    # Fallback for large C_in: per-tap matmuls, two independent accumulators.
    c_tile, t_tile = o_ref.shape[1], o_ref.shape[2]
    t0 = _t0(t_tile, time_tiled)
    acc_e = jnp.zeros((c_tile, t_tile), jnp.float32)
    acc_o = jnp.zeros((c_tile, t_tile), jnp.float32)
    for m in range(N_EVEN):
        xs = xe_ref[0, :, pl.ds(t0 + m, t_tile)].astype(we_ref.dtype)
        acc_e = acc_e + jnp.dot(we_ref[m], xs, preferred_element_type=jnp.float32)
        if m < N_ODD:
            xs = xo_ref[0, :, pl.ds(t0 + m, t_tile)].astype(wo_ref.dtype)
            acc_o = acc_o + jnp.dot(wo_ref[m], xs, preferred_element_type=jnp.float32)
    y = acc_e + acc_o + b_ref[...]
    a = a_ref[0]
    o_ref[0] = jnp.where(y > 0, y, a * y)


def _dec_kernel_stacked(xa_ref, xb_ref, we_ref, wo_ref, b_ref, a_ref,
                        oe_ref, oo_ref, slab_ref, *, time_tiled):
    # Fused ConvTranspose1d(concat([xa, xb], ch)) + PReLU, polyphase outputs,
    # taps and the channel concat stacked into one contraction dim.
    # xa_ref: (1, Ca, T + 15);  xb_ref: (1, Cb, T + 15)
    # we_ref/wo_ref: (c_tile, 16*(Ca+Cb))   even / odd output-phase weights
    # oe_ref/oo_ref: (1, c_tile, T_tile);   slab_ref: (16*(Ca+Cb), T_tile)
    ca, cb = xa_ref.shape[1], xb_ref.shape[1]
    ccat = ca + cb
    t_tile = oe_ref.shape[2]
    t0 = _t0(t_tile, time_tiled)
    for m in range(N_EVEN):
        base = m * ccat
        slab_ref[base:base + ca, :] = (
            xa_ref[0, :, pl.ds(t0 + m, t_tile)].astype(slab_ref.dtype))
        slab_ref[base + ca:base + ccat, :] = (
            xb_ref[0, :, pl.ds(t0 + m, t_tile)].astype(slab_ref.dtype))
    acc_e = jnp.dot(we_ref[...], slab_ref[...], preferred_element_type=jnp.float32)
    acc_o = jnp.dot(wo_ref[...], slab_ref[...], preferred_element_type=jnp.float32)
    bias = b_ref[...]
    a = a_ref[0]
    ye = acc_e + bias
    yo = acc_o + bias
    oe_ref[0] = jnp.where(ye > 0, ye, a * ye)
    oo_ref[0] = jnp.where(yo > 0, yo, a * yo)


def _dec_kernel_taps(xa_ref, xb_ref, wae_ref, wao_ref, wbe_ref, wbo_ref,
                     b_ref, a_ref, oe_ref, oo_ref, *, time_tiled):
    # Fallback for large C_cat: per-tap matmuls, four independent accumulators.
    c_tile, t_tile = oe_ref.shape[1], oe_ref.shape[2]
    t0 = _t0(t_tile, time_tiled)
    acc_ea = jnp.zeros((c_tile, t_tile), jnp.float32)
    acc_eb = jnp.zeros((c_tile, t_tile), jnp.float32)
    acc_oa = jnp.zeros((c_tile, t_tile), jnp.float32)
    acc_ob = jnp.zeros((c_tile, t_tile), jnp.float32)
    for m in range(N_EVEN):
        xa = xa_ref[0, :, pl.ds(t0 + m, t_tile)].astype(wao_ref.dtype)
        xb = xb_ref[0, :, pl.ds(t0 + m, t_tile)].astype(wbo_ref.dtype)
        acc_oa = acc_oa + jnp.dot(wao_ref[m], xa, preferred_element_type=jnp.float32)
        acc_ob = acc_ob + jnp.dot(wbo_ref[m], xb, preferred_element_type=jnp.float32)
        if m < N_ODD:
            acc_ea = acc_ea + jnp.dot(wae_ref[m], xa, preferred_element_type=jnp.float32)
            acc_eb = acc_eb + jnp.dot(wbe_ref[m], xb, preferred_element_type=jnp.float32)
    bias = b_ref[...]
    a = a_ref[0]
    ye = acc_ea + acc_eb + bias
    yo = acc_oa + acc_ob + bias
    oe_ref[0] = jnp.where(ye > 0, ye, a * ye)
    oo_ref[0] = jnp.where(yo > 0, yo, a * yo)


# --------------------------- pallas_call wrappers --------------------------- #

def _compiler_params(est_bytes):
    return pltpu.CompilerParams(
        dimension_semantics=("parallel", "parallel", "parallel"),
        vmem_limit_bytes=_vmem_limit(est_bytes))


def _encoder_pallas(xe, xo, lyr):
    B, C_in, Le = xe.shape
    b, alpha = lyr["b"], lyr["alpha"]
    T_out = Le - PAD
    stacked = "w" in lyr
    if stacked:
        w = lyr["w"]                                   # (C_out, 31*C_in)
        C_out, KC = w.shape
        per_cout = KC * w.dtype.itemsize
        wdt = w.dtype
    else:
        we, wo = lyr["we"], lyr["wo"]                  # (16,...), (15,...)
        C_out = we.shape[1]
        per_cout = K * C_in * we.dtype.itemsize
        wdt = we.dtype
    c_tile = _pick_c_tile(C_out, per_cout)
    t_tile = _pick_t_tile(T_out)
    grid = (C_out // c_tile, B, T_out // t_tile)
    time_tiled = grid[2] > 1

    est = (2 * 2 * C_in * Le * 4                       # two phase inputs, x2 buf
           + 2 * c_tile * per_cout                     # weights, x2 buf
           + 2 * c_tile * t_tile * 4                   # output tile, x2 buf
           + (K * C_in * t_tile * wdt.itemsize if stacked else 0))

    x_spec = pl.BlockSpec((1, C_in, Le), lambda co, bb, tt: (bb, 0, 0))
    b_spec = pl.BlockSpec((c_tile, 1), lambda co, bb, tt: (co, 0))
    a_spec = pl.BlockSpec(memory_space=pltpu.MemorySpace.SMEM)
    o_spec = pl.BlockSpec((1, c_tile, t_tile), lambda co, bb, tt: (bb, co, tt))
    out_shape = jax.ShapeDtypeStruct((B, C_out, T_out), jnp.float32)

    if stacked:
        return pl.pallas_call(
            partial(_enc_kernel_stacked, time_tiled=time_tiled),
            out_shape=out_shape,
            grid_spec=pltpu.PrefetchScalarGridSpec(
                num_scalar_prefetch=0, grid=grid,
                in_specs=[x_spec, x_spec,
                          pl.BlockSpec((c_tile, KC), lambda co, bb, tt: (co, 0)),
                          b_spec, a_spec],
                out_specs=o_spec,
                scratch_shapes=[pltpu.VMEM((KC, t_tile), wdt)]),
            compiler_params=_compiler_params(est),
        )(xe, xo, w, b, alpha)

    return pl.pallas_call(
        partial(_enc_kernel_taps, time_tiled=time_tiled),
        out_shape=out_shape,
        grid_spec=pltpu.PrefetchScalarGridSpec(
            num_scalar_prefetch=0, grid=grid,
            in_specs=[x_spec, x_spec,
                      pl.BlockSpec((N_EVEN, c_tile, C_in), lambda co, bb, tt: (0, co, 0)),
                      pl.BlockSpec((N_ODD, c_tile, C_in), lambda co, bb, tt: (0, co, 0)),
                      b_spec, a_spec],
            out_specs=o_spec),
        compiler_params=_compiler_params(est),
    )(xe, xo, we, wo, b, alpha)


def _decoder_pallas(xa, xb, lyr):
    B, Ca, Lp = xa.shape
    Cb = xb.shape[1]
    Ccat = Ca + Cb
    b, alpha = lyr["b"], lyr["alpha"]
    T_half = Lp - PAD
    stacked = "w_even" in lyr
    if stacked:
        w_even, w_odd = lyr["w_even"], lyr["w_odd"]    # (C_out, 16*Ccat) each
        C_out, KC = w_odd.shape
        per_cout = 2 * KC * w_odd.dtype.itemsize
        wdt = w_odd.dtype
    else:
        wae, wao, wbe, wbo = lyr["wae"], lyr["wao"], lyr["wbe"], lyr["wbo"]
        C_out = wao.shape[1]
        per_cout = K * Ccat * wao.dtype.itemsize
        wdt = wao.dtype
    # TODO(synk): for the very largest decoder layers a C_in-chunk reduction
    # grid axis would allow c_tile to stay MXU-sized instead of shrinking.
    c_tile = _pick_c_tile(C_out, per_cout)
    t_tile = _pick_t_tile(T_half)
    grid = (C_out // c_tile, B, T_half // t_tile)
    time_tiled = grid[2] > 1

    est = (2 * 2 * Ccat * Lp * 4                       # xa + xb, x2 buf
           + 2 * c_tile * per_cout                     # weights, x2 buf
           + 2 * 2 * c_tile * t_tile * 4               # two output phases, x2 buf
           + (N_EVEN * Ccat * t_tile * wdt.itemsize if stacked else 0))

    xa_spec = pl.BlockSpec((1, Ca, Lp), lambda co, bb, tt: (bb, 0, 0))
    xb_spec = pl.BlockSpec((1, Cb, Lp), lambda co, bb, tt: (bb, 0, 0))
    b_spec = pl.BlockSpec((c_tile, 1), lambda co, bb, tt: (co, 0))
    a_spec = pl.BlockSpec(memory_space=pltpu.MemorySpace.SMEM)
    o_spec = pl.BlockSpec((1, c_tile, t_tile), lambda co, bb, tt: (bb, co, tt))
    out_sds = jax.ShapeDtypeStruct((B, C_out, T_half), jnp.float32)

    if stacked:
        return pl.pallas_call(
            partial(_dec_kernel_stacked, time_tiled=time_tiled),
            out_shape=(out_sds, out_sds),
            grid_spec=pltpu.PrefetchScalarGridSpec(
                num_scalar_prefetch=0, grid=grid,
                in_specs=[xa_spec, xb_spec,
                          pl.BlockSpec((c_tile, KC), lambda co, bb, tt: (co, 0)),
                          pl.BlockSpec((c_tile, KC), lambda co, bb, tt: (co, 0)),
                          b_spec, a_spec],
                out_specs=(o_spec, o_spec),
                scratch_shapes=[pltpu.VMEM((KC, t_tile), wdt)]),
            compiler_params=_compiler_params(est),
        )(xa, xb, w_even, w_odd, b, alpha)

    return pl.pallas_call(
        partial(_dec_kernel_taps, time_tiled=time_tiled),
        out_shape=(out_sds, out_sds),
        grid_spec=pltpu.PrefetchScalarGridSpec(
            num_scalar_prefetch=0, grid=grid,
            in_specs=[xa_spec, xb_spec,
                      pl.BlockSpec((N_ODD, c_tile, Ca), lambda co, bb, tt: (0, co, 0)),
                      pl.BlockSpec((N_EVEN, c_tile, Ca), lambda co, bb, tt: (0, co, 0)),
                      pl.BlockSpec((N_ODD, c_tile, Cb), lambda co, bb, tt: (0, co, 0)),
                      pl.BlockSpec((N_EVEN, c_tile, Cb), lambda co, bb, tt: (0, co, 0)),
                      b_spec, a_spec],
            out_specs=(o_spec, o_spec)),
        compiler_params=_compiler_params(est),
    )(xa, xb, wae, wao, wbe, wbo, b, alpha)


# ------------------------------- JAX glue ---------------------------------- #

def encoder_layer(x, lyr):
    # Conv1d(C_in, C_out, 31, stride=2, padding=15) + PReLU, NCT in/out.
    x_pad = jnp.pad(x, ((0, 0), (0, 0), (PAD, PAD)))
    xe = x_pad[:, :, 0::2]                    # even phase, length T/2 + 15
    xo = x_pad[:, :, 1::2]                    # odd phase,  length T/2 + 15
    return _encoder_pallas(xe, xo, lyr)       # (B, C_out, T/2)


def decoder_layer(xa, xb, lyr):
    # ConvTranspose1d(concat([xa, xb], ch), 31, stride=2, padding=15,
    # output_padding=1) + PReLU, with the concat folded into the kernel.
    B, _, Tin = xa.shape
    xa_p = jnp.pad(xa, ((0, 0), (0, 0), (DEC_PAD_L, DEC_PAD_R)))
    xb_p = jnp.pad(xb, ((0, 0), (0, 0), (DEC_PAD_L, DEC_PAD_R)))
    ye, yo = _decoder_pallas(xa_p, xb_p, lyr)
    C_out = ye.shape[1]
    # Interleave the two output phases: out[:, :, 2s] = ye[:, :, s], 2s+1 = yo.
    return jnp.stack([ye, yo], axis=-1).reshape(B, C_out, 2 * Tin)


def segan_generator_forward(params, x, z):
    enc_layers, dec_layers = params
    skips = []
    for lyr in enc_layers:
        skips.append(x)
        x = encoder_layer(x, lyr)
    skips = skips[::-1]
    side = z
    for i, lyr in enumerate(dec_layers):
        x = decoder_layer(x, side, lyr)       # fuses concat([x, side], ch=1)
        side = skips[i]
    return jnp.concatenate([x, side], axis=1)  # final concat = model output


# ----------------- parameter init & one-time preprocessing ----------------- #

def init_params(encoder_dimensions, key):
    # Raw parameters in PyTorch layouts: Conv1d (C_out, C_in, K),
    # ConvTranspose1d (C_in, C_out, K), PReLU single shared alpha = 0.25.
    num_layers = len(encoder_dimensions) - 1
    dec_dims = encoder_dimensions[::-1]
    enc_params, dec_params = [], []
    for i in range(num_layers):
        cin, cout = encoder_dimensions[i], encoder_dimensions[i + 1]
        key, k1, k2 = jax.random.split(key, 3)
        bound = 1.0 / float(cin * K) ** 0.5
        w = jax.random.uniform(k1, (cout, cin, K), jnp.float32, -bound, bound)
        b = jax.random.uniform(k2, (cout,), jnp.float32, -bound, bound)
        enc_params.append((w, b, jnp.float32(0.25)))
    for i in range(num_layers):
        cin, cout = dec_dims[i] * 2, dec_dims[i + 1]
        key, k1, k2 = jax.random.split(key, 3)
        bound = 1.0 / float(cin * K) ** 0.5
        w = jax.random.uniform(k1, (cin, cout, K), jnp.float32, -bound, bound)
        b = jax.random.uniform(k2, (cout,), jnp.float32, -bound, bound)
        dec_params.append((w, b, jnp.float32(0.25)))
    return enc_params, dec_params


def preprocess_params(raw_params, weight_dtype=jnp.float32,
                      stack_enc_max_cin=STACK_ENC_MAX_CIN,
                      stack_dec_max_ccat=STACK_DEC_MAX_CCAT):
    # One-time conversion to kernel-ready layouts (done outside the forward).
    # weight_dtype=jnp.bfloat16 halves weight VMEM/HBM and doubles MXU rate
    # (f32 accumulation kept in-kernel), at the cost of exact f32 parity.
    enc_raw, dec_raw = raw_params
    wdt = jnp.dtype(weight_dtype)
    enc_layers = []
    for (w, b, a) in enc_raw:                       # w: (C_out, C_in, K)
        c_out, c_in, _ = w.shape
        lyr = dict(b=b.reshape(-1, 1).astype(jnp.float32),
                   alpha=jnp.reshape(a, (1,)).astype(jnp.float32))
        we = w[:, :, 0::2]                          # (C_out, C_in, 16)
        wo = w[:, :, 1::2]                          # (C_out, C_in, 15)
        if c_in <= stack_enc_max_cin:
            # Stacked layout: rows m*C_in + ci, even taps first, then odd.
            lyr["w"] = jnp.concatenate(
                [jnp.transpose(we, (0, 2, 1)).reshape(c_out, N_EVEN * c_in),
                 jnp.transpose(wo, (0, 2, 1)).reshape(c_out, N_ODD * c_in)],
                axis=1).astype(wdt)                 # (C_out, 31*C_in)
        else:
            lyr["we"] = jnp.transpose(we, (2, 0, 1)).astype(wdt)  # (16, C_out, C_in)
            lyr["wo"] = jnp.transpose(wo, (2, 0, 1)).astype(wdt)  # (15, C_out, C_in)
        enc_layers.append(lyr)

    dec_layers = []
    for (w_t, b, a) in dec_raw:                     # w_t: (C_cat, C_out, K)
        c_cat, c_out, _ = w_t.shape
        ca = c_cat // 2                             # [main path | z / skip]
        w_conv = jnp.transpose(jnp.flip(w_t, axis=2), (1, 0, 2))   # (C_out, C_cat, K)
        w_even = w_conv[:, :, 1::2]                 # taps -> even output samples (15)
        w_odd = w_conv[:, :, 0::2]                  # taps -> odd  output samples (16)
        lyr = dict(b=b.reshape(-1, 1).astype(jnp.float32),
                   alpha=jnp.reshape(a, (1,)).astype(jnp.float32))
        if c_cat <= stack_dec_max_ccat:
            # Stacked layout: rows m*C_cat + ci (ci covers [main | side]);
            # even-phase weights zero-padded to 16 taps so both dots share
            # the same slab.
            w_even_p = jnp.pad(w_even, ((0, 0), (0, 0), (0, 1)))
            lyr["w_even"] = jnp.transpose(w_even_p, (0, 2, 1)).reshape(
                c_out, N_EVEN * c_cat).astype(wdt)
            lyr["w_odd"] = jnp.transpose(w_odd, (0, 2, 1)).reshape(
                c_out, N_EVEN * c_cat).astype(wdt)
        else:
            lyr["wae"] = jnp.transpose(w_even[:, :ca], (2, 0, 1)).astype(wdt)
            lyr["wao"] = jnp.transpose(w_odd[:, :ca], (2, 0, 1)).astype(wdt)
            lyr["wbe"] = jnp.transpose(w_even[:, ca:], (2, 0, 1)).astype(wdt)
            lyr["wbo"] = jnp.transpose(w_odd[:, ca:], (2, 0, 1)).astype(wdt)
        dec_layers.append(lyr)
    return enc_layers, dec_layers


# ------------------------- pure-JAX reference ------------------------------ #

def _ref_encoder_layer(x, w, b, a):
    y = lax.conv_general_dilated(x, w, window_strides=(STRIDE,),
                                 padding=[(PAD, PAD)],
                                 dimension_numbers=('NCH', 'OIH', 'NCH'),
                                 precision=lax.Precision.HIGHEST)
    y = y + b[None, :, None]
    return jnp.where(y > 0, y, a * y)


def _ref_decoder_layer(x, w_t, b, a):
    w_conv = jnp.transpose(jnp.flip(w_t, axis=2), (1, 0, 2))
    y = lax.conv_general_dilated(x, w_conv, window_strides=(1,),
                                 padding=[(PAD, PAD + 1)],   # +1 = output_padding
                                 lhs_dilation=(STRIDE,),
                                 dimension_numbers=('NCH', 'OIH', 'NCH'),
                                 precision=lax.Precision.HIGHEST)
    y = y + b[None, :, None]
    return jnp.where(y > 0, y, a * y)


def segan_generator_reference(raw_params, x, z):
    enc_params, dec_params = raw_params
    skips = []
    for (w, b, a) in enc_params:
        skips.append(x)
        x = _ref_encoder_layer(x, w, b, a)
    x = jnp.concatenate([x, z], axis=1)
    skips = skips[::-1]
    for i, (w, b, a) in enumerate(dec_params):
        x = _ref_decoder_layer(x, w, b, a)
        x = jnp.concatenate([x, skips[i]], axis=1)
    return x


# ---------------------------------- main ----------------------------------- #

if __name__ == "__main__":
    # Small SEGAN_Generator(encoder_dimensions=[1, 4, 8, 16]) config.
    encoder_dimensions = [1, 4, 8, 16]
    num_layers = len(encoder_dimensions) - 1
    B, T = 2, 16
    T_bottleneck = T // (2 ** num_layers)                # 2
    C_bottleneck = encoder_dimensions[-1]                # 16

    key = jax.random.PRNGKey(0)
    key, kx, kz, kp = jax.random.split(key, 4)
    x = jax.random.normal(kx, (B, 1, T), jnp.float32)
    z = jax.random.normal(kz, (B, C_bottleneck, T_bottleneck), jnp.float32)

    raw_params = init_params(encoder_dimensions, kp)
    ref = jax.block_until_ready(segan_generator_reference(raw_params, x, z))

    fwd = jax.jit(segan_generator_forward)

    # Path 1: tap-stacked kernels (the small-C_in fast path this config uses).
    params_stacked = preprocess_params(raw_params)       # one-time weight prep
    out = jax.block_until_ready(fwd(params_stacked, x, z))
    assert out.shape == (B, 2, T), out.shape
    assert jnp.allclose(out, ref, atol=1e-4, rtol=1e-4), \
        float(jnp.max(jnp.abs(out - ref)))

    # Path 2: per-tap fallback kernels (what large-C_in production layers use).
    params_taps = preprocess_params(raw_params,
                                    stack_enc_max_cin=0, stack_dec_max_ccat=0)
    out2 = jax.block_until_ready(fwd(params_taps, x, z))
    assert jnp.allclose(out2, ref, atol=1e-4, rtol=1e-4), \
        float(jnp.max(jnp.abs(out2 - ref)))

    print("KERNEL_OK")
</pallas_src>

<mosaic_0001>
module attributes {stable_mosaic.version = 11 : i64} {
  func.func @_enc_kernel_stacked(%arg0: i32, %arg1: i32, %arg2: i32, %arg3: memref<1x4x19xf32, #tpu.memory_space<vmem>>, %arg4: memref<1x4x19xf32, #tpu.memory_space<vmem>>, %arg5: memref<8x124xf32, #tpu.memory_space<vmem>>, %arg6: memref<8x1xf32, #tpu.memory_space<vmem>>, %arg7: memref<1xf32, #tpu.memory_space<smem>>, %arg8: memref<1x8x4xf32, #tpu.memory_space<vmem>>, %arg9: memref<124x4xf32, #tpu.memory_space<vmem>>) attributes {dimension_semantics = [#tpu.dimension_semantics<parallel>, #tpu.dimension_semantics<parallel>, #tpu.dimension_semantics<parallel>], iteration_bounds = array<i64: 1, 2, 1>, scalar_prefetch = 0 : i64, scratch_operands = 1 : i64, tpu.core_type = #tpu.core_type<tc>, window_params = [{transform_indices = @transform_0, window_bounds = array<i64: 1, 4, 19>}, {transform_indices = @transform_1, window_bounds = array<i64: 1, 4, 19>}, {transform_indices = @transform_2, window_bounds = array<i64: 8, 124>}, {transform_indices = @transform_3, window_bounds = array<i64: 8, 1>}, {transform_indices = @transform_4, window_bounds = array<i64: 1>}, {transform_indices = @transform_5, window_bounds = array<i64: 1, 8, 4>}]} {
    %c0 = arith.constant 0 : index
    %c0_0 = arith.constant 0 : index
    %c0_1 = arith.constant 0 : index
    %0 = vector.load %arg3[%c0, %c0_0, %c0_1] : memref<1x4x19xf32, #tpu.memory_space<vmem>>, vector<1x4x4xf32>
    %1 = vector.shape_cast %0 : vector<1x4x4xf32> to vector<4x4xf32>
    %c0_2 = arith.constant 0 : index
    %c0_3 = arith.constant 0 : index
    %2 = vector.load %arg9[%c0_2, %c0_3] : memref<124x4xf32, #tpu.memory_space<vmem>>, vector<4x4xf32>
    tpu.vector_store %arg9[%c0_2, %c0_3], %1 {strides = array<i32>} : memref<124x4xf32, #tpu.memory_space<vmem>>, vector<4x4xf32>,
    %c0_4 = arith.constant 0 : index
    %c0_5 = arith.constant 0 : index
    %c1 = arith.constant 1 : index
    %3 = vector.load %arg3[%c0_4, %c0_5, %c1] : memref<1x4x19xf32, #tpu.memory_space<vmem>>, vector<1x4x4xf32>
    %4 = vector.shape_cast %3 : vector<1x4x4xf32> to vector<4x4xf32>
    %c4 = arith.constant 4 : index
    %c0_6 = arith.constant 0 : index
    %5 = vector.load %arg9[%c4, %c0_6] : memref<124x4xf32, #tpu.memory_space<vmem>>, vector<4x4xf32>
    tpu.vector_store %arg9[%c4, %c0_6], %4 {strides = array<i32>} : memref<124x4xf32, #tpu.memory_space<vmem>>, vector<4x4xf32>,
    %c0_7 = arith.constant 0 : index
    %c0_8 = arith.constant 0 : index
    %c2 = arith.constant 2 : index
    %6 = vector.load %arg3[%c0_7, %c0_8, %c2] : memref<1x4x19xf32, #tpu.memory_space<vmem>>, vector<1x4x4xf32>
    %7 = vector.shape_cast %6 : vector<1x4x4xf32> to vector<4x4xf32>
    %c8 = arith.constant 8 : index
    %c0_9 = arith.constant 0 : index
    %8 = vector.load %arg9[%c8, %c0_9] : memref<124x4xf32, #tpu.memory_space<vmem>>, vector<4x4xf32>
    tpu.vector_store %arg9[%c8, %c0_9], %7 {strides = array<i32>} : memref<124x4xf32, #tpu.memory_space<vmem>>, vector<4x4xf32>,
    %c0_10 = arith.constant 0 : index
    %c0_11 = arith.constant 0 : index
    %c3 = arith.constant 3 : index
    %9 = vector.load %arg3[%c0_10, %c0_11, %c3] : memref<1x4x19xf32, #tpu.memory_space<vmem>>, vector<1x4x4xf32>
    %10 = vector.shape_cast %9 : vector<1x4x4xf32> to vector<4x4xf32>
    %c12 = arith.constant 12 : index
    %c0_12 = arith.constant 0 : index
    %11 = vector.load %arg9[%c12, %c0_12] : memref<124x4xf32, #tpu.memory_space<vmem>>, vector<4x4xf32>
    tpu.vector_store %arg9[%c12, %c0_12], %10 {strides = array<i32>} : memref<124x4xf32, #tpu.memory_space<vmem>>, vector<4x4xf32>,
    %c0_13 = arith.constant 0 : index
    %c0_14 = arith.constant 0 : index
    %c4_15 = arith.constant 4 : index
    %12 = vector.load %arg3[%c0_13, %c0_14, %c4_15] : memref<1x4x19xf32, #tpu.memory_space<vmem>>, vector<1x4x4xf32>
    %13 = vector.shape_cast %12 : vector<1x4x4xf32> to vector<4x4xf32>
    %c16 = arith.constant 16 : index
    %c0_16 = arith.constant 0 : index
    %14 = vector.load %arg9[%c16, %c0_16] : memref<124x4xf32, #tpu.memory_space<vmem>>, vector<4x4xf32>
    tpu.vector_store %arg9[%c16, %c0_16], %13 {strides = array<i32>} : memref<124x4xf32, #tpu.memory_space<vmem>>, vector<4x4xf32>,
    %c0_17 = arith.constant 0 : index
    %c0_18 = arith.constant 0 : index
    %c5 = arith.constant 5 : index
    %15 = vector.load %arg3[%c0_17, %c0_18, %c5] : memref<1x4x19xf32, #tpu.memory_space<vmem>>, vector<1x4x4xf32>
    %16 = vector.shape_cast %15 : vector<1x4x4xf32> to vector<4x4xf32>
    %c20 = arith.constant 20 : index
    %c0_19 = arith.constant 0 : index
    %17 = vector.load %arg9[%c20, %c0_19] : memref<124x4xf32, #tpu.memory_space<vmem>>, vector<4x4xf32>
    tpu.vector_store %arg9[%c20, %c0_19], %16 {strides = array<i32>} : memref<124x4xf32, #tpu.memory_space<vmem>>, vector<4x4xf32>,
    %c0_20 = arith.constant 0 : index
    %c0_21 = arith.constant 0 : index
    %c6 = arith.constant 6 : index
    %18 = vector.load %arg3[%c0_20, %c0_21, %c6] : memref<1x4x19xf32, #tpu.memory_space<vmem>>, vector<1x4x4xf32>
    %19 = vector.shape_cast %18 : vector<1x4x4xf32> to vector<4x4xf32>
    %c24 = arith.constant 24 : index
    %c0_22 = arith.constant 0 : index
    %20 = vector.load %arg9[%c24, %c0_22] : memref<124x4xf32, #tpu.memory_space<vmem>>, vector<4x4xf32>
    tpu.vector_store %arg9[%c24, %c0_22], %19 {strides = array<i32>} : memref<124x4xf32, #tpu.memory_space<vmem>>, vector<4x4xf32>,
    %c0_23 = arith.constant 0 : index
    %c0_24 = arith.constant 0 : index
    %c7 = arith.constant 7 : index
    %21 = vector.load %arg3[%c0_23, %c0_24, %c7] : memref<1x4x19xf32, #tpu.memory_space<vmem>>, vector<1x4x4xf32>
    %22 = vector.shape_cast %21 : vector<1x4x4xf32> to vector<4x4xf32>
    %c28 = arith.constant 28 : index
    %c0_25 = arith.constant 0 : index
    %23 = vector.load %arg9[%c28, %c0_25] : memref<124x4xf32, #tpu.memory_space<vmem>>, vector<4x4xf32>
    tpu.vector_store %arg9[%c28, %c0_25], %22 {strides = array<i32>} : memref<124x4xf32, #tpu.memory_space<vmem>>, vector<4x4xf32>,
    %c0_26 = arith.constant 0 : index
    %c0_27 = arith.constant 0 : index
    %c8_28 = arith.constant 8 : index
    %24 = vector.load %arg3[%c0_26, %c0_27, %c8_28] : memref<1x4x19xf32, #tpu.memory_space<vmem>>, vector<1x4x4xf32>
    %25 = vector.shape_cast %24 : vector<1x4x4xf32> to vector<4x4xf32>
    %c32 = arith.constant 32 : index
    %c0_29 = arith.constant 0 : index
    %26 = vector.load %arg9[%c32, %c0_29] : memref<124x4xf32, #tpu.memory_space<vmem>>, vector<4x4xf32>
    tpu.vector_store %arg9[%c32, %c0_29], %25 {strides = array<i32>} : memref<124x4xf32, #tpu.memory_space<vmem>>, vector<4x4xf32>,
    %c0_30 = arith.constant 0 : index
    %c0_31 = arith.constant 0 : index
    %c9 = arith.constant 9 : index
    %27 = vector.load %arg3[%c0_30, %c0_31, %c9] : memref<1x4x19xf32, #tpu.memory_space<vmem>>, vector<1x4x4xf32>
    %28 = vector.shape_cast %27 : vector<1x4x4xf32> to vector<4x4xf32>
    %c36 = arith.constant 36 : index
    %c0_32 = arith.constant 0 : index
    %29 = vector.load %arg9[%c36, %c0_32] : memref<124x4xf32, #tpu.memory_space<vmem>>, vector<4x4xf32>
    tpu.vector_store %arg9[%c36, %c0_32], %28 {strides = array<i32>} : memref<124x4xf32, #tpu.memory_space<vmem>>, vector<4x4xf32>,
    %c0_33 = arith.constant 0 : index
    %c0_34 = arith.constant 0 : index
    %c10 = arith.constant 10 : index
    %30 = vector.load %arg3[%c0_33, %c0_34, %c10] : memref<1x4x19xf32, #tpu.memory_space<vmem>>, vector<1x4x4xf32>
    %31 = vector.shape_cast %30 : vector<1x4x4xf32> to vector<4x4xf32>
    %c40 = arith.constant 40 : index
    %c0_35 = arith.constant 0 : index
    %32 = vector.load %arg9[%c40, %c0_35] : memref<124x4xf32, #tpu.memory_space<vmem>>, vector<4x4xf32>
    tpu.vector_store %arg9[%c40, %c0_35], %31 {strides = array<i32>} : memref<124x4xf32, #tpu.memory_space<vmem>>, vector<4x4xf32>,
    %c0_36 = arith.constant 0 : index
    %c0_37 = arith.constant 0 : index
    %c11 = arith.constant 11 : index
    %33 = vector.load %arg3[%c0_36, %c0_37, %c11] : memref<1x4x19xf32, #tpu.memory_space<vmem>>, vector<1x4x4xf32>
    %34 = vector.shape_cast %33 : vector<1x4x4xf32> to vector<4x4xf32>
    %c44 = arith.constant 44 : index
    %c0_38 = arith.constant 0 : index
    %35 = vector.load %arg9[%c44, %c0_38] : memref<124x4xf32, #tpu.memory_space<vmem>>, vector<4x4xf32>
    tpu.vector_store %arg9[%c44, %c0_38], %34 {strides = array<i32>} : memref<124x4xf32, #tpu.memory_space<vmem>>, vector<4x4xf32>,
    %c0_39 = arith.constant 0 : index
    %c0_40 = arith.constant 0 : index
    %c12_41 = arith.constant 12 : index
    %36 = vector.load %arg3[%c0_39, %c0_40, %c12_41] : memref<1x4x19xf32, #tpu.memory_space<vmem>>, vector<1x4x4xf32>
    %37 = vector.shape_cast %36 : vector<1x4x4xf32> to vector<4x4xf32>
    %c48 = arith.constant 48 : index
    %c0_42 = arith.constant 0 : index
    %38 = vector.load %arg9[%c48, %c0_42] : memref<124x4xf32, #tpu.memory_space<vmem>>, vector<4x4xf32>
    tpu.vector_store %arg9[%c48, %c0_42], %37 {strides = array<i32>} : memref<124x4xf32, #tpu.memory_space<vmem>>, vector<4x4xf32>,
    %c0_43 = arith.constant 0 : index
    %c0_44 = arith.constant 0 : index
    %c13 = arith.constant 13 : index
    %39 = vector.load %arg3[%c0_43, %c0_44, %c13] : memref<1x4x19xf32, #tpu.memory_space<vmem>>, vector<1x4x4xf32>
    %40 = vector.shape_cast %39 : vector<1x4x4xf32> to vector<4x4xf32>
    %c52 = arith.constant 52 : index
    %c0_45 = arith.constant 0 : index
    %41 = vector.load %arg9[%c52, %c0_45] : memref<124x4xf32, #tpu.memory_space<vmem>>, vector<4x4xf32>
    tpu.vector_store %arg9[%c52, %c0_45], %40 {strides = array<i32>} : memref<124x4xf32, #tpu.memory_space<vmem>>, vector<4x4xf32>,
    %c0_46 = arith.constant 0 : index
    %c0_47 = arith.constant 0 : index
    %c14 = arith.constant 14 : index
    %42 = vector.load %arg3[%c0_46, %c0_47, %c14] : memref<1x4x19xf32, #tpu.memory_space<vmem>>, vector<1x4x4xf32>
    %43 = vector.shape_cast %42 : vector<1x4x4xf32> to vector<4x4xf32>
    %c56 = arith.constant 56 : index
    %c0_48 = arith.constant 0 : index
    %44 = vector.load %arg9[%c56, %c0_48] : memref<124x4xf32, #tpu.memory_space<vmem>>, vector<4x4xf32>
    tpu.vector_store %arg9[%c56, %c0_48], %43 {strides = array<i32>} : memref<124x4xf32, #tpu.memory_space<vmem>>, vector<4x4xf32>,
    %c0_49 = arith.constant 0 : index
    %c0_50 = arith.constant 0 : index
    %c15 = arith.constant 15 : index
    %45 = vector.load %arg3[%c0_49, %c0_50, %c15] : memref<1x4x19xf32, #tpu.memory_space<vmem>>, vector<1x4x4xf32>
    %46 = vector.shape_cast %45 : vector<1x4x4xf32> to vector<4x4xf32>
    %c60 = arith.constant 60 : index
    %c0_51 = arith.constant 0 : index
    %47 = vector.load %arg9[%c60, %c0_51] : memref<124x4xf32, #tpu.memory_space<vmem>>, vector<4x4xf32>
    tpu.vector_store %arg9[%c60, %c0_51], %46 {strides = array<i32>} : memref<124x4xf32, #tpu.memory_space<vmem>>, vector<4x4xf32>,
    %c0_52 = arith.constant 0 : index
    %c0_53 = arith.constant 0 : index
    %c0_54 = arith.constant 0 : index
    %48 = vector.load %arg4[%c0_52, %c0_53, %c0_54] : memref<1x4x19xf32, #tpu.memory_space<vmem>>, vector<1x4x4xf32>
    %49 = vector.shape_cast %48 : vector<1x4x4xf32> to vector<4x4xf32>
    %c64 = arith.constant 64 : index
    %c0_55 = arith.constant 0 : index
    %50 = vector.load %arg9[%c64, %c0_55] : memref<124x4xf32, #tpu.memory_space<vmem>>, vector<4x4xf32>
    tpu.vector_store %arg9[%c64, %c0_55], %49 {strides = array<i32>} : memref<124x4xf32, #tpu.memory_space<vmem>>, vector<4x4xf32>,
    %c0_56 = arith.constant 0 : index
    %c0_57 = arith.constant 0 : index
    %c1_58 = arith.constant 1 : index
    %51 = vector.load %arg4[%c0_56, %c0_57, %c1_58] : memref<1x4x19xf32, #tpu.memory_space<vmem>>, vector<1x4x4xf32>
    %52 = vector.shape_cast %51 : vector<1x4x4xf32> to vector<4x4xf32>
    %c68 = arith.constant 68 : index
    %c0_59 = arith.constant 0 : index
    %53 = vector.load %arg9[%c68, %c0_59] : memref<124x4xf32, #tpu.memory_space<vmem>>, vector<4x4xf32>
    tpu.vector_store %arg9[%c68, %c0_59], %52 {strides = array<i32>} : memref<124x4xf32, #tpu.memory_space<vmem>>, vector<4x4xf32>,
    %c0_60 = arith.constant 0 : index
    %c0_61 = arith.constant 0 : index
    %c2_62 = arith.constant 2 : index
    %54 = vector.load %arg4[%c0_60, %c0_61, %c2_62] : memref<1x4x19xf32, #tpu.memory_space<vmem>>, vector<1x4x4xf32>
    %55 = vector.shape_cast %54 : vector<1x4x4xf32> to vector<4x4xf32>
    %c72 = arith.constant 72 : index
    %c0_63 = arith.constant 0 : index
    %56 = vector.load %arg9[%c72, %c0_63] : memref<124x4xf32, #tpu.memory_space<vmem>>, vector<4x4xf32>
    tpu.vector_store %arg9[%c72, %c0_63], %55 {strides = array<i32>} : memref<124x4xf32, #tpu.memory_space<vmem>>, vector<4x4xf32>,
    %c0_64 = arith.constant 0 : index
    %c0_65 = arith.constant 0 : index
    %c3_66 = arith.constant 3 : index
    %57 = vector.load %arg4[%c0_64, %c0_65, %c3_66] : memref<1x4x19xf32, #tpu.memory_space<vmem>>, vector<1x4x4xf32>
    %58 = vector.shape_cast %57 : vector<1x4x4xf32> to vector<4x4xf32>
    %c76 = arith.constant 76 : index
    %c0_67 = arith.constant 0 : index
    %59 = vector.load %arg9[%c76, %c0_67] : memref<124x4xf32, #tpu.memory_space<vmem>>, vector<4x4xf32>
    tpu.vector_store %arg9[%c76, %c0_67], %58 {strides = array<i32>} : memref<124x4xf32, #tpu.memory_space<vmem>>, vector<4x4xf32>,
    %c0_68 = arith.constant 0 : index
    %c0_69 = arith.constant 0 : index
    %c4_70 = arith.constant 4 : index
    %60 = vector.load %arg4[%c0_68, %c0_69, %c4_70] : memref<1x4x19xf32, #tpu.memory_space<vmem>>, vector<1x4x4xf32>
    %61 = vector.shape_cast %60 : vector<1x4x4xf32> to vector<4x4xf32>
    %c80 = arith.constant 80 : index
    %c0_71 = arith.constant 0 : index
    %62 = vector.load %arg9[%c80, %c0_71] : memref<124x4xf32, #tpu.memory_space<vmem>>, vector<4x4xf32>
    tpu.vector_store %arg9[%c80, %c0_71], %61 {strides = array<i32>} : memref<124x4xf32, #tpu.memory_space<vmem>>, vector<4x4xf32>,
    %c0_72 = arith.constant 0 : index
    %c0_73 = arith.constant 0 : index
    %c5_74 = arith.constant 5 : index
    %63 = vector.load %arg4[%c0_72, %c0_73, %c5_74] : memref<1x4x19xf32, #tpu.memory_space<vmem>>, vector<1x4x4xf32>
    %64 = vector.shape_cast %63 : vector<1x4x4xf32> to vector<4x4xf32>
    %c84 = arith.constant 84 : index
    %c0_75 = arith.constant 0 : index
    %65 = vector.load %arg9[%c84, %c0_75] : memref<124x4xf32, #tpu.memory_space<vmem>>, vector<4x4xf32>
    tpu.vector_store %arg9[%c84, %c0_75], %64 {strides = array<i32>} : memref<124x4xf32, #tpu.memory_space<vmem>>, vector<4x4xf32>,
    %c0_76 = arith.constant 0 : index
    %c0_77 = arith.constant 0 : index
    %c6_78 = arith.constant 6 : index
    %66 = vector.load %arg4[%c0_76, %c0_77, %c6_78] : memref<1x4x19xf32, #tpu.memory_space<vmem>>, vector<1x4x4xf32>
    %67 = vector.shape_cast %66 : vector<1x4x4xf32> to vector<4x4xf32>
    %c88 = arith.constant 88 : index
    %c0_79 = arith.constant 0 : index
    %68 = vector.load %arg9[%c88, %c0_79] : memref<124x4xf32, #tpu.memory_space<vmem>>, vector<4x4xf32>
    tpu.vector_store %arg9[%c88, %c0_79], %67 {strides = array<i32>} : memref<124x4xf32, #tpu.memory_space<vmem>>, vector<4x4xf32>,
    %c0_80 = arith.constant 0 : index
    %c0_81 = arith.constant 0 : index
    %c7_82 = arith.constant 7 : index
    %69 = vector.load %arg4[%c0_80, %c0_81, %c7_82] : memref<1x4x19xf32, #tpu.memory_space<vmem>>, vector<1x4x4xf32>
    %70 = vector.shape_cast %69 : vector<1x4x4xf32> to vector<4x4xf32>
    %c92 = arith.constant 92 : index
    %c0_83 = arith.constant 0 : index
    %71 = vector.load %arg9[%c92, %c0_83] : memref<124x4xf32, #tpu.memory_space<vmem>>, vector<4x4xf32>
    tpu.vector_store %arg9[%c92, %c0_83], %70 {strides = array<i32>} : memref<124x4xf32, #tpu.memory_space<vmem>>, vector<4x4xf32>,
    %c0_84 = arith.constant 0 : index
    %c0_85 = arith.constant 0 : index
    %c8_86 = arith.constant 8 : index
    %72 = vector.load %arg4[%c0_84, %c0_85, %c8_86] : memref<1x4x19xf32, #tpu.memory_space<vmem>>, vector<1x4x4xf32>
    %73 = vector.shape_cast %72 : vector<1x4x4xf32> to vector<4x4xf32>
    %c96 = arith.constant 96 : index
    %c0_87 = arith.constant 0 : index
    %74 = vector.load %arg9[%c96, %c0_87] : memref<124x4xf32, #tpu.memory_space<vmem>>, vector<4x4xf32>
    tpu.vector_store %arg9[%c96, %c0_87], %73 {strides = array<i32>} : memref<124x4xf32, #tpu.memory_space<vmem>>, vector<4x4xf32>,
    %c0_88 = arith.constant 0 : index
    %c0_89 = arith.constant 0 : index
    %c9_90 = arith.constant 9 : index
    %75 = vector.load %arg4[%c0_88, %c0_89, %c9_90] : memref<1x4x19xf32, #tpu.memory_space<vmem>>, vector<1x4x4xf32>
    %76 = vector.shape_cast %75 : vector<1x4x4xf32> to vector<4x4xf32>
    %c100 = arith.constant 100 : index
    %c0_91 = arith.constant 0 : index
    %77 = vector.load %arg9[%c100, %c0_91] : memref<124x4xf32, #tpu.memory_space<vmem>>, vector<4x4xf32>
    tpu.vector_store %arg9[%c100, %c0_91], %76 {strides = array<i32>} : memref<124x4xf32, #tpu.memory_space<vmem>>, vector<4x4xf32>,
    %c0_92 = arith.constant 0 : index
    %c0_93 = arith.constant 0 : index
    %c10_94 = arith.constant 10 : index
    %78 = vector.load %arg4[%c0_92, %c0_93, %c10_94] : memref<1x4x19xf32, #tpu.memory_space<vmem>>, vector<1x4x4xf32>
    %79 = vector.shape_cast %78 : vector<1x4x4xf32> to vector<4x4xf32>
    %c104 = arith.constant 104 : index
    %c0_95 = arith.constant 0 : index
    %80 = vector.load %arg9[%c104, %c0_95] : memref<124x4xf32, #tpu.memory_space<vmem>>, vector<4x4xf32>
    tpu.vector_store %arg9[%c104, %c0_95], %79 {strides = array<i32>} : memref<124x4xf32, #tpu.memory_space<vmem>>, vector<4x4xf32>,
    %c0_96 = arith.constant 0 : index
    %c0_97 = arith.constant 0 : index
    %c11_98 = arith.constant 11 : index
    %81 = vector.load %arg4[%c0_96, %c0_97, %c11_98] : memref<1x4x19xf32, #tpu.memory_space<vmem>>, vector<1x4x4xf32>
    %82 = vector.shape_cast %81 : vector<1x4x4xf32> to vector<4x4xf32>
    %c108 = arith.constant 108 : index
    %c0_99 = arith.constant 0 : index
    %83 = vector.load %arg9[%c108, %c0_99] : memref<124x4xf32, #tpu.memory_space<vmem>>, vector<4x4xf32>
    tpu.vector_store %arg9[%c108, %c0_99], %82 {strides = array<i32>} : memref<124x4xf32, #tpu.memory_space<vmem>>, vector<4x4xf32>,
    %c0_100 = arith.constant 0 : index
    %c0_101 = arith.constant 0 : index
    %c12_102 = arith.constant 12 : index
    %84 = vector.load %arg4[%c0_100, %c0_101, %c12_102] : memref<1x4x19xf32, #tpu.memory_space<vmem>>, vector<1x4x4xf32>
    %85 = vector.shape_cast %84 : vector<1x4x4xf32> to vector<4x4xf32>
    %c112 = arith.constant 112 : index
    %c0_103 = arith.constant 0 : index
    %86 = vector.load %arg9[%c112, %c0_103] : memref<124x4xf32, #tpu.memory_space<vmem>>, vector<4x4xf32>
    tpu.vector_store %arg9[%c112, %c0_103], %85 {strides = array<i32>} : memref<124x4xf32, #tpu.memory_space<vmem>>, vector<4x4xf32>,
    %c0_104 = arith.constant 0 : index
    %c0_105 = arith.constant 0 : index
    %c13_106 = arith.constant 13 : index
    %87 = vector.load %arg4[%c0_104, %c0_105, %c13_106] : memref<1x4x19xf32, #tpu.memory_space<vmem>>, vector<1x4x4xf32>
    %88 = vector.shape_cast %87 : vector<1x4x4xf32> to vector<4x4xf32>
    %c116 = arith.constant 116 : index
    %c0_107 = arith.constant 0 : index
    %89 = vector.load %arg9[%c116, %c0_107] : memref<124x4xf32, #tpu.memory_space<vmem>>, vector<4x4xf32>
    tpu.vector_store %arg9[%c116, %c0_107], %88 {strides = array<i32>} : memref<124x4xf32, #tpu.memory_space<vmem>>, vector<4x4xf32>,
    %c0_108 = arith.constant 0 : index
    %c0_109 = arith.constant 0 : index
    %c14_110 = arith.constant 14 : index
    %90 = vector.load %arg4[%c0_108, %c0_109, %c14_110] : memref<1x4x19xf32, #tpu.memory_space<vmem>>, vector<1x4x4xf32>
    %91 = vector.shape_cast %90 : vector<1x4x4xf32> to vector<4x4xf32>
    %c120 = arith.constant 120 : index
    %c0_111 = arith.constant 0 : index
    %92 = vector.load %arg9[%c120, %c0_111] : memref<124x4xf32, #tpu.memory_space<vmem>>, vector<4x4xf32>
    tpu.vector_store %arg9[%c120, %c0_111], %91 {strides = array<i32>} : memref<124x4xf32, #tpu.memory_space<vmem>>, vector<4x4xf32>,
    %c0_112 = arith.constant 0 : index
    %c0_113 = arith.constant 0 : index
    %93 = vector.load %arg5[%c0_112, %c0_113] : memref<8x124xf32, #tpu.memory_space<vmem>>, vector<8x124xf32>
    %c0_114 = arith.constant 0 : index
    %c0_115 = arith.constant 0 : index
    %94 = vector.load %arg9[%c0_114, %c0_115] : memref<124x4xf32, #tpu.memory_space<vmem>>, vector<124x4xf32>
    %cst = arith.constant dense<0.000000e+00> : vector<8x4xf32>
    %95 = tpu.matmul %93, %94, %cst {dimension_numbers = #tpu.dot_dimension_numbers<[1], [0], [0], [1], [0, 0, 1, 1], [], []>} : vector<8x124xf32>, vector<124x4xf32>, vector<8x4xf32> -> vector<8x4xf32>
    %c0_116 = arith.constant 0 : index
    %c0_117 = arith.constant 0 : index
    %96 = vector.load %arg6[%c0_116, %c0_117] : memref<8x1xf32, #tpu.memory_space<vmem>>, vector<8x1xf32>
    %97 = vector.broadcast %96 : vector<8x1xf32> to vector<8x4xf32>
    %98 = arith.addf %95, %97 : vector<8x4xf32>
    %c0_118 = arith.constant 0 : index
    %99 = memref.load %arg7[%c0_118] : memref<1xf32, #tpu.memory_space<smem>>
    %cst_119 = arith.constant 0.000000e+00 : f32
    %100 = vector.broadcast %cst_119 : f32 to vector<8x4xf32>
    %101 = arith.cmpf ogt, %98, %100 : vector<8x4xf32>
    %102 = vector.broadcast %99 : f32 to vector<8x4xf32>
    %103 = arith.mulf %102, %98 : vector<8x4xf32>
    %104 = arith.select %101, %98, %103 : vector<8x4xi1>, vector<8x4xf32>
    %c0_120 = arith.constant 0 : index
    %c0_121 = arith.constant 0 : index
    %c0_122 = arith.constant 0 : index
    %105 = vector.load %arg8[%c0_120, %c0_121, %c0_122] : memref<1x8x4xf32, #tpu.memory_space<vmem>>, vector<1x8x4xf32>
    %106 = vector.shape_cast %105 : vector<1x8x4xf32> to vector<8x4xf32>
    %107 = vector.shape_cast %104 : vector<8x4xf32> to vector<1x8x4xf32>
    tpu.vector_store %arg8[%c0_120, %c0_121, %c0_122], %107 {strides = array<i32>} : memref<1x8x4xf32, #tpu.memory_space<vmem>>, vector<1x8x4xf32>,
    return
  }
  func.func @transform_0(%arg0: i32, %arg1: i32, %arg2: i32) -> (i32, i32, i32) {
    %c0_i32 = arith.constant 0 : i32
    %c0_i32_0 = arith.constant 0 : i32
    %c0_i32_1 = arith.constant 0 : i32
    return %arg1, %c0_i32, %c0_i32_0 : i32, i32, i32
  }
  func.func @transform_1(%arg0: i32, %arg1: i32, %arg2: i32) -> (i32, i32, i32) {
    %c0_i32 = arith.constant 0 : i32
    %c0_i32_0 = arith.constant 0 : i32
    %c0_i32_1 = arith.constant 0 : i32
    return %arg1, %c0_i32, %c0_i32_0 : i32, i32, i32
  }
  func.func @transform_2(%arg0: i32, %arg1: i32, %arg2: i32) -> (i32, i32) {
    %c0_i32 = arith.constant 0 : i32
    %c0_i32_0 = arith.constant 0 : i32
    return %arg0, %c0_i32 : i32, i32
  }
  func.func @transform_3(%arg0: i32, %arg1: i32, %arg2: i32) -> (i32, i32) {
    %c0_i32 = arith.constant 0 : i32
    %c0_i32_0 = arith.constant 0 : i32
    return %arg0, %c0_i32 : i32, i32
  }
  func.func @transform_4(%arg0: i32, %arg1: i32, %arg2: i32) -> i32 {
    %c0_i32 = arith.constant 0 : i32
    %c0_i32_0 = arith.constant 0 : i32
    return %c0_i32 : i32
  }
  func.func @transform_5(%arg0: i32, %arg1: i32, %arg2: i32) -> (i32, i32, i32) {
    %c0_i32 = arith.constant 0 : i32
    return %arg1, %arg0, %arg2 : i32, i32, i32
  }
}

module attributes {stable_mosaic.version = 11 : i64} {
  func.func @_enc_kernel_stacked(%arg0: i32, %arg1: i32, %arg2: i32, %arg3: memref<1x1x23xf32, #tpu.memory_space<vmem>>, %arg4: memref<1x1x23xf32, #tpu.memory_space<vmem>>, %arg5: memref<4x31xf32, #tpu.memory_space<vmem>>, %arg6: memref<4x1xf32, #tpu.memory_space<vmem>>, %arg7: memref<1xf32, #tpu.memory_space<smem>>, %arg8: memref<1x4x8xf32, #tpu.memory_space<vmem>>, %arg9: memref<31x8xf32, #tpu.memory_space<vmem>>) attributes {dimension_semantics = [#tpu.dimension_semantics<parallel>, #tpu.dimension_semantics<parallel>, #tpu.dimension_semantics<parallel>], iteration_bounds = array<i64: 1, 2, 1>, scalar_prefetch = 0 : i64, scratch_operands = 1 : i64, tpu.core_type = #tpu.core_type<tc>, window_params = [{transform_indices = @transform_0, window_bounds = array<i64: 1, 1, 23>}, {transform_indices = @transform_1, window_bounds = array<i64: 1, 1, 23>}, {transform_indices = @transform_2, window_bounds = array<i64: 4, 31>}, {transform_indices = @transform_3, window_bounds = array<i64: 4, 1>}, {transform_indices = @transform_4, window_bounds = array<i64: 1>}, {transform_indices = @transform_5, window_bounds = array<i64: 1, 4, 8>}]} {
    %c0 = arith.constant 0 : index
    %c0_0 = arith.constant 0 : index
    %c0_1 = arith.constant 0 : index
    %0 = vector.load %arg3[%c0, %c0_0, %c0_1] : memref<1x1x23xf32, #tpu.memory_space<vmem>>, vector<1x1x8xf32>
    %1 = vector.shape_cast %0 : vector<1x1x8xf32> to vector<1x8xf32>
    %c0_2 = arith.constant 0 : index
    %c0_3 = arith.constant 0 : index
    %2 = vector.load %arg9[%c0_2, %c0_3] : memref<31x8xf32, #tpu.memory_space<vmem>>, vector<1x8xf32>
    tpu.vector_store %arg9[%c0_2, %c0_3], %1 {strides = array<i32>} : memref<31x8xf32, #tpu.memory_space<vmem>>, vector<1x8xf32>,
    %c0_4 = arith.constant 0 : index
    %c0_5 = arith.constant 0 : index
    %c1 = arith.constant 1 : index
    %3 = vector.load %arg3[%c0_4, %c0_5, %c1] : memref<1x1x23xf32, #tpu.memory_space<vmem>>, vector<1x1x8xf32>
    %4 = vector.shape_cast %3 : vector<1x1x8xf32> to vector<1x8xf32>
    %c1_6 = arith.constant 1 : index
    %c0_7 = arith.constant 0 : index
    %5 = vector.load %arg9[%c1_6, %c0_7] : memref<31x8xf32, #tpu.memory_space<vmem>>, vector<1x8xf32>
    tpu.vector_store %arg9[%c1_6, %c0_7], %4 {strides = array<i32>} : memref<31x8xf32, #tpu.memory_space<vmem>>, vector<1x8xf32>,
    %c0_8 = arith.constant 0 : index
    %c0_9 = arith.constant 0 : index
    %c2 = arith.constant 2 : index
    %6 = vector.load %arg3[%c0_8, %c0_9, %c2] : memref<1x1x23xf32, #tpu.memory_space<vmem>>, vector<1x1x8xf32>
    %7 = vector.shape_cast %6 : vector<1x1x8xf32> to vector<1x8xf32>
    %c2_10 = arith.constant 2 : index
    %c0_11 = arith.constant 0 : index
    %8 = vector.load %arg9[%c2_10, %c0_11] : memref<31x8xf32, #tpu.memory_space<vmem>>, vector<1x8xf32>
    tpu.vector_store %arg9[%c2_10, %c0_11], %7 {strides = array<i32>} : memref<31x8xf32, #tpu.memory_space<vmem>>, vector<1x8xf32>,
    %c0_12 = arith.constant 0 : index
    %c0_13 = arith.constant 0 : index
    %c3 = arith.constant 3 : index
    %9 = vector.load %arg3[%c0_12, %c0_13, %c3] : memref<1x1x23xf32, #tpu.memory_space<vmem>>, vector<1x1x8xf32>
    %10 = vector.shape_cast %9 : vector<1x1x8xf32> to vector<1x8xf32>
    %c3_14 = arith.constant 3 : index
    %c0_15 = arith.constant 0 : index
    %11 = vector.load %arg9[%c3_14, %c0_15] : memref<31x8xf32, #tpu.memory_space<vmem>>, vector<1x8xf32>
    tpu.vector_store %arg9[%c3_14, %c0_15], %10 {strides = array<i32>} : memref<31x8xf32, #tpu.memory_space<vmem>>, vector<1x8xf32>,
    %c0_16 = arith.constant 0 : index
    %c0_17 = arith.constant 0 : index
    %c4 = arith.constant 4 : index
    %12 = vector.load %arg3[%c0_16, %c0_17, %c4] : memref<1x1x23xf32, #tpu.memory_space<vmem>>, vector<1x1x8xf32>
    %13 = vector.shape_cast %12 : vector<1x1x8xf32> to vector<1x8xf32>
    %c4_18 = arith.constant 4 : index
    %c0_19 = arith.constant 0 : index
    %14 = vector.load %arg9[%c4_18, %c0_19] : memref<31x8xf32, #tpu.memory_space<vmem>>, vector<1x8xf32>
    tpu.vector_store %arg9[%c4_18, %c0_19], %13 {strides = array<i32>} : memref<31x8xf32, #tpu.memory_space<vmem>>, vector<1x8xf32>,
    %c0_20 = arith.constant 0 : index
    %c0_21 = arith.constant 0 : index
    %c5 = arith.constant 5 : index
    %15 = vector.load %arg3[%c0_20, %c0_21, %c5] : memref<1x1x23xf32, #tpu.memory_space<vmem>>, vector<1x1x8xf32>
    %16 = vector.shape_cast %15 : vector<1x1x8xf32> to vector<1x8xf32>
    %c5_22 = arith.constant 5 : index
    %c0_23 = arith.constant 0 : index
    %17 = vector.load %arg9[%c5_22, %c0_23] : memref<31x8xf32, #tpu.memory_space<vmem>>, vector<1x8xf32>
    tpu.vector_store %arg9[%c5_22, %c0_23], %16 {strides = array<i32>} : memref<31x8xf32, #tpu.memory_space<vmem>>, vector<1x8xf32>,
    %c0_24 = arith.constant 0 : index
    %c0_25 = arith.constant 0 : index
    %c6 = arith.constant 6 : index
    %18 = vector.load %arg3[%c0_24, %c0_25, %c6] : memref<1x1x23xf32, #tpu.memory_space<vmem>>, vector<1x1x8xf32>
    %19 = vector.shape_cast %18 : vector<1x1x8xf32> to vector<1x8xf32>
    %c6_26 = arith.constant 6 : index
    %c0_27 = arith.constant 0 : index
    %20 = vector.load %arg9[%c6_26, %c0_27] : memref<31x8xf32, #tpu.memory_space<vmem>>, vector<1x8xf32>
    tpu.vector_store %arg9[%c6_26, %c0_27], %19 {strides = array<i32>} : memref<31x8xf32, #tpu.memory_space<vmem>>, vector<1x8xf32>,
    %c0_28 = arith.constant 0 : index
    %c0_29 = arith.constant 0 : index
    %c7 = arith.constant 7 : index
    %21 = vector.load %arg3[%c0_28, %c0_29, %c7] : memref<1x1x23xf32, #tpu.memory_space<vmem>>, vector<1x1x8xf32>
    %22 = vector.shape_cast %21 : vector<1x1x8xf32> to vector<1x8xf32>
    %c7_30 = arith.constant 7 : index
    %c0_31 = arith.constant 0 : index
    %23 = vector.load %arg9[%c7_30, %c0_31] : memref<31x8xf32, #tpu.memory_space<vmem>>, vector<1x8xf32>
    tpu.vector_store %arg9[%c7_30, %c0_31], %22 {strides = array<i32>} : memref<31x8xf32, #tpu.memory_space<vmem>>, vector<1x8xf32>,
    %c0_32 = arith.constant 0 : index
    %c0_33 = arith.constant 0 : index
    %c8 = arith.constant 8 : index
    %24 = vector.load %arg3[%c0_32, %c0_33, %c8] : memref<1x1x23xf32, #tpu.memory_space<vmem>>, vector<1x1x8xf32>
    %25 = vector.shape_cast %24 : vector<1x1x8xf32> to vector<1x8xf32>
    %c8_34 = arith.constant 8 : index
    %c0_35 = arith.constant 0 : index
    %26 = vector.load %arg9[%c8_34, %c0_35] : memref<31x8xf32, #tpu.memory_space<vmem>>, vector<1x8xf32>
    tpu.vector_store %arg9[%c8_34, %c0_35], %25 {strides = array<i32>} : memref<31x8xf32, #tpu.memory_space<vmem>>, vector<1x8xf32>,
    %c0_36 = arith.constant 0 : index
    %c0_37 = arith.constant 0 : index
    %c9 = arith.constant 9 : index
    %27 = vector.load %arg3[%c0_36, %c0_37, %c9] : memref<1x1x23xf32, #tpu.memory_space<vmem>>, vector<1x1x8xf32>
    %28 = vector.shape_cast %27 : vector<1x1x8xf32> to vector<1x8xf32>
    %c9_38 = arith.constant 9 : index
    %c0_39 = arith.constant 0 : index
    %29 = vector.load %arg9[%c9_38, %c0_39] : memref<31x8xf32, #tpu.memory_space<vmem>>, vector<1x8xf32>
    tpu.vector_store %arg9[%c9_38, %c0_39], %28 {strides = array<i32>} : memref<31x8xf32, #tpu.memory_space<vmem>>, vector<1x8xf32>,
    %c0_40 = arith.constant 0 : index
    %c0_41 = arith.constant 0 : index
    %c10 = arith.constant 10 : index
    %30 = vector.load %arg3[%c0_40, %c0_41, %c10] : memref<1x1x23xf32, #tpu.memory_space<vmem>>, vector<1x1x8xf32>
    %31 = vector.shape_cast %30 : vector<1x1x8xf32> to vector<1x8xf32>
    %c10_42 = arith.constant 10 : index
    %c0_43 = arith.constant 0 : index
    %32 = vector.load %arg9[%c10_42, %c0_43] : memref<31x8xf32, #tpu.memory_space<vmem>>, vector<1x8xf32>
    tpu.vector_store %arg9[%c10_42, %c0_43], %31 {strides = array<i32>} : memref<31x8xf32, #tpu.memory_space<vmem>>, vector<1x8xf32>,
    %c0_44 = arith.constant 0 : index
    %c0_45 = arith.constant 0 : index
    %c11 = arith.constant 11 : index
    %33 = vector.load %arg3[%c0_44, %c0_45, %c11] : memref<1x1x23xf32, #tpu.memory_space<vmem>>, vector<1x1x8xf32>
    %34 = vector.shape_cast %33 : vector<1x1x8xf32> to vector<1x8xf32>
    %c11_46 = arith.constant 11 : index
    %c0_47 = arith.constant 0 : index
    %35 = vector.load %arg9[%c11_46, %c0_47] : memref<31x8xf32, #tpu.memory_space<vmem>>, vector<1x8xf32>
    tpu.vector_store %arg9[%c11_46, %c0_47], %34 {strides = array<i32>} : memref<31x8xf32, #tpu.memory_space<vmem>>, vector<1x8xf32>,
    %c0_48 = arith.constant 0 : index
    %c0_49 = arith.constant 0 : index
    %c12 = arith.constant 12 : index
    %36 = vector.load %arg3[%c0_48, %c0_49, %c12] : memref<1x1x23xf32, #tpu.memory_space<vmem>>, vector<1x1x8xf32>
    %37 = vector.shape_cast %36 : vector<1x1x8xf32> to vector<1x8xf32>
    %c12_50 = arith.constant 12 : index
    %c0_51 = arith.constant 0 : index
    %38 = vector.load %arg9[%c12_50, %c0_51] : memref<31x8xf32, #tpu.memory_space<vmem>>, vector<1x8xf32>
    tpu.vector_store %arg9[%c12_50, %c0_51], %37 {strides = array<i32>} : memref<31x8xf32, #tpu.memory_space<vmem>>, vector<1x8xf32>,
    %c0_52 = arith.constant 0 : index
    %c0_53 = arith.constant 0 : index
    %c13 = arith.constant 13 : index
    %39 = vector.load %arg3[%c0_52, %c0_53, %c13] : memref<1x1x23xf32, #tpu.memory_space<vmem>>, vector<1x1x8xf32>
    %40 = vector.shape_cast %39 : vector<1x1x8xf32> to vector<1x8xf32>
    %c13_54 = arith.constant 13 : index
    %c0_55 = arith.constant 0 : index
    %41 = vector.load %arg9[%c13_54, %c0_55] : memref<31x8xf32, #tpu.memory_space<vmem>>, vector<1x8xf32>
    tpu.vector_store %arg9[%c13_54, %c0_55], %40 {strides = array<i32>} : memref<31x8xf32, #tpu.memory_space<vmem>>, vector<1x8xf32>,
    %c0_56 = arith.constant 0 : index
    %c0_57 = arith.constant 0 : index
    %c14 = arith.constant 14 : index
    %42 = vector.load %arg3[%c0_56, %c0_57, %c14] : memref<1x1x23xf32, #tpu.memory_space<vmem>>, vector<1x1x8xf32>
    %43 = vector.shape_cast %42 : vector<1x1x8xf32> to vector<1x8xf32>
    %c14_58 = arith.constant 14 : index
    %c0_59 = arith.constant 0 : index
    %44 = vector.load %arg9[%c14_58, %c0_59] : memref<31x8xf32, #tpu.memory_space<vmem>>, vector<1x8xf32>
    tpu.vector_store %arg9[%c14_58, %c0_59], %43 {strides = array<i32>} : memref<31x8xf32, #tpu.memory_space<vmem>>, vector<1x8xf32>,
    %c0_60 = arith.constant 0 : index
    %c0_61 = arith.constant 0 : index
    %c15 = arith.constant 15 : index
    %45 = vector.load %arg3[%c0_60, %c0_61, %c15] : memref<1x1x23xf32, #tpu.memory_space<vmem>>, vector<1x1x8xf32>
    %46 = vector.shape_cast %45 : vector<1x1x8xf32> to vector<1x8xf32>
    %c15_62 = arith.constant 15 : index
    %c0_63 = arith.constant 0 : index
    %47 = vector.load %arg9[%c15_62, %c0_63] : memref<31x8xf32, #tpu.memory_space<vmem>>, vector<1x8xf32>
    tpu.vector_store %arg9[%c15_62, %c0_63], %46 {strides = array<i32>} : memref<31x8xf32, #tpu.memory_space<vmem>>, vector<1x8xf32>,
    %c0_64 = arith.constant 0 : index
    %c0_65 = arith.constant 0 : index
    %c0_66 = arith.constant 0 : index
    %48 = vector.load %arg4[%c0_64, %c0_65, %c0_66] : memref<1x1x23xf32, #tpu.memory_space<vmem>>, vector<1x1x8xf32>
    %49 = vector.shape_cast %48 : vector<1x1x8xf32> to vector<1x8xf32>
    %c16 = arith.constant 16 : index
    %c0_67 = arith.constant 0 : index
    %50 = vector.load %arg9[%c16, %c0_67] : memref<31x8xf32, #tpu.memory_space<vmem>>, vector<1x8xf32>
    tpu.vector_store %arg9[%c16, %c0_67], %49 {strides = array<i32>} : memref<31x8xf32, #tpu.memory_space<vmem>>, vector<1x8xf32>,
    %c0_68 = arith.constant 0 : index
    %c0_69 = arith.constant 0 : index
    %c1_70 = arith.constant 1 : index
    %51 = vector.load %arg4[%c0_68, %c0_69, %c1_70] : memref<1x1x23xf32, #tpu.memory_space<vmem>>, vector<1x1x8xf32>
    %52 = vector.shape_cast %51 : vector<1x1x8xf32> to vector<1x8xf32>
    %c17 = arith.constant 17 : index
    %c0_71 = arith.constant 0 : index
    %53 = vector.load %arg9[%c17, %c0_71] : memref<31x8xf32, #tpu.memory_space<vmem>>, vector<1x8xf32>
    tpu.vector_store %arg9[%c17, %c0_71], %52 {strides = array<i32>} : memref<31x8xf32, #tpu.memory_space<vmem>>, vector<1x8xf32>,
    %c0_72 = arith.constant 0 : index
    %c0_73 = arith.constant 0 : index
    %c2_74 = arith.constant 2 : index
    %54 = vector.load %arg4[%c0_72, %c0_73, %c2_74] : memref<1x1x23xf32, #tpu.memory_space<vmem>>, vector<1x1x8xf32>
    %55 = vector.shape_cast %54 : vector<1x1x8xf32> to vector<1x8xf32>
    %c18 = arith.constant 18 : index
    %c0_75 = arith.constant 0 : index
    %56 = vector.load %arg9[%c18, %c0_75] : memref<31x8xf32, #tpu.memory_space<vmem>>, vector<1x8xf32>
    tpu.vector_store %arg9[%c18, %c0_75], %55 {strides = array<i32>} : memref<31x8xf32, #tpu.memory_space<vmem>>, vector<1x8xf32>,
    %c0_76 = arith.constant 0 : index
    %c0_77 = arith.constant 0 : index
    %c3_78 = arith.constant 3 : index
    %57 = vector.load %arg4[%c0_76, %c0_77, %c3_78] : memref<1x1x23xf32, #tpu.memory_space<vmem>>, vector<1x1x8xf32>
    %58 = vector.shape_cast %57 : vector<1x1x8xf32> to vector<1x8xf32>
    %c19 = arith.constant 19 : index
    %c0_79 = arith.constant 0 : index
    %59 = vector.load %arg9[%c19, %c0_79] : memref<31x8xf32, #tpu.memory_space<vmem>>, vector<1x8xf32>
    tpu.vector_store %arg9[%c19, %c0_79], %58 {strides = array<i32>} : memref<31x8xf32, #tpu.memory_space<vmem>>, vector<1x8xf32>,
    %c0_80 = arith.constant 0 : index
    %c0_81 = arith.constant 0 : index
    %c4_82 = arith.constant 4 : index
    %60 = vector.load %arg4[%c0_80, %c0_81, %c4_82] : memref<1x1x23xf32, #tpu.memory_space<vmem>>, vector<1x1x8xf32>
    %61 = vector.shape_cast %60 : vector<1x1x8xf32> to vector<1x8xf32>
    %c20 = arith.constant 20 : index
    %c0_83 = arith.constant 0 : index
    %62 = vector.load %arg9[%c20, %c0_83] : memref<31x8xf32, #tpu.memory_space<vmem>>, vector<1x8xf32>
    tpu.vector_store %arg9[%c20, %c0_83], %61 {strides = array<i32>} : memref<31x8xf32, #tpu.memory_space<vmem>>, vector<1x8xf32>,
    %c0_84 = arith.constant 0 : index
    %c0_85 = arith.constant 0 : index
    %c5_86 = arith.constant 5 : index
    %63 = vector.load %arg4[%c0_84, %c0_85, %c5_86] : memref<1x1x23xf32, #tpu.memory_space<vmem>>, vector<1x1x8xf32>
    %64 = vector.shape_cast %63 : vector<1x1x8xf32> to vector<1x8xf32>
    %c21 = arith.constant 21 : index
    %c0_87 = arith.constant 0 : index
    %65 = vector.load %arg9[%c21, %c0_87] : memref<31x8xf32, #tpu.memory_space<vmem>>, vector<1x8xf32>
    tpu.vector_store %arg9[%c21, %c0_87], %64 {strides = array<i32>} : memref<31x8xf32, #tpu.memory_space<vmem>>, vector<1x8xf32>,
    %c0_88 = arith.constant 0 : index
    %c0_89 = arith.constant 0 : index
    %c6_90 = arith.constant 6 : index
    %66 = vector.load %arg4[%c0_88, %c0_89, %c6_90] : memref<1x1x23xf32, #tpu.memory_space<vmem>>, vector<1x1x8xf32>
    %67 = vector.shape_cast %66 : vector<1x1x8xf32> to vector<1x8xf32>
    %c22 = arith.constant 22 : index
    %c0_91 = arith.constant 0 : index
    %68 = vector.load %arg9[%c22, %c0_91] : memref<31x8xf32, #tpu.memory_space<vmem>>, vector<1x8xf32>
    tpu.vector_store %arg9[%c22, %c0_91], %67 {strides = array<i32>} : memref<31x8xf32, #tpu.memory_space<vmem>>, vector<1x8xf32>,
    %c0_92 = arith.constant 0 : index
    %c0_93 = arith.constant 0 : index
    %c7_94 = arith.constant 7 : index
    %69 = vector.load %arg4[%c0_92, %c0_93, %c7_94] : memref<1x1x23xf32, #tpu.memory_space<vmem>>, vector<1x1x8xf32>
    %70 = vector.shape_cast %69 : vector<1x1x8xf32> to vector<1x8xf32>
    %c23 = arith.constant 23 : index
    %c0_95 = arith.constant 0 : index
    %71 = vector.load %arg9[%c23, %c0_95] : memref<31x8xf32, #tpu.memory_space<vmem>>, vector<1x8xf32>
    tpu.vector_store %arg9[%c23, %c0_95], %70 {strides = array<i32>} : memref<31x8xf32, #tpu.memory_space<vmem>>, vector<1x8xf32>,
    %c0_96 = arith.constant 0 : index
    %c0_97 = arith.constant 0 : index
    %c8_98 = arith.constant 8 : index
    %72 = vector.load %arg4[%c0_96, %c0_97, %c8_98] : memref<1x1x23xf32, #tpu.memory_space<vmem>>, vector<1x1x8xf32>
    %73 = vector.shape_cast %72 : vector<1x1x8xf32> to vector<1x8xf32>
    %c24 = arith.constant 24 : index
    %c0_99 = arith.constant 0 : index
    %74 = vector.load %arg9[%c24, %c0_99] : memref<31x8xf32, #tpu.memory_space<vmem>>, vector<1x8xf32>
    tpu.vector_store %arg9[%c24, %c0_99], %73 {strides = array<i32>} : memref<31x8xf32, #tpu.memory_space<vmem>>, vector<1x8xf32>,
    %c0_100 = arith.constant 0 : index
    %c0_101 = arith.constant 0 : index
    %c9_102 = arith.constant 9 : index
    %75 = vector.load %arg4[%c0_100, %c0_101, %c9_102] : memref<1x1x23xf32, #tpu.memory_space<vmem>>, vector<1x1x8xf32>
    %76 = vector.shape_cast %75 : vector<1x1x8xf32> to vector<1x8xf32>
    %c25 = arith.constant 25 : index
    %c0_103 = arith.constant 0 : index
    %77 = vector.load %arg9[%c25, %c0_103] : memref<31x8xf32, #tpu.memory_space<vmem>>, vector<1x8xf32>
    tpu.vector_store %arg9[%c25, %c0_103], %76 {strides = array<i32>} : memref<31x8xf32, #tpu.memory_space<vmem>>, vector<1x8xf32>,
    %c0_104 = arith.constant 0 : index
    %c0_105 = arith.constant 0 : index
    %c10_106 = arith.constant 10 : index
    %78 = vector.load %arg4[%c0_104, %c0_105, %c10_106] : memref<1x1x23xf32, #tpu.memory_space<vmem>>, vector<1x1x8xf32>
    %79 = vector.shape_cast %78 : vector<1x1x8xf32> to vector<1x8xf32>
    %c26 = arith.constant 26 : index
    %c0_107 = arith.constant 0 : index
    %80 = vector.load %arg9[%c26, %c0_107] : memref<31x8xf32, #tpu.memory_space<vmem>>, vector<1x8xf32>
    tpu.vector_store %arg9[%c26, %c0_107], %79 {strides = array<i32>} : memref<31x8xf32, #tpu.memory_space<vmem>>, vector<1x8xf32>,
    %c0_108 = arith.constant 0 : index
    %c0_109 = arith.constant 0 : index
    %c11_110 = arith.constant 11 : index
    %81 = vector.load %arg4[%c0_108, %c0_109, %c11_110] : memref<1x1x23xf32, #tpu.memory_space<vmem>>, vector<1x1x8xf32>
    %82 = vector.shape_cast %81 : vector<1x1x8xf32> to vector<1x8xf32>
    %c27 = arith.constant 27 : index
    %c0_111 = arith.constant 0 : index
    %83 = vector.load %arg9[%c27, %c0_111] : memref<31x8xf32, #tpu.memory_space<vmem>>, vector<1x8xf32>
    tpu.vector_store %arg9[%c27, %c0_111], %82 {strides = array<i32>} : memref<31x8xf32, #tpu.memory_space<vmem>>, vector<1x8xf32>,
    %c0_112 = arith.constant 0 : index
    %c0_113 = arith.constant 0 : index
    %c12_114 = arith.constant 12 : index
    %84 = vector.load %arg4[%c0_112, %c0_113, %c12_114] : memref<1x1x23xf32, #tpu.memory_space<vmem>>, vector<1x1x8xf32>
    %85 = vector.shape_cast %84 : vector<1x1x8xf32> to vector<1x8xf32>
    %c28 = arith.constant 28 : index
    %c0_115 = arith.constant 0 : index
    %86 = vector.load %arg9[%c28, %c0_115] : memref<31x8xf32, #tpu.memory_space<vmem>>, vector<1x8xf32>
    tpu.vector_store %arg9[%c28, %c0_115], %85 {strides = array<i32>} : memref<31x8xf32, #tpu.memory_space<vmem>>, vector<1x8xf32>,
    %c0_116 = arith.constant 0 : index
    %c0_117 = arith.constant 0 : index
    %c13_118 = arith.constant 13 : index
    %87 = vector.load %arg4[%c0_116, %c0_117, %c13_118] : memref<1x1x23xf32, #tpu.memory_space<vmem>>, vector<1x1x8xf32>
    %88 = vector.shape_cast %87 : vector<1x1x8xf32> to vector<1x8xf32>
    %c29 = arith.constant 29 : index
    %c0_119 = arith.constant 0 : index
    %89 = vector.load %arg9[%c29, %c0_119] : memref<31x8xf32, #tpu.memory_space<vmem>>, vector<1x8xf32>
    tpu.vector_store %arg9[%c29, %c0_119], %88 {strides = array<i32>} : memref<31x8xf32, #tpu.memory_space<vmem>>, vector<1x8xf32>,
    %c0_120 = arith.constant 0 : index
    %c0_121 = arith.constant 0 : index
    %c14_122 = arith.constant 14 : index
    %90 = vector.load %arg4[%c0_120, %c0_121, %c14_122] : memref<1x1x23xf32, #tpu.memory_space<vmem>>, vector<1x1x8xf32>
    %91 = vector.shape_cast %90 : vector<1x1x8xf32> to vector<1x8xf32>
    %c30 = arith.constant 30 : index
    %c0_123 = arith.constant 0 : index
    %92 = vector.load %arg9[%c30, %c0_123] : memref<31x8xf32, #tpu.memory_space<vmem>>, vector<1x8xf32>
    tpu.vector_store %arg9[%c30, %c0_123], %91 {strides = array<i32>} : memref<31x8xf32, #tpu.memory_space<vmem>>, vector<1x8xf32>,
    %c0_124 = arith.constant 0 : index
    %c0_125 = arith.constant 0 : index
    %93 = vector.load %arg5[%c0_124, %c0_125] : memref<4x31xf32, #tpu.memory_space<vmem>>, vector<4x31xf32>
    %c0_126 = arith.constant 0 : index
    %c0_127 = arith.constant 0 : index
    %94 = vector.load %arg9[%c0_126, %c0_127] : memref<31x8xf32, #tpu.memory_space<vmem>>, vector<31x8xf32>
    %cst = arith.constant dense<0.000000e+00> : vector<4x8xf32>
    %95 = tpu.matmul %93, %94, %cst {dimension_numbers = #tpu.dot_dimension_numbers<[1], [0], [0], [1], [0, 0, 1, 1], [], []>} : vector<4x31xf32>, vector<31x8xf32>, vector<4x8xf32> -> vector<4x8xf32>
    %c0_128 = arith.constant 0 : index
    %c0_129 = arith.constant 0 : index
    %96 = vector.load %arg6[%c0_128, %c0_129] : memref<4x1xf32, #tpu.memory_space<vmem>>, vector<4x1xf32>
    %97 = vector.broadcast %96 : vector<4x1xf32> to vector<4x8xf32>
    %98 = arith.addf %95, %97 : vector<4x8xf32>
    %c0_130 = arith.constant 0 : index
    %99 = memref.load %arg7[%c0_130] : memref<1xf32, #tpu.memory_space<smem>>
    %cst_131 = arith.constant 0.000000e+00 : f32
    %100 = vector.broadcast %cst_131 : f32 to vector<4x8xf32>
    %101 = arith.cmpf ogt, %98, %100 : vector<4x8xf32>
    %102 = vector.broadcast %99 : f32 to vector<4x8xf32>
    %103 = arith.mulf %102, %98 : vector<4x8xf32>
    %104 = arith.select %101, %98, %103 : vector<4x8xi1>, vector<4x8xf32>
    %c0_132 = arith.constant 0 : index
    %c0_133 = arith.constant 0 : index
    %c0_134 = arith.constant 0 : index
    %105 = vector.load %arg8[%c0_132, %c0_133, %c0_134] : memref<1x4x8xf32, #tpu.memory_space<vmem>>, vector<1x4x8xf32>
    %106 = vector.shape_cast %105 : vector<1x4x8xf32> to vector<4x8xf32>
    %107 = vector.shape_cast %104 : vector<4x8xf32> to vector<1x4x8xf32>
    tpu.vector_store %arg8[%c0_132, %c0_133, %c0_134], %107 {strides = array<i32>} : memref<1x4x8xf32, #tpu.memory_space<vmem>>, vector<1x4x8xf32>,
    return
  }
  func.func @transform_0(%arg0: i32, %arg1: i32, %arg2: i32) -> (i32, i32, i32) {
    %c0_i32 = arith.constant 0 : i32
    %c0_i32_0 = arith.constant 0 : i32
    %c0_i32_1 = arith.constant 0 : i32
    return %arg1, %c0_i32, %c0_i32_0 : i32, i32, i32
  }
  func.func @transform_1(%arg0: i32, %arg1: i32, %arg2: i32) -> (i32, i32, i32) {
    %c0_i32 = arith.constant 0 : i32
    %c0_i32_0 = arith.constant 0 : i32
    %c0_i32_1 = arith.constant 0 : i32
    return %arg1, %c0_i32, %c0_i32_0 : i32, i32, i32
  }
  func.func @transform_2(%arg0: i32, %arg1: i32, %arg2: i32) -> (i32, i32) {
    %c0_i32 = arith.constant 0 : i32
    %c0_i32_0 = arith.constant 0 : i32
    return %arg0, %c0_i32 : i32, i32
  }
  func.func @transform_3(%arg0: i32, %arg1: i32, %arg2: i32) -> (i32, i32) {
    %c0_i32 = arith.constant 0 : i32
    %c0_i32_0 = arith.constant 0 : i32
    return %arg0, %c0_i32 : i32, i32
  }
  func.func @transform_4(%arg0: i32, %arg1: i32, %arg2: i32) -> i32 {
    %c0_i32 = arith.constant 0 : i32
    %c0_i32_0 = arith.constant 0 : i32
    return %c0_i32 : i32
  }
  func.func @transform_5(%arg0: i32, %arg1: i32, %arg2: i32) -> (i32, i32, i32) {
    %c0_i32 = arith.constant 0 : i32
    return %arg1, %arg0, %arg2 : i32, i32, i32
  }
}

module attributes {stable_mosaic.version = 11 : i64} {
  func.func @_enc_kernel_stacked(%arg0: i32, %arg1: i32, %arg2: i32, %arg3: memref<1x8x17xf32, #tpu.memory_space<vmem>>, %arg4: memref<1x8x17xf32, #tpu.memory_space<vmem>>, %arg5: memref<16x248xf32, #tpu.memory_space<vmem>>, %arg6: memref<16x1xf32, #tpu.memory_space<vmem>>, %arg7: memref<1xf32, #tpu.memory_space<smem>>, %arg8: memref<1x16x2xf32, #tpu.memory_space<vmem>>, %arg9: memref<248x2xf32, #tpu.memory_space<vmem>>) attributes {dimension_semantics = [#tpu.dimension_semantics<parallel>, #tpu.dimension_semantics<parallel>, #tpu.dimension_semantics<parallel>], iteration_bounds = array<i64: 1, 2, 1>, scalar_prefetch = 0 : i64, scratch_operands = 1 : i64, tpu.core_type = #tpu.core_type<tc>, window_params = [{transform_indices = @transform_0, window_bounds = array<i64: 1, 8, 17>}, {transform_indices = @transform_1, window_bounds = array<i64: 1, 8, 17>}, {transform_indices = @transform_2, window_bounds = array<i64: 16, 248>}, {transform_indices = @transform_3, window_bounds = array<i64: 16, 1>}, {transform_indices = @transform_4, window_bounds = array<i64: 1>}, {transform_indices = @transform_5, window_bounds = array<i64: 1, 16, 2>}]} {
    %c0 = arith.constant 0 : index
    %c0_0 = arith.constant 0 : index
    %c0_1 = arith.constant 0 : index
    %0 = vector.load %arg3[%c0, %c0_0, %c0_1] : memref<1x8x17xf32, #tpu.memory_space<vmem>>, vector<1x8x2xf32>
    %1 = vector.shape_cast %0 : vector<1x8x2xf32> to vector<8x2xf32>
    %c0_2 = arith.constant 0 : index
    %c0_3 = arith.constant 0 : index
    %2 = vector.load %arg9[%c0_2, %c0_3] : memref<248x2xf32, #tpu.memory_space<vmem>>, vector<8x2xf32>
    tpu.vector_store %arg9[%c0_2, %c0_3], %1 {strides = array<i32>} : memref<248x2xf32, #tpu.memory_space<vmem>>, vector<8x2xf32>,
    %c0_4 = arith.constant 0 : index
    %c0_5 = arith.constant 0 : index
    %c1 = arith.constant 1 : index
    %3 = vector.load %arg3[%c0_4, %c0_5, %c1] : memref<1x8x17xf32, #tpu.memory_space<vmem>>, vector<1x8x2xf32>
    %4 = vector.shape_cast %3 : vector<1x8x2xf32> to vector<8x2xf32>
    %c8 = arith.constant 8 : index
    %c0_6 = arith.constant 0 : index
    %5 = vector.load %arg9[%c8, %c0_6] : memref<248x2xf32, #tpu.memory_space<vmem>>, vector<8x2xf32>
    tpu.vector_store %arg9[%c8, %c0_6], %4 {strides = array<i32>} : memref<248x2xf32, #tpu.memory_space<vmem>>, vector<8x2xf32>,
    %c0_7 = arith.constant 0 : index
    %c0_8 = arith.constant 0 : index
    %c2 = arith.constant 2 : index
    %6 = vector.load %arg3[%c0_7, %c0_8, %c2] : memref<1x8x17xf32, #tpu.memory_space<vmem>>, vector<1x8x2xf32>
    %7 = vector.shape_cast %6 : vector<1x8x2xf32> to vector<8x2xf32>
    %c16 = arith.constant 16 : index
    %c0_9 = arith.constant 0 : index
    %8 = vector.load %arg9[%c16, %c0_9] : memref<248x2xf32, #tpu.memory_space<vmem>>, vector<8x2xf32>
    tpu.vector_store %arg9[%c16, %c0_9], %7 {strides = array<i32>} : memref<248x2xf32, #tpu.memory_space<vmem>>, vector<8x2xf32>,
    %c0_10 = arith.constant 0 : index
    %c0_11 = arith.constant 0 : index
    %c3 = arith.constant 3 : index
    %9 = vector.load %arg3[%c0_10, %c0_11, %c3] : memref<1x8x17xf32, #tpu.memory_space<vmem>>, vector<1x8x2xf32>
    %10 = vector.shape_cast %9 : vector<1x8x2xf32> to vector<8x2xf32>
    %c24 = arith.constant 24 : index
    %c0_12 = arith.constant 0 : index
    %11 = vector.load %arg9[%c24, %c0_12] : memref<248x2xf32, #tpu.memory_space<vmem>>, vector<8x2xf32>
    tpu.vector_store %arg9[%c24, %c0_12], %10 {strides = array<i32>} : memref<248x2xf32, #tpu.memory_space<vmem>>, vector<8x2xf32>,
    %c0_13 = arith.constant 0 : index
    %c0_14 = arith.constant 0 : index
    %c4 = arith.constant 4 : index
    %12 = vector.load %arg3[%c0_13, %c0_14, %c4] : memref<1x8x17xf32, #tpu.memory_space<vmem>>, vector<1x8x2xf32>
    %13 = vector.shape_cast %12 : vector<1x8x2xf32> to vector<8x2xf32>
    %c32 = arith.constant 32 : index
    %c0_15 = arith.constant 0 : index
    %14 = vector.load %arg9[%c32, %c0_15] : memref<248x2xf32, #tpu.memory_space<vmem>>, vector<8x2xf32>
    tpu.vector_store %arg9[%c32, %c0_15], %13 {strides = array<i32>} : memref<248x2xf32, #tpu.memory_space<vmem>>, vector<8x2xf32>,
    %c0_16 = arith.constant 0 : index
    %c0_17 = arith.constant 0 : index
    %c5 = arith.constant 5 : index
    %15 = vector.load %arg3[%c0_16, %c0_17, %c5] : memref<1x8x17xf32, #tpu.memory_space<vmem>>, vector<1x8x2xf32>
    %16 = vector.shape_cast %15 : vector<1x8x2xf32> to vector<8x2xf32>
    %c40 = arith.constant 40 : index
    %c0_18 = arith.constant 0 : index
    %17 = vector.load %arg9[%c40, %c0_18] : memref<248x2xf32, #tpu.memory_space<vmem>>, vector<8x2xf32>
    tpu.vector_store %arg9[%c40, %c0_18], %16 {strides = array<i32>} : memref<248x2xf32, #tpu.memory_space<vmem>>, vector<8x2xf32>,
    %c0_19 = arith.constant 0 : index
    %c0_20 = arith.constant 0 : index
    %c6 = arith.constant 6 : index
    %18 = vector.load %arg3[%c0_19, %c0_20, %c6] : memref<1x8x17xf32, #tpu.memory_space<vmem>>, vector<1x8x2xf32>
    %19 = vector.shape_cast %18 : vector<1x8x2xf32> to vector<8x2xf32>
    %c48 = arith.constant 48 : index
    %c0_21 = arith.constant 0 : index
    %20 = vector.load %arg9[%c48, %c0_21] : memref<248x2xf32, #tpu.memory_space<vmem>>, vector<8x2xf32>
    tpu.vector_store %arg9[%c48, %c0_21], %19 {strides = array<i32>} : memref<248x2xf32, #tpu.memory_space<vmem>>, vector<8x2xf32>,
    %c0_22 = arith.constant 0 : index
    %c0_23 = arith.constant 0 : index
    %c7 = arith.constant 7 : index
    %21 = vector.load %arg3[%c0_22, %c0_23, %c7] : memref<1x8x17xf32, #tpu.memory_space<vmem>>, vector<1x8x2xf32>
    %22 = vector.shape_cast %21 : vector<1x8x2xf32> to vector<8x2xf32>
    %c56 = arith.constant 56 : index
    %c0_24 = arith.constant 0 : index
    %23 = vector.load %arg9[%c56, %c0_24] : memref<248x2xf32, #tpu.memory_space<vmem>>, vector<8x2xf32>
    tpu.vector_store %arg9[%c56, %c0_24], %22 {strides = array<i32>} : memref<248x2xf32, #tpu.memory_space<vmem>>, vector<8x2xf32>,
    %c0_25 = arith.constant 0 : index
    %c0_26 = arith.constant 0 : index
    %c8_27 = arith.constant 8 : index
    %24 = vector.load %arg3[%c0_25, %c0_26, %c8_27] : memref<1x8x17xf32, #tpu.memory_space<vmem>>, vector<1x8x2xf32>
    %25 = vector.shape_cast %24 : vector<1x8x2xf32> to vector<8x2xf32>
    %c64 = arith.constant 64 : index
    %c0_28 = arith.constant 0 : index
    %26 = vector.load %arg9[%c64, %c0_28] : memref<248x2xf32, #tpu.memory_space<vmem>>, vector<8x2xf32>
    tpu.vector_store %arg9[%c64, %c0_28], %25 {strides = array<i32>} : memref<248x2xf32, #tpu.memory_space<vmem>>, vector<8x2xf32>,
    %c0_29 = arith.constant 0 : index
    %c0_30 = arith.constant 0 : index
    %c9 = arith.constant 9 : index
    %27 = vector.load %arg3[%c0_29, %c0_30, %c9] : memref<1x8x17xf32, #tpu.memory_space<vmem>>, vector<1x8x2xf32>
    %28 = vector.shape_cast %27 : vector<1x8x2xf32> to vector<8x2xf32>
    %c72 = arith.constant 72 : index
    %c0_31 = arith.constant 0 : index
    %29 = vector.load %arg9[%c72, %c0_31] : memref<248x2xf32, #tpu.memory_space<vmem>>, vector<8x2xf32>
    tpu.vector_store %arg9[%c72, %c0_31], %28 {strides = array<i32>} : memref<248x2xf32, #tpu.memory_space<vmem>>, vector<8x2xf32>,
    %c0_32 = arith.constant 0 : index
    %c0_33 = arith.constant 0 : index
    %c10 = arith.constant 10 : index
    %30 = vector.load %arg3[%c0_32, %c0_33, %c10] : memref<1x8x17xf32, #tpu.memory_space<vmem>>, vector<1x8x2xf32>
    %31 = vector.shape_cast %30 : vector<1x8x2xf32> to vector<8x2xf32>
    %c80 = arith.constant 80 : index
    %c0_34 = arith.constant 0 : index
    %32 = vector.load %arg9[%c80, %c0_34] : memref<248x2xf32, #tpu.memory_space<vmem>>, vector<8x2xf32>
    tpu.vector_store %arg9[%c80, %c0_34], %31 {strides = array<i32>} : memref<248x2xf32, #tpu.memory_space<vmem>>, vector<8x2xf32>,
    %c0_35 = arith.constant 0 : index
    %c0_36 = arith.constant 0 : index
    %c11 = arith.constant 11 : index
    %33 = vector.load %arg3[%c0_35, %c0_36, %c11] : memref<1x8x17xf32, #tpu.memory_space<vmem>>, vector<1x8x2xf32>
    %34 = vector.shape_cast %33 : vector<1x8x2xf32> to vector<8x2xf32>
    %c88 = arith.constant 88 : index
    %c0_37 = arith.constant 0 : index
    %35 = vector.load %arg9[%c88, %c0_37] : memref<248x2xf32, #tpu.memory_space<vmem>>, vector<8x2xf32>
    tpu.vector_store %arg9[%c88, %c0_37], %34 {strides = array<i32>} : memref<248x2xf32, #tpu.memory_space<vmem>>, vector<8x2xf32>,
    %c0_38 = arith.constant 0 : index
    %c0_39 = arith.constant 0 : index
    %c12 = arith.constant 12 : index
    %36 = vector.load %arg3[%c0_38, %c0_39, %c12] : memref<1x8x17xf32, #tpu.memory_space<vmem>>, vector<1x8x2xf32>
    %37 = vector.shape_cast %36 : vector<1x8x2xf32> to vector<8x2xf32>
    %c96 = arith.constant 96 : index
    %c0_40 = arith.constant 0 : index
    %38 = vector.load %arg9[%c96, %c0_40] : memref<248x2xf32, #tpu.memory_space<vmem>>, vector<8x2xf32>
    tpu.vector_store %arg9[%c96, %c0_40], %37 {strides = array<i32>} : memref<248x2xf32, #tpu.memory_space<vmem>>, vector<8x2xf32>,
    %c0_41 = arith.constant 0 : index
    %c0_42 = arith.constant 0 : index
    %c13 = arith.constant 13 : index
    %39 = vector.load %arg3[%c0_41, %c0_42, %c13] : memref<1x8x17xf32, #tpu.memory_space<vmem>>, vector<1x8x2xf32>
    %40 = vector.shape_cast %39 : vector<1x8x2xf32> to vector<8x2xf32>
    %c104 = arith.constant 104 : index
    %c0_43 = arith.constant 0 : index
    %41 = vector.load %arg9[%c104, %c0_43] : memref<248x2xf32, #tpu.memory_space<vmem>>, vector<8x2xf32>
    tpu.vector_store %arg9[%c104, %c0_43], %40 {strides = array<i32>} : memref<248x2xf32, #tpu.memory_space<vmem>>, vector<8x2xf32>,
    %c0_44 = arith.constant 0 : index
    %c0_45 = arith.constant 0 : index
    %c14 = arith.constant 14 : index
    %42 = vector.load %arg3[%c0_44, %c0_45, %c14] : memref<1x8x17xf32, #tpu.memory_space<vmem>>, vector<1x8x2xf32>
    %43 = vector.shape_cast %42 : vector<1x8x2xf32> to vector<8x2xf32>
    %c112 = arith.constant 112 : index
    %c0_46 = arith.constant 0 : index
    %44 = vector.load %arg9[%c112, %c0_46] : memref<248x2xf32, #tpu.memory_space<vmem>>, vector<8x2xf32>
    tpu.vector_store %arg9[%c112, %c0_46], %43 {strides = array<i32>} : memref<248x2xf32, #tpu.memory_space<vmem>>, vector<8x2xf32>,
    %c0_47 = arith.constant 0 : index
    %c0_48 = arith.constant 0 : index
    %c15 = arith.constant 15 : index
    %45 = vector.load %arg3[%c0_47, %c0_48, %c15] : memref<1x8x17xf32, #tpu.memory_space<vmem>>, vector<1x8x2xf32>
    %46 = vector.shape_cast %45 : vector<1x8x2xf32> to vector<8x2xf32>
    %c120 = arith.constant 120 : index
    %c0_49 = arith.constant 0 : index
    %47 = vector.load %arg9[%c120, %c0_49] : memref<248x2xf32, #tpu.memory_space<vmem>>, vector<8x2xf32>
    tpu.vector_store %arg9[%c120, %c0_49], %46 {strides = array<i32>} : memref<248x2xf32, #tpu.memory_space<vmem>>, vector<8x2xf32>,
    %c0_50 = arith.constant 0 : index
    %c0_51 = arith.constant 0 : index
    %c0_52 = arith.constant 0 : index
    %48 = vector.load %arg4[%c0_50, %c0_51, %c0_52] : memref<1x8x17xf32, #tpu.memory_space<vmem>>, vector<1x8x2xf32>
    %49 = vector.shape_cast %48 : vector<1x8x2xf32> to vector<8x2xf32>
    %c128 = arith.constant 128 : index
    %c0_53 = arith.constant 0 : index
    %50 = vector.load %arg9[%c128, %c0_53] : memref<248x2xf32, #tpu.memory_space<vmem>>, vector<8x2xf32>
    tpu.vector_store %arg9[%c128, %c0_53], %49 {strides = array<i32>} : memref<248x2xf32, #tpu.memory_space<vmem>>, vector<8x2xf32>,
    %c0_54 = arith.constant 0 : index
    %c0_55 = arith.constant 0 : index
    %c1_56 = arith.constant 1 : index
    %51 = vector.load %arg4[%c0_54, %c0_55, %c1_56] : memref<1x8x17xf32, #tpu.memory_space<vmem>>, vector<1x8x2xf32>
    %52 = vector.shape_cast %51 : vector<1x8x2xf32> to vector<8x2xf32>
    %c136 = arith.constant 136 : index
    %c0_57 = arith.constant 0 : index
    %53 = vector.load %arg9[%c136, %c0_57] : memref<248x2xf32, #tpu.memory_space<vmem>>, vector<8x2xf32>
    tpu.vector_store %arg9[%c136, %c0_57], %52 {strides = array<i32>} : memref<248x2xf32, #tpu.memory_space<vmem>>, vector<8x2xf32>,
    %c0_58 = arith.constant 0 : index
    %c0_59 = arith.constant 0 : index
    %c2_60 = arith.constant 2 : index
    %54 = vector.load %arg4[%c0_58, %c0_59, %c2_60] : memref<1x8x17xf32, #tpu.memory_space<vmem>>, vector<1x8x2xf32>
    %55 = vector.shape_cast %54 : vector<1x8x2xf32> to vector<8x2xf32>
    %c144 = arith.constant 144 : index
    %c0_61 = arith.constant 0 : index
    %56 = vector.load %arg9[%c144, %c0_61] : memref<248x2xf32, #tpu.memory_space<vmem>>, vector<8x2xf32>
    tpu.vector_store %arg9[%c144, %c0_61], %55 {strides = array<i32>} : memref<248x2xf32, #tpu.memory_space<vmem>>, vector<8x2xf32>,
    %c0_62 = arith.constant 0 : index
    %c0_63 = arith.constant 0 : index
    %c3_64 = arith.constant 3 : index
    %57 = vector.load %arg4[%c0_62, %c0_63, %c3_64] : memref<1x8x17xf32, #tpu.memory_space<vmem>>, vector<1x8x2xf32>
    %58 = vector.shape_cast %57 : vector<1x8x2xf32> to vector<8x2xf32>
    %c152 = arith.constant 152 : index
    %c0_65 = arith.constant 0 : index
    %59 = vector.load %arg9[%c152, %c0_65] : memref<248x2xf32, #tpu.memory_space<vmem>>, vector<8x2xf32>
    tpu.vector_store %arg9[%c152, %c0_65], %58 {strides = array<i32>} : memref<248x2xf32, #tpu.memory_space<vmem>>, vector<8x2xf32>,
    %c0_66 = arith.constant 0 : index
    %c0_67 = arith.constant 0 : index
    %c4_68 = arith.constant 4 : index
    %60 = vector.load %arg4[%c0_66, %c0_67, %c4_68] : memref<1x8x17xf32, #tpu.memory_space<vmem>>, vector<1x8x2xf32>
    %61 = vector.shape_cast %60 : vector<1x8x2xf32> to vector<8x2xf32>
    %c160 = arith.constant 160 : index
    %c0_69 = arith.constant 0 : index
    %62 = vector.load %arg9[%c160, %c0_69] : memref<248x2xf32, #tpu.memory_space<vmem>>, vector<8x2xf32>
    tpu.vector_store %arg9[%c160, %c0_69], %61 {strides = array<i32>} : memref<248x2xf32, #tpu.memory_space<vmem>>, vector<8x2xf32>,
    %c0_70 = arith.constant 0 : index
    %c0_71 = arith.constant 0 : index
    %c5_72 = arith.constant 5 : index
    %63 = vector.load %arg4[%c0_70, %c0_71, %c5_72] : memref<1x8x17xf32, #tpu.memory_space<vmem>>, vector<1x8x2xf32>
    %64 = vector.shape_cast %63 : vector<1x8x2xf32> to vector<8x2xf32>
    %c168 = arith.constant 168 : index
    %c0_73 = arith.constant 0 : index
    %65 = vector.load %arg9[%c168, %c0_73] : memref<248x2xf32, #tpu.memory_space<vmem>>, vector<8x2xf32>
    tpu.vector_store %arg9[%c168, %c0_73], %64 {strides = array<i32>} : memref<248x2xf32, #tpu.memory_space<vmem>>, vector<8x2xf32>,
    %c0_74 = arith.constant 0 : index
    %c0_75 = arith.constant 0 : index
    %c6_76 = arith.constant 6 : index
    %66 = vector.load %arg4[%c0_74, %c0_75, %c6_76] : memref<1x8x17xf32, #tpu.memory_space<vmem>>, vector<1x8x2xf32>
    %67 = vector.shape_cast %66 : vector<1x8x2xf32> to vector<8x2xf32>
    %c176 = arith.constant 176 : index
    %c0_77 = arith.constant 0 : index
    %68 = vector.load %arg9[%c176, %c0_77] : memref<248x2xf32, #tpu.memory_space<vmem>>, vector<8x2xf32>
    tpu.vector_store %arg9[%c176, %c0_77], %67 {strides = array<i32>} : memref<248x2xf32, #tpu.memory_space<vmem>>, vector<8x2xf32>,
    %c0_78 = arith.constant 0 : index
    %c0_79 = arith.constant 0 : index
    %c7_80 = arith.constant 7 : index
    %69 = vector.load %arg4[%c0_78, %c0_79, %c7_80] : memref<1x8x17xf32, #tpu.memory_space<vmem>>, vector<1x8x2xf32>
    %70 = vector.shape_cast %69 : vector<1x8x2xf32> to vector<8x2xf32>
    %c184 = arith.constant 184 : index
    %c0_81 = arith.constant 0 : index
    %71 = vector.load %arg9[%c184, %c0_81] : memref<248x2xf32, #tpu.memory_space<vmem>>, vector<8x2xf32>
    tpu.vector_store %arg9[%c184, %c0_81], %70 {strides = array<i32>} : memref<248x2xf32, #tpu.memory_space<vmem>>, vector<8x2xf32>,
    %c0_82 = arith.constant 0 : index
    %c0_83 = arith.constant 0 : index
    %c8_84 = arith.constant 8 : index
    %72 = vector.load %arg4[%c0_82, %c0_83, %c8_84] : memref<1x8x17xf32, #tpu.memory_space<vmem>>, vector<1x8x2xf32>
    %73 = vector.shape_cast %72 : vector<1x8x2xf32> to vector<8x2xf32>
    %c192 = arith.constant 192 : index
    %c0_85 = arith.constant 0 : index
    %74 = vector.load %arg9[%c192, %c0_85] : memref<248x2xf32, #tpu.memory_space<vmem>>, vector<8x2xf32>
    tpu.vector_store %arg9[%c192, %c0_85], %73 {strides = array<i32>} : memref<248x2xf32, #tpu.memory_space<vmem>>, vector<8x2xf32>,
    %c0_86 = arith.constant 0 : index
    %c0_87 = arith.constant 0 : index
    %c9_88 = arith.constant 9 : index
    %75 = vector.load %arg4[%c0_86, %c0_87, %c9_88] : memref<1x8x17xf32, #tpu.memory_space<vmem>>, vector<1x8x2xf32>
    %76 = vector.shape_cast %75 : vector<1x8x2xf32> to vector<8x2xf32>
    %c200 = arith.constant 200 : index
    %c0_89 = arith.constant 0 : index
    %77 = vector.load %arg9[%c200, %c0_89] : memref<248x2xf32, #tpu.memory_space<vmem>>, vector<8x2xf32>
    tpu.vector_store %arg9[%c200, %c0_89], %76 {strides = array<i32>} : memref<248x2xf32, #tpu.memory_space<vmem>>, vector<8x2xf32>,
    %c0_90 = arith.constant 0 : index
    %c0_91 = arith.constant 0 : index
    %c10_92 = arith.constant 10 : index
    %78 = vector.load %arg4[%c0_90, %c0_91, %c10_92] : memref<1x8x17xf32, #tpu.memory_space<vmem>>, vector<1x8x2xf32>
    %79 = vector.shape_cast %78 : vector<1x8x2xf32> to vector<8x2xf32>
    %c208 = arith.constant 208 : index
    %c0_93 = arith.constant 0 : index
    %80 = vector.load %arg9[%c208, %c0_93] : memref<248x2xf32, #tpu.memory_space<vmem>>, vector<8x2xf32>
    tpu.vector_store %arg9[%c208, %c0_93], %79 {strides = array<i32>} : memref<248x2xf32, #tpu.memory_space<vmem>>, vector<8x2xf32>,
    %c0_94 = arith.constant 0 : index
    %c0_95 = arith.constant 0 : index
    %c11_96 = arith.constant 11 : index
    %81 = vector.load %arg4[%c0_94, %c0_95, %c11_96] : memref<1x8x17xf32, #tpu.memory_space<vmem>>, vector<1x8x2xf32>
    %82 = vector.shape_cast %81 : vector<1x8x2xf32> to vector<8x2xf32>
    %c216 = arith.constant 216 : index
    %c0_97 = arith.constant 0 : index
    %83 = vector.load %arg9[%c216, %c0_97] : memref<248x2xf32, #tpu.memory_space<vmem>>, vector<8x2xf32>
    tpu.vector_store %arg9[%c216, %c0_97], %82 {strides = array<i32>} : memref<248x2xf32, #tpu.memory_space<vmem>>, vector<8x2xf32>,
    %c0_98 = arith.constant 0 : index
    %c0_99 = arith.constant 0 : index
    %c12_100 = arith.constant 12 : index
    %84 = vector.load %arg4[%c0_98, %c0_99, %c12_100] : memref<1x8x17xf32, #tpu.memory_space<vmem>>, vector<1x8x2xf32>
    %85 = vector.shape_cast %84 : vector<1x8x2xf32> to vector<8x2xf32>
    %c224 = arith.constant 224 : index
    %c0_101 = arith.constant 0 : index
    %86 = vector.load %arg9[%c224, %c0_101] : memref<248x2xf32, #tpu.memory_space<vmem>>, vector<8x2xf32>
    tpu.vector_store %arg9[%c224, %c0_101], %85 {strides = array<i32>} : memref<248x2xf32, #tpu.memory_space<vmem>>, vector<8x2xf32>,
    %c0_102 = arith.constant 0 : index
    %c0_103 = arith.constant 0 : index
    %c13_104 = arith.constant 13 : index
    %87 = vector.load %arg4[%c0_102, %c0_103, %c13_104] : memref<1x8x17xf32, #tpu.memory_space<vmem>>, vector<1x8x2xf32>
    %88 = vector.shape_cast %87 : vector<1x8x2xf32> to vector<8x2xf32>
    %c232 = arith.constant 232 : index
    %c0_105 = arith.constant 0 : index
    %89 = vector.load %arg9[%c232, %c0_105] : memref<248x2xf32, #tpu.memory_space<vmem>>, vector<8x2xf32>
    tpu.vector_store %arg9[%c232, %c0_105], %88 {strides = array<i32>} : memref<248x2xf32, #tpu.memory_space<vmem>>, vector<8x2xf32>,
    %c0_106 = arith.constant 0 : index
    %c0_107 = arith.constant 0 : index
    %c14_108 = arith.constant 14 : index
    %90 = vector.load %arg4[%c0_106, %c0_107, %c14_108] : memref<1x8x17xf32, #tpu.memory_space<vmem>>, vector<1x8x2xf32>
    %91 = vector.shape_cast %90 : vector<1x8x2xf32> to vector<8x2xf32>
    %c240 = arith.constant 240 : index
    %c0_109 = arith.constant 0 : index
    %92 = vector.load %arg9[%c240, %c0_109] : memref<248x2xf32, #tpu.memory_space<vmem>>, vector<8x2xf32>
    tpu.vector_store %arg9[%c240, %c0_109], %91 {strides = array<i32>} : memref<248x2xf32, #tpu.memory_space<vmem>>, vector<8x2xf32>,
    %c0_110 = arith.constant 0 : index
    %c0_111 = arith.constant 0 : index
    %93 = vector.load %arg5[%c0_110, %c0_111] : memref<16x248xf32, #tpu.memory_space<vmem>>, vector<16x248xf32>
    %c0_112 = arith.constant 0 : index
    %c0_113 = arith.constant 0 : index
    %94 = vector.load %arg9[%c0_112, %c0_113] : memref<248x2xf32, #tpu.memory_space<vmem>>, vector<248x2xf32>
    %cst = arith.constant dense<0.000000e+00> : vector<16x2xf32>
    %95 = tpu.matmul %93, %94, %cst {dimension_numbers = #tpu.dot_dimension_numbers<[1], [0], [0], [1], [0, 0, 1, 1], [], []>} : vector<16x248xf32>, vector<248x2xf32>, vector<16x2xf32> -> vector<16x2xf32>
    %c0_114 = arith.constant 0 : index
    %c0_115 = arith.constant 0 : index
    %96 = vector.load %arg6[%c0_114, %c0_115] : memref<16x1xf32, #tpu.memory_space<vmem>>, vector<16x1xf32>
    %97 = vector.broadcast %96 : vector<16x1xf32> to vector<16x2xf32>
    %98 = arith.addf %95, %97 : vector<16x2xf32>
    %c0_116 = arith.constant 0 : index
    %99 = memref.load %arg7[%c0_116] : memref<1xf32, #tpu.memory_space<smem>>
    %cst_117 = arith.constant 0.000000e+00 : f32
    %100 = vector.broadcast %cst_117 : f32 to vector<16x2xf32>
    %101 = arith.cmpf ogt, %98, %100 : vector<16x2xf32>
    %102 = vector.broadcast %99 : f32 to vector<16x2xf32>
    %103 = arith.mulf %102, %98 : vector<16x2xf32>
    %104 = arith.select %101, %98, %103 : vector<16x2xi1>, vector<16x2xf32>
    %c0_118 = arith.constant 0 : index
    %c0_119 = arith.constant 0 : index
    %c0_120 = arith.constant 0 : index
    %105 = vector.load %arg8[%c0_118, %c0_119, %c0_120] : memref<1x16x2xf32, #tpu.memory_space<vmem>>, vector<1x16x2xf32>
    %106 = vector.shape_cast %105 : vector<1x16x2xf32> to vector<16x2xf32>
    %107 = vector.shape_cast %104 : vector<16x2xf32> to vector<1x16x2xf32>
    tpu.vector_store %arg8[%c0_118, %c0_119, %c0_120], %107 {strides = array<i32>} : memref<1x16x2xf32, #tpu.memory_space<vmem>>, vector<1x16x2xf32>,
    return
  }
  func.func @transform_0(%arg0: i32, %arg1: i32, %arg2: i32) -> (i32, i32, i32) {
    %c0_i32 = arith.constant 0 : i32
    %c0_i32_0 = arith.constant 0 : i32
    %c0_i32_1 = arith.constant 0 : i32
    return %arg1, %c0_i32, %c0_i32_0 : i32, i32, i32
  }
  func.func @transform_1(%arg0: i32, %arg1: i32, %arg2: i32) -> (i32, i32, i32) {
    %c0_i32 = arith.constant 0 : i32
    %c0_i32_0 = arith.constant 0 : i32
    %c0_i32_1 = arith.constant 0 : i32
    return %arg1, %c0_i32, %c0_i32_0 : i32, i32, i32
  }
  func.func @transform_2(%arg0: i32, %arg1: i32, %arg2: i32) -> (i32, i32) {
    %c0_i32 = arith.constant 0 : i32
    %c0_i32_0 = arith.constant 0 : i32
    return %arg0, %c0_i32 : i32, i32
  }
  func.func @transform_3(%arg0: i32, %arg1: i32, %arg2: i32) -> (i32, i32) {
    %c0_i32 = arith.constant 0 : i32
    %c0_i32_0 = arith.constant 0 : i32
    return %arg0, %c0_i32 : i32, i32
  }
  func.func @transform_4(%arg0: i32, %arg1: i32, %arg2: i32) -> i32 {
    %c0_i32 = arith.constant 0 : i32
    %c0_i32_0 = arith.constant 0 : i32
    return %c0_i32 : i32
  }
  func.func @transform_5(%arg0: i32, %arg1: i32, %arg2: i32) -> (i32, i32, i32) {
    %c0_i32 = arith.constant 0 : i32
    return %arg1, %arg0, %arg2 : i32, i32, i32
  }
}

module attributes {stable_mosaic.version = 11 : i64} {
  func.func @_dec_kernel_stacked(%arg0: i32, %arg1: i32, %arg2: i32, %arg3: memref<1x16x17xf32, #tpu.memory_space<vmem>>, %arg4: memref<1x16x17xf32, #tpu.memory_space<vmem>>, %arg5: memref<8x512xf32, #tpu.memory_space<vmem>>, %arg6: memref<8x512xf32, #tpu.memory_space<vmem>>, %arg7: memref<8x1xf32, #tpu.memory_space<vmem>>, %arg8: memref<1xf32, #tpu.memory_space<smem>>, %arg9: memref<1x8x2xf32, #tpu.memory_space<vmem>>, %arg10: memref<1x8x2xf32, #tpu.memory_space<vmem>>, %arg11: memref<512x2xf32, #tpu.memory_space<vmem>>) attributes {dimension_semantics = [#tpu.dimension_semantics<parallel>, #tpu.dimension_semantics<parallel>, #tpu.dimension_semantics<parallel>], iteration_bounds = array<i64: 1, 2, 1>, scalar_prefetch = 0 : i64, scratch_operands = 1 : i64, tpu.core_type = #tpu.core_type<tc>, window_params = [{transform_indices = @transform_0, window_bounds = array<i64: 1, 16, 17>}, {transform_indices = @transform_1, window_bounds = array<i64: 1, 16, 17>}, {transform_indices = @transform_2, window_bounds = array<i64: 8, 512>}, {transform_indices = @transform_3, window_bounds = array<i64: 8, 512>}, {transform_indices = @transform_4, window_bounds = array<i64: 8, 1>}, {transform_indices = @transform_5, window_bounds = array<i64: 1>}, {transform_indices = @transform_6, window_bounds = array<i64: 1, 8, 2>}, {transform_indices = @transform_7, window_bounds = array<i64: 1, 8, 2>}]} {
    %c0 = arith.constant 0 : index
    %c0_0 = arith.constant 0 : index
    %c0_1 = arith.constant 0 : index
    %0 = vector.load %arg3[%c0, %c0_0, %c0_1] : memref<1x16x17xf32, #tpu.memory_space<vmem>>, vector<1x16x2xf32>
    %1 = vector.shape_cast %0 : vector<1x16x2xf32> to vector<16x2xf32>
    %c0_2 = arith.constant 0 : index
    %c0_3 = arith.constant 0 : index
    %2 = vector.load %arg11[%c0_2, %c0_3] : memref<512x2xf32, #tpu.memory_space<vmem>>, vector<16x2xf32>
    tpu.vector_store %arg11[%c0_2, %c0_3], %1 {strides = array<i32>} : memref<512x2xf32, #tpu.memory_space<vmem>>, vector<16x2xf32>,
    %c0_4 = arith.constant 0 : index
    %c0_5 = arith.constant 0 : index
    %c0_6 = arith.constant 0 : index
    %3 = vector.load %arg4[%c0_4, %c0_5, %c0_6] : memref<1x16x17xf32, #tpu.memory_space<vmem>>, vector<1x16x2xf32>
    %4 = vector.shape_cast %3 : vector<1x16x2xf32> to vector<16x2xf32>
    %c16 = arith.constant 16 : index
    %c0_7 = arith.constant 0 : index
    %5 = vector.load %arg11[%c16, %c0_7] : memref<512x2xf32, #tpu.memory_space<vmem>>, vector<16x2xf32>
    tpu.vector_store %arg11[%c16, %c0_7], %4 {strides = array<i32>} : memref<512x2xf32, #tpu.memory_space<vmem>>, vector<16x2xf32>,
    %c0_8 = arith.constant 0 : index
    %c0_9 = arith.constant 0 : index
    %c1 = arith.constant 1 : index
    %6 = vector.load %arg3[%c0_8, %c0_9, %c1] : memref<1x16x17xf32, #tpu.memory_space<vmem>>, vector<1x16x2xf32>
    %7 = vector.shape_cast %6 : vector<1x16x2xf32> to vector<16x2xf32>
    %c32 = arith.constant 32 : index
    %c0_10 = arith.constant 0 : index
    %8 = vector.load %arg11[%c32, %c0_10] : memref<512x2xf32, #tpu.memory_space<vmem>>, vector<16x2xf32>
    tpu.vector_store %arg11[%c32, %c0_10], %7 {strides = array<i32>} : memref<512x2xf32, #tpu.memory_space<vmem>>, vector<16x2xf32>,
    %c0_11 = arith.constant 0 : index
    %c0_12 = arith.constant 0 : index
    %c1_13 = arith.constant 1 : index
    %9 = vector.load %arg4[%c0_11, %c0_12, %c1_13] : memref<1x16x17xf32, #tpu.memory_space<vmem>>, vector<1x16x2xf32>
    %10 = vector.shape_cast %9 : vector<1x16x2xf32> to vector<16x2xf32>
    %c48 = arith.constant 48 : index
    %c0_14 = arith.constant 0 : index
    %11 = vector.load %arg11[%c48, %c0_14] : memref<512x2xf32, #tpu.memory_space<vmem>>, vector<16x2xf32>
    tpu.vector_store %arg11[%c48, %c0_14], %10 {strides = array<i32>} : memref<512x2xf32, #tpu.memory_space<vmem>>, vector<16x2xf32>,
    %c0_15 = arith.constant 0 : index
    %c0_16 = arith.constant 0 : index
    %c2 = arith.constant 2 : index
    %12 = vector.load %arg3[%c0_15, %c0_16, %c2] : memref<1x16x17xf32, #tpu.memory_space<vmem>>, vector<1x16x2xf32>
    %13 = vector.shape_cast %12 : vector<1x16x2xf32> to vector<16x2xf32>
    %c64 = arith.constant 64 : index
    %c0_17 = arith.constant 0 : index
    %14 = vector.load %arg11[%c64, %c0_17] : memref<512x2xf32, #tpu.memory_space<vmem>>, vector<16x2xf32>
    tpu.vector_store %arg11[%c64, %c0_17], %13 {strides = array<i32>} : memref<512x2xf32, #tpu.memory_space<vmem>>, vector<16x2xf32>,
    %c0_18 = arith.constant 0 : index
    %c0_19 = arith.constant 0 : index
    %c2_20 = arith.constant 2 : index
    %15 = vector.load %arg4[%c0_18, %c0_19, %c2_20] : memref<1x16x17xf32, #tpu.memory_space<vmem>>, vector<1x16x2xf32>
    %16 = vector.shape_cast %15 : vector<1x16x2xf32> to vector<16x2xf32>
    %c80 = arith.constant 80 : index
    %c0_21 = arith.constant 0 : index
    %17 = vector.load %arg11[%c80, %c0_21] : memref<512x2xf32, #tpu.memory_space<vmem>>, vector<16x2xf32>
    tpu.vector_store %arg11[%c80, %c0_21], %16 {strides = array<i32>} : memref<512x2xf32, #tpu.memory_space<vmem>>, vector<16x2xf32>,
    %c0_22 = arith.constant 0 : index
    %c0_23 = arith.constant 0 : index
    %c3 = arith.constant 3 : index
    %18 = vector.load %arg3[%c0_22, %c0_23, %c3] : memref<1x16x17xf32, #tpu.memory_space<vmem>>, vector<1x16x2xf32>
    %19 = vector.shape_cast %18 : vector<1x16x2xf32> to vector<16x2xf32>
    %c96 = arith.constant 96 : index
    %c0_24 = arith.constant 0 : index
    %20 = vector.load %arg11[%c96, %c0_24] : memref<512x2xf32, #tpu.memory_space<vmem>>, vector<16x2xf32>
    tpu.vector_store %arg11[%c96, %c0_24], %19 {strides = array<i32>} : memref<512x2xf32, #tpu.memory_space<vmem>>, vector<16x2xf32>,
    %c0_25 = arith.constant 0 : index
    %c0_26 = arith.constant 0 : index
    %c3_27 = arith.constant 3 : index
    %21 = vector.load %arg4[%c0_25, %c0_26, %c3_27] : memref<1x16x17xf32, #tpu.memory_space<vmem>>, vector<1x16x2xf32>
    %22 = vector.shape_cast %21 : vector<1x16x2xf32> to vector<16x2xf32>
    %c112 = arith.constant 112 : index
    %c0_28 = arith.constant 0 : index
    %23 = vector.load %arg11[%c112, %c0_28] : memref<512x2xf32, #tpu.memory_space<vmem>>, vector<16x2xf32>
    tpu.vector_store %arg11[%c112, %c0_28], %22 {strides = array<i32>} : memref<512x2xf32, #tpu.memory_space<vmem>>, vector<16x2xf32>,
    %c0_29 = arith.constant 0 : index
    %c0_30 = arith.constant 0 : index
    %c4 = arith.constant 4 : index
    %24 = vector.load %arg3[%c0_29, %c0_30, %c4] : memref<1x16x17xf32, #tpu.memory_space<vmem>>, vector<1x16x2xf32>
    %25 = vector.shape_cast %24 : vector<1x16x2xf32> to vector<16x2xf32>
    %c128 = arith.constant 128 : index
    %c0_31 = arith.constant 0 : index
    %26 = vector.load %arg11[%c128, %c0_31] : memref<512x2xf32, #tpu.memory_space<vmem>>, vector<16x2xf32>
    tpu.vector_store %arg11[%c128, %c0_31], %25 {strides = array<i32>} : memref<512x2xf32, #tpu.memory_space<vmem>>, vector<16x2xf32>,
    %c0_32 = arith.constant 0 : index
    %c0_33 = arith.constant 0 : index
    %c4_34 = arith.constant 4 : index
    %27 = vector.load %arg4[%c0_32, %c0_33, %c4_34] : memref<1x16x17xf32, #tpu.memory_space<vmem>>, vector<1x16x2xf32>
    %28 = vector.shape_cast %27 : vector<1x16x2xf32> to vector<16x2xf32>
    %c144 = arith.constant 144 : index
    %c0_35 = arith.constant 0 : index
    %29 = vector.load %arg11[%c144, %c0_35] : memref<512x2xf32, #tpu.memory_space<vmem>>, vector<16x2xf32>
    tpu.vector_store %arg11[%c144, %c0_35], %28 {strides = array<i32>} : memref<512x2xf32, #tpu.memory_space<vmem>>, vector<16x2xf32>,
    %c0_36 = arith.constant 0 : index
    %c0_37 = arith.constant 0 : index
    %c5 = arith.constant 5 : index
    %30 = vector.load %arg3[%c0_36, %c0_37, %c5] : memref<1x16x17xf32, #tpu.memory_space<vmem>>, vector<1x16x2xf32>
    %31 = vector.shape_cast %30 : vector<1x16x2xf32> to vector<16x2xf32>
    %c160 = arith.constant 160 : index
    %c0_38 = arith.constant 0 : index
    %32 = vector.load %arg11[%c160, %c0_38] : memref<512x2xf32, #tpu.memory_space<vmem>>, vector<16x2xf32>
    tpu.vector_store %arg11[%c160, %c0_38], %31 {strides = array<i32>} : memref<512x2xf32, #tpu.memory_space<vmem>>, vector<16x2xf32>,
    %c0_39 = arith.constant 0 : index
    %c0_40 = arith.constant 0 : index
    %c5_41 = arith.constant 5 : index
    %33 = vector.load %arg4[%c0_39, %c0_40, %c5_41] : memref<1x16x17xf32, #tpu.memory_space<vmem>>, vector<1x16x2xf32>
    %34 = vector.shape_cast %33 : vector<1x16x2xf32> to vector<16x2xf32>
    %c176 = arith.constant 176 : index
    %c0_42 = arith.constant 0 : index
    %35 = vector.load %arg11[%c176, %c0_42] : memref<512x2xf32, #tpu.memory_space<vmem>>, vector<16x2xf32>
    tpu.vector_store %arg11[%c176, %c0_42], %34 {strides = array<i32>} : memref<512x2xf32, #tpu.memory_space<vmem>>, vector<16x2xf32>,
    %c0_43 = arith.constant 0 : index
    %c0_44 = arith.constant 0 : index
    %c6 = arith.constant 6 : index
    %36 = vector.load %arg3[%c0_43, %c0_44, %c6] : memref<1x16x17xf32, #tpu.memory_space<vmem>>, vector<1x16x2xf32>
    %37 = vector.shape_cast %36 : vector<1x16x2xf32> to vector<16x2xf32>
    %c192 = arith.constant 192 : index
    %c0_45 = arith.constant 0 : index
    %38 = vector.load %arg11[%c192, %c0_45] : memref<512x2xf32, #tpu.memory_space<vmem>>, vector<16x2xf32>
    tpu.vector_store %arg11[%c192, %c0_45], %37 {strides = array<i32>} : memref<512x2xf32, #tpu.memory_space<vmem>>, vector<16x2xf32>,
    %c0_46 = arith.constant 0 : index
    %c0_47 = arith.constant 0 : index
    %c6_48 = arith.constant 6 : index
    %39 = vector.load %arg4[%c0_46, %c0_47, %c6_48] : memref<1x16x17xf32, #tpu.memory_space<vmem>>, vector<1x16x2xf32>
    %40 = vector.shape_cast %39 : vector<1x16x2xf32> to vector<16x2xf32>
    %c208 = arith.constant 208 : index
    %c0_49 = arith.constant 0 : index
    %41 = vector.load %arg11[%c208, %c0_49] : memref<512x2xf32, #tpu.memory_space<vmem>>, vector<16x2xf32>
    tpu.vector_store %arg11[%c208, %c0_49], %40 {strides = array<i32>} : memref<512x2xf32, #tpu.memory_space<vmem>>, vector<16x2xf32>,
    %c0_50 = arith.constant 0 : index
    %c0_51 = arith.constant 0 : index
    %c7 = arith.constant 7 : index
    %42 = vector.load %arg3[%c0_50, %c0_51, %c7] : memref<1x16x17xf32, #tpu.memory_space<vmem>>, vector<1x16x2xf32>
    %43 = vector.shape_cast %42 : vector<1x16x2xf32> to vector<16x2xf32>
    %c224 = arith.constant 224 : index
    %c0_52 = arith.constant 0 : index
    %44 = vector.load %arg11[%c224, %c0_52] : memref<512x2xf32, #tpu.memory_space<vmem>>, vector<16x2xf32>
    tpu.vector_store %arg11[%c224, %c0_52], %43 {strides = array<i32>} : memref<512x2xf32, #tpu.memory_space<vmem>>, vector<16x2xf32>,
    %c0_53 = arith.constant 0 : index
    %c0_54 = arith.constant 0 : index
    %c7_55 = arith.constant 7 : index
    %45 = vector.load %arg4[%c0_53, %c0_54, %c7_55] : memref<1x16x17xf32, #tpu.memory_space<vmem>>, vector<1x16x2xf32>
    %46 = vector.shape_cast %45 : vector<1x16x2xf32> to vector<16x2xf32>
    %c240 = arith.constant 240 : index
    %c0_56 = arith.constant 0 : index
    %47 = vector.load %arg11[%c240, %c0_56] : memref<512x2xf32, #tpu.memory_space<vmem>>, vector<16x2xf32>
    tpu.vector_store %arg11[%c240, %c0_56], %46 {strides = array<i32>} : memref<512x2xf32, #tpu.memory_space<vmem>>, vector<16x2xf32>,
    %c0_57 = arith.constant 0 : index
    %c0_58 = arith.constant 0 : index
    %c8 = arith.constant 8 : index
    %48 = vector.load %arg3[%c0_57, %c0_58, %c8] : memref<1x16x17xf32, #tpu.memory_space<vmem>>, vector<1x16x2xf32>
    %49 = vector.shape_cast %48 : vector<1x16x2xf32> to vector<16x2xf32>
    %c256 = arith.constant 256 : index
    %c0_59 = arith.constant 0 : index
    %50 = vector.load %arg11[%c256, %c0_59] : memref<512x2xf32, #tpu.memory_space<vmem>>, vector<16x2xf32>
    tpu.vector_store %arg11[%c256, %c0_59], %49 {strides = array<i32>} : memref<512x2xf32, #tpu.memory_space<vmem>>, vector<16x2xf32>,
    %c0_60 = arith.constant 0 : index
    %c0_61 = arith.constant 0 : index
    %c8_62 = arith.constant 8 : index
    %51 = vector.load %arg4[%c0_60, %c0_61, %c8_62] : memref<1x16x17xf32, #tpu.memory_space<vmem>>, vector<1x16x2xf32>
    %52 = vector.shape_cast %51 : vector<1x16x2xf32> to vector<16x2xf32>
    %c272 = arith.constant 272 : index
    %c0_63 = arith.constant 0 : index
    %53 = vector.load %arg11[%c272, %c0_63] : memref<512x2xf32, #tpu.memory_space<vmem>>, vector<16x2xf32>
    tpu.vector_store %arg11[%c272, %c0_63], %52 {strides = array<i32>} : memref<512x2xf32, #tpu.memory_space<vmem>>, vector<16x2xf32>,
    %c0_64 = arith.constant 0 : index
    %c0_65 = arith.constant 0 : index
    %c9 = arith.constant 9 : index
    %54 = vector.load %arg3[%c0_64, %c0_65, %c9] : memref<1x16x17xf32, #tpu.memory_space<vmem>>, vector<1x16x2xf32>
    %55 = vector.shape_cast %54 : vector<1x16x2xf32> to vector<16x2xf32>
    %c288 = arith.constant 288 : index
    %c0_66 = arith.constant 0 : index
    %56 = vector.load %arg11[%c288, %c0_66] : memref<512x2xf32, #tpu.memory_space<vmem>>, vector<16x2xf32>
    tpu.vector_store %arg11[%c288, %c0_66], %55 {strides = array<i32>} : memref<512x2xf32, #tpu.memory_space<vmem>>, vector<16x2xf32>,
    %c0_67 = arith.constant 0 : index
    %c0_68 = arith.constant 0 : index
    %c9_69 = arith.constant 9 : index
    %57 = vector.load %arg4[%c0_67, %c0_68, %c9_69] : memref<1x16x17xf32, #tpu.memory_space<vmem>>, vector<1x16x2xf32>
    %58 = vector.shape_cast %57 : vector<1x16x2xf32> to vector<16x2xf32>
    %c304 = arith.constant 304 : index
    %c0_70 = arith.constant 0 : index
    %59 = vector.load %arg11[%c304, %c0_70] : memref<512x2xf32, #tpu.memory_space<vmem>>, vector<16x2xf32>
    tpu.vector_store %arg11[%c304, %c0_70], %58 {strides = array<i32>} : memref<512x2xf32, #tpu.memory_space<vmem>>, vector<16x2xf32>,
    %c0_71 = arith.constant 0 : index
    %c0_72 = arith.constant 0 : index
    %c10 = arith.constant 10 : index
    %60 = vector.load %arg3[%c0_71, %c0_72, %c10] : memref<1x16x17xf32, #tpu.memory_space<vmem>>, vector<1x16x2xf32>
    %61 = vector.shape_cast %60 : vector<1x16x2xf32> to vector<16x2xf32>
    %c320 = arith.constant 320 : index
    %c0_73 = arith.constant 0 : index
    %62 = vector.load %arg11[%c320, %c0_73] : memref<512x2xf32, #tpu.memory_space<vmem>>, vector<16x2xf32>
    tpu.vector_store %arg11[%c320, %c0_73], %61 {strides = array<i32>} : memref<512x2xf32, #tpu.memory_space<vmem>>, vector<16x2xf32>,
    %c0_74 = arith.constant 0 : index
    %c0_75 = arith.constant 0 : index
    %c10_76 = arith.constant 10 : index
    %63 = vector.load %arg4[%c0_74, %c0_75, %c10_76] : memref<1x16x17xf32, #tpu.memory_space<vmem>>, vector<1x16x2xf32>
    %64 = vector.shape_cast %63 : vector<1x16x2xf32> to vector<16x2xf32>
    %c336 = arith.constant 336 : index
    %c0_77 = arith.constant 0 : index
    %65 = vector.load %arg11[%c336, %c0_77] : memref<512x2xf32, #tpu.memory_space<vmem>>, vector<16x2xf32>
    tpu.vector_store %arg11[%c336, %c0_77], %64 {strides = array<i32>} : memref<512x2xf32, #tpu.memory_space<vmem>>, vector<16x2xf32>,
    %c0_78 = arith.constant 0 : index
    %c0_79 = arith.constant 0 : index
    %c11 = arith.constant 11 : index
    %66 = vector.load %arg3[%c0_78, %c0_79, %c11] : memref<1x16x17xf32, #tpu.memory_space<vmem>>, vector<1x16x2xf32>
    %67 = vector.shape_cast %66 : vector<1x16x2xf32> to vector<16x2xf32>
    %c352 = arith.constant 352 : index
    %c0_80 = arith.constant 0 : index
    %68 = vector.load %arg11[%c352, %c0_80] : memref<512x2xf32, #tpu.memory_space<vmem>>, vector<16x2xf32>
    tpu.vector_store %arg11[%c352, %c0_80], %67 {strides = array<i32>} : memref<512x2xf32, #tpu.memory_space<vmem>>, vector<16x2xf32>,
    %c0_81 = arith.constant 0 : index
    %c0_82 = arith.constant 0 : index
    %c11_83 = arith.constant 11 : index
    %69 = vector.load %arg4[%c0_81, %c0_82, %c11_83] : memref<1x16x17xf32, #tpu.memory_space<vmem>>, vector<1x16x2xf32>
    %70 = vector.shape_cast %69 : vector<1x16x2xf32> to vector<16x2xf32>
    %c368 = arith.constant 368 : index
    %c0_84 = arith.constant 0 : index
    %71 = vector.load %arg11[%c368, %c0_84] : memref<512x2xf32, #tpu.memory_space<vmem>>, vector<16x2xf32>
    tpu.vector_store %arg11[%c368, %c0_84], %70 {strides = array<i32>} : memref<512x2xf32, #tpu.memory_space<vmem>>, vector<16x2xf32>,
    %c0_85 = arith.constant 0 : index
    %c0_86 = arith.constant 0 : index
    %c12 = arith.constant 12 : index
    %72 = vector.load %arg3[%c0_85, %c0_86, %c12] : memref<1x16x17xf32, #tpu.memory_space<vmem>>, vector<1x16x2xf32>
    %73 = vector.shape_cast %72 : vector<1x16x2xf32> to vector<16x2xf32>
    %c384 = arith.constant 384 : index
    %c0_87 = arith.constant 0 : index
    %74 = vector.load %arg11[%c384, %c0_87] : memref<512x2xf32, #tpu.memory_space<vmem>>, vector<16x2xf32>
    tpu.vector_store %arg11[%c384, %c0_87], %73 {strides = array<i32>} : memref<512x2xf32, #tpu.memory_space<vmem>>, vector<16x2xf32>,
    %c0_88 = arith.constant 0 : index
    %c0_89 = arith.constant 0 : index
    %c12_90 = arith.constant 12 : index
    %75 = vector.load %arg4[%c0_88, %c0_89, %c12_90] : memref<1x16x17xf32, #tpu.memory_space<vmem>>, vector<1x16x2xf32>
    %76 = vector.shape_cast %75 : vector<1x16x2xf32> to vector<16x2xf32>
    %c400 = arith.constant 400 : index
    %c0_91 = arith.constant 0 : index
    %77 = vector.load %arg11[%c400, %c0_91] : memref<512x2xf32, #tpu.memory_space<vmem>>, vector<16x2xf32>
    tpu.vector_store %arg11[%c400, %c0_91], %76 {strides = array<i32>} : memref<512x2xf32, #tpu.memory_space<vmem>>, vector<16x2xf32>,
    %c0_92 = arith.constant 0 : index
    %c0_93 = arith.constant 0 : index
    %c13 = arith.constant 13 : index
    %78 = vector.load %arg3[%c0_92, %c0_93, %c13] : memref<1x16x17xf32, #tpu.memory_space<vmem>>, vector<1x16x2xf32>
    %79 = vector.shape_cast %78 : vector<1x16x2xf32> to vector<16x2xf32>
    %c416 = arith.constant 416 : index
    %c0_94 = arith.constant 0 : index
    %80 = vector.load %arg11[%c416, %c0_94] : memref<512x2xf32, #tpu.memory_space<vmem>>, vector<16x2xf32>
    tpu.vector_store %arg11[%c416, %c0_94], %79 {strides = array<i32>} : memref<512x2xf32, #tpu.memory_space<vmem>>, vector<16x2xf32>,
    %c0_95 = arith.constant 0 : index
    %c0_96 = arith.constant 0 : index
    %c13_97 = arith.constant 13 : index
    %81 = vector.load %arg4[%c0_95, %c0_96, %c13_97] : memref<1x16x17xf32, #tpu.memory_space<vmem>>, vector<1x16x2xf32>
    %82 = vector.shape_cast %81 : vector<1x16x2xf32> to vector<16x2xf32>
    %c432 = arith.constant 432 : index
    %c0_98 = arith.constant 0 : index
    %83 = vector.load %arg11[%c432, %c0_98] : memref<512x2xf32, #tpu.memory_space<vmem>>, vector<16x2xf32>
    tpu.vector_store %arg11[%c432, %c0_98], %82 {strides = array<i32>} : memref<512x2xf32, #tpu.memory_space<vmem>>, vector<16x2xf32>,
    %c0_99 = arith.constant 0 : index
    %c0_100 = arith.constant 0 : index
    %c14 = arith.constant 14 : index
    %84 = vector.load %arg3[%c0_99, %c0_100, %c14] : memref<1x16x17xf32, #tpu.memory_space<vmem>>, vector<1x16x2xf32>
    %85 = vector.shape_cast %84 : vector<1x16x2xf32> to vector<16x2xf32>
    %c448 = arith.constant 448 : index
    %c0_101 = arith.constant 0 : index
    %86 = vector.load %arg11[%c448, %c0_101] : memref<512x2xf32, #tpu.memory_space<vmem>>, vector<16x2xf32>
    tpu.vector_store %arg11[%c448, %c0_101], %85 {strides = array<i32>} : memref<512x2xf32, #tpu.memory_space<vmem>>, vector<16x2xf32>,
    %c0_102 = arith.constant 0 : index
    %c0_103 = arith.constant 0 : index
    %c14_104 = arith.constant 14 : index
    %87 = vector.load %arg4[%c0_102, %c0_103, %c14_104] : memref<1x16x17xf32, #tpu.memory_space<vmem>>, vector<1x16x2xf32>
    %88 = vector.shape_cast %87 : vector<1x16x2xf32> to vector<16x2xf32>
    %c464 = arith.constant 464 : index
    %c0_105 = arith.constant 0 : index
    %89 = vector.load %arg11[%c464, %c0_105] : memref<512x2xf32, #tpu.memory_space<vmem>>, vector<16x2xf32>
    tpu.vector_store %arg11[%c464, %c0_105], %88 {strides = array<i32>} : memref<512x2xf32, #tpu.memory_space<vmem>>, vector<16x2xf32>,
    %c0_106 = arith.constant 0 : index
    %c0_107 = arith.constant 0 : index
    %c15 = arith.constant 15 : index
    %90 = vector.load %arg3[%c0_106, %c0_107, %c15] : memref<1x16x17xf32, #tpu.memory_space<vmem>>, vector<1x16x2xf32>
    %91 = vector.shape_cast %90 : vector<1x16x2xf32> to vector<16x2xf32>
    %c480 = arith.constant 480 : index
    %c0_108 = arith.constant 0 : index
    %92 = vector.load %arg11[%c480, %c0_108] : memref<512x2xf32, #tpu.memory_space<vmem>>, vector<16x2xf32>
    tpu.vector_store %arg11[%c480, %c0_108], %91 {strides = array<i32>} : memref<512x2xf32, #tpu.memory_space<vmem>>, vector<16x2xf32>,
    %c0_109 = arith.constant 0 : index
    %c0_110 = arith.constant 0 : index
    %c15_111 = arith.constant 15 : index
    %93 = vector.load %arg4[%c0_109, %c0_110, %c15_111] : memref<1x16x17xf32, #tpu.memory_space<vmem>>, vector<1x16x2xf32>
    %94 = vector.shape_cast %93 : vector<1x16x2xf32> to vector<16x2xf32>
    %c496 = arith.constant 496 : index
    %c0_112 = arith.constant 0 : index
    %95 = vector.load %arg11[%c496, %c0_112] : memref<512x2xf32, #tpu.memory_space<vmem>>, vector<16x2xf32>
    tpu.vector_store %arg11[%c496, %c0_112], %94 {strides = array<i32>} : memref<512x2xf32, #tpu.memory_space<vmem>>, vector<16x2xf32>,
    %c0_113 = arith.constant 0 : index
    %c0_114 = arith.constant 0 : index
    %96 = vector.load %arg5[%c0_113, %c0_114] : memref<8x512xf32, #tpu.memory_space<vmem>>, vector<8x512xf32>
    %c0_115 = arith.constant 0 : index
    %c0_116 = arith.constant 0 : index
    %97 = vector.load %arg11[%c0_115, %c0_116] : memref<512x2xf32, #tpu.memory_space<vmem>>, vector<512x2xf32>
    %cst = arith.constant dense<0.000000e+00> : vector<8x2xf32>
    %98 = tpu.matmul %96, %97, %cst {dimension_numbers = #tpu.dot_dimension_numbers<[1], [0], [0], [1], [0, 0, 1, 1], [], []>} : vector<8x512xf32>, vector<512x2xf32>, vector<8x2xf32> -> vector<8x2xf32>
    %c0_117 = arith.constant 0 : index
    %c0_118 = arith.constant 0 : index
    %99 = vector.load %arg6[%c0_117, %c0_118] : memref<8x512xf32, #tpu.memory_space<vmem>>, vector<8x512xf32>
    %c0_119 = arith.constant 0 : index
    %c0_120 = arith.constant 0 : index
    %100 = vector.load %arg11[%c0_119, %c0_120] : memref<512x2xf32, #tpu.memory_space<vmem>>, vector<512x2xf32>
    %cst_121 = arith.constant dense<0.000000e+00> : vector<8x2xf32>
    %101 = tpu.matmul %99, %100, %cst_121 {dimension_numbers = #tpu.dot_dimension_numbers<[1], [0], [0], [1], [0, 0, 1, 1], [], []>} : vector<8x512xf32>, vector<512x2xf32>, vector<8x2xf32> -> vector<8x2xf32>
    %c0_122 = arith.constant 0 : index
    %c0_123 = arith.constant 0 : index
    %102 = vector.load %arg7[%c0_122, %c0_123] : memref<8x1xf32, #tpu.memory_space<vmem>>, vector<8x1xf32>
    %c0_124 = arith.constant 0 : index
    %103 = memref.load %arg8[%c0_124] : memref<1xf32, #tpu.memory_space<smem>>
    %104 = vector.broadcast %102 : vector<8x1xf32> to vector<8x2xf32>
    %105 = arith.addf %98, %104 : vector<8x2xf32>
    %106 = vector.broadcast %102 : vector<8x1xf32> to vector<8x2xf32>
    %107 = arith.addf %101, %106 : vector<8x2xf32>
    %cst_125 = arith.constant 0.000000e+00 : f32
    %108 = vector.broadcast %cst_125 : f32 to vector<8x2xf32>
    %109 = arith.cmpf ogt, %105, %108 : vector<8x2xf32>
    %110 = vector.broadcast %103 : f32 to vector<8x2xf32>
    %111 = arith.mulf %110, %105 : vector<8x2xf32>
    %112 = arith.select %109, %105, %111 : vector<8x2xi1>, vector<8x2xf32>
    %c0_126 = arith.constant 0 : index
    %c0_127 = arith.constant 0 : index
    %c0_128 = arith.constant 0 : index
    %113 = vector.load %arg9[%c0_126, %c0_127, %c0_128] : memref<1x8x2xf32, #tpu.memory_space<vmem>>, vector<1x8x2xf32>
    %114 = vector.shape_cast %113 : vector<1x8x2xf32> to vector<8x2xf32>
    %115 = vector.shape_cast %112 : vector<8x2xf32> to vector<1x8x2xf32>
    tpu.vector_store %arg9[%c0_126, %c0_127, %c0_128], %115 {strides = array<i32>} : memref<1x8x2xf32, #tpu.memory_space<vmem>>, vector<1x8x2xf32>,
    %cst_129 = arith.constant 0.000000e+00 : f32
    %116 = vector.broadcast %cst_129 : f32 to vector<8x2xf32>
    %117 = arith.cmpf ogt, %107, %116 : vector<8x2xf32>
    %118 = vector.broadcast %103 : f32 to vector<8x2xf32>
    %119 = arith.mulf %118, %107 : vector<8x2xf32>
    %120 = arith.select %117, %107, %119 : vector<8x2xi1>, vector<8x2xf32>
    %c0_130 = arith.constant 0 : index
    %c0_131 = arith.constant 0 : index
    %c0_132 = arith.constant 0 : index
    %121 = vector.load %arg10[%c0_130, %c0_131, %c0_132] : memref<1x8x2xf32, #tpu.memory_space<vmem>>, vector<1x8x2xf32>
    %122 = vector.shape_cast %121 : vector<1x8x2xf32> to vector<8x2xf32>
    %123 = vector.shape_cast %120 : vector<8x2xf32> to vector<1x8x2xf32>
    tpu.vector_store %arg10[%c0_130, %c0_131, %c0_132], %123 {strides = array<i32>} : memref<1x8x2xf32, #tpu.memory_space<vmem>>, vector<1x8x2xf32>,
    return
  }
  func.func @transform_0(%arg0: i32, %arg1: i32, %arg2: i32) -> (i32, i32, i32) {
    %c0_i32 = arith.constant 0 : i32
    %c0_i32_0 = arith.constant 0 : i32
    %c0_i32_1 = arith.constant 0 : i32
    return %arg1, %c0_i32, %c0_i32_0 : i32, i32, i32
  }
  func.func @transform_1(%arg0: i32, %arg1: i32, %arg2: i32) -> (i32, i32, i32) {
    %c0_i32 = arith.constant 0 : i32
    %c0_i32_0 = arith.constant 0 : i32
    %c0_i32_1 = arith.constant 0 : i32
    return %arg1, %c0_i32, %c0_i32_0 : i32, i32, i32
  }
  func.func @transform_2(%arg0: i32, %arg1: i32, %arg2: i32) -> (i32, i32) {
    %c0_i32 = arith.constant 0 : i32
    %c0_i32_0 = arith.constant 0 : i32
    return %arg0, %c0_i32 : i32, i32
  }
  func.func @transform_3(%arg0: i32, %arg1: i32, %arg2: i32) -> (i32, i32) {
    %c0_i32 = arith.constant 0 : i32
    %c0_i32_0 = arith.constant 0 : i32
    return %arg0, %c0_i32 : i32, i32
  }
  func.func @transform_4(%arg0: i32, %arg1: i32, %arg2: i32) -> (i32, i32) {
    %c0_i32 = arith.constant 0 : i32
    %c0_i32_0 = arith.constant 0 : i32
    return %arg0, %c0_i32 : i32, i32
  }
  func.func @transform_5(%arg0: i32, %arg1: i32, %arg2: i32) -> i32 {
    %c0_i32 = arith.constant 0 : i32
    %c0_i32_0 = arith.constant 0 : i32
    return %c0_i32 : i32
  }
  func.func @transform_6(%arg0: i32, %arg1: i32, %arg2: i32) -> (i32, i32, i32) {
    %c0_i32 = arith.constant 0 : i32
    return %arg1, %arg0, %arg2 : i32, i32, i32
  }
  func.func @transform_7(%arg0: i32, %arg1: i32, %arg2: i32) -> (i32, i32, i32) {
    %c0_i32 = arith.constant 0 : i32
    return %arg1, %arg0, %arg2 : i32, i32, i32
  }
}

module attributes {stable_mosaic.version = 11 : i64} {
  func.func @_dec_kernel_stacked(%arg0: i32, %arg1: i32, %arg2: i32, %arg3: memref<1x8x19xf32, #tpu.memory_space<vmem>>, %arg4: memref<1x8x19xf32, #tpu.memory_space<vmem>>, %arg5: memref<4x256xf32, #tpu.memory_space<vmem>>, %arg6: memref<4x256xf32, #tpu.memory_space<vmem>>, %arg7: memref<4x1xf32, #tpu.memory_space<vmem>>, %arg8: memref<1xf32, #tpu.memory_space<smem>>, %arg9: memref<1x4x4xf32, #tpu.memory_space<vmem>>, %arg10: memref<1x4x4xf32, #tpu.memory_space<vmem>>, %arg11: memref<256x4xf32, #tpu.memory_space<vmem>>) attributes {dimension_semantics = [#tpu.dimension_semantics<parallel>, #tpu.dimension_semantics<parallel>, #tpu.dimension_semantics<parallel>], iteration_bounds = array<i64: 1, 2, 1>, scalar_prefetch = 0 : i64, scratch_operands = 1 : i64, tpu.core_type = #tpu.core_type<tc>, window_params = [{transform_indices = @transform_0, window_bounds = array<i64: 1, 8, 19>}, {transform_indices = @transform_1, window_bounds = array<i64: 1, 8, 19>}, {transform_indices = @transform_2, window_bounds = array<i64: 4, 256>}, {transform_indices = @transform_3, window_bounds = array<i64: 4, 256>}, {transform_indices = @transform_4, window_bounds = array<i64: 4, 1>}, {transform_indices = @transform_5, window_bounds = array<i64: 1>}, {transform_indices = @transform_6, window_bounds = array<i64: 1, 4, 4>}, {transform_indices = @transform_7, window_bounds = array<i64: 1, 4, 4>}]} {
    %c0 = arith.constant 0 : index
    %c0_0 = arith.constant 0 : index
    %c0_1 = arith.constant 0 : index
    %0 = vector.load %arg3[%c0, %c0_0, %c0_1] : memref<1x8x19xf32, #tpu.memory_space<vmem>>, vector<1x8x4xf32>
    %1 = vector.shape_cast %0 : vector<1x8x4xf32> to vector<8x4xf32>
    %c0_2 = arith.constant 0 : index
    %c0_3 = arith.constant 0 : index
    %2 = vector.load %arg11[%c0_2, %c0_3] : memref<256x4xf32, #tpu.memory_space<vmem>>, vector<8x4xf32>
    tpu.vector_store %arg11[%c0_2, %c0_3], %1 {strides = array<i32>} : memref<256x4xf32, #tpu.memory_space<vmem>>, vector<8x4xf32>,
    %c0_4 = arith.constant 0 : index
    %c0_5 = arith.constant 0 : index
    %c0_6 = arith.constant 0 : index
    %3 = vector.load %arg4[%c0_4, %c0_5, %c0_6] : memref<1x8x19xf32, #tpu.memory_space<vmem>>, vector<1x8x4xf32>
    %4 = vector.shape_cast %3 : vector<1x8x4xf32> to vector<8x4xf32>
    %c8 = arith.constant 8 : index
    %c0_7 = arith.constant 0 : index
    %5 = vector.load %arg11[%c8, %c0_7] : memref<256x4xf32, #tpu.memory_space<vmem>>, vector<8x4xf32>
    tpu.vector_store %arg11[%c8, %c0_7], %4 {strides = array<i32>} : memref<256x4xf32, #tpu.memory_space<vmem>>, vector<8x4xf32>,
    %c0_8 = arith.constant 0 : index
    %c0_9 = arith.constant 0 : index
    %c1 = arith.constant 1 : index
    %6 = vector.load %arg3[%c0_8, %c0_9, %c1] : memref<1x8x19xf32, #tpu.memory_space<vmem>>, vector<1x8x4xf32>
    %7 = vector.shape_cast %6 : vector<1x8x4xf32> to vector<8x4xf32>
    %c16 = arith.constant 16 : index
    %c0_10 = arith.constant 0 : index
    %8 = vector.load %arg11[%c16, %c0_10] : memref<256x4xf32, #tpu.memory_space<vmem>>, vector<8x4xf32>
    tpu.vector_store %arg11[%c16, %c0_10], %7 {strides = array<i32>} : memref<256x4xf32, #tpu.memory_space<vmem>>, vector<8x4xf32>,
    %c0_11 = arith.constant 0 : index
    %c0_12 = arith.constant 0 : index
    %c1_13 = arith.constant 1 : index
    %9 = vector.load %arg4[%c0_11, %c0_12, %c1_13] : memref<1x8x19xf32, #tpu.memory_space<vmem>>, vector<1x8x4xf32>
    %10 = vector.shape_cast %9 : vector<1x8x4xf32> to vector<8x4xf32>
    %c24 = arith.constant 24 : index
    %c0_14 = arith.constant 0 : index
    %11 = vector.load %arg11[%c24, %c0_14] : memref<256x4xf32, #tpu.memory_space<vmem>>, vector<8x4xf32>
    tpu.vector_store %arg11[%c24, %c0_14], %10 {strides = array<i32>} : memref<256x4xf32, #tpu.memory_space<vmem>>, vector<8x4xf32>,
    %c0_15 = arith.constant 0 : index
    %c0_16 = arith.constant 0 : index
    %c2 = arith.constant 2 : index
    %12 = vector.load %arg3[%c0_15, %c0_16, %c2] : memref<1x8x19xf32, #tpu.memory_space<vmem>>, vector<1x8x4xf32>
    %13 = vector.shape_cast %12 : vector<1x8x4xf32> to vector<8x4xf32>
    %c32 = arith.constant 32 : index
    %c0_17 = arith.constant 0 : index
    %14 = vector.load %arg11[%c32, %c0_17] : memref<256x4xf32, #tpu.memory_space<vmem>>, vector<8x4xf32>
    tpu.vector_store %arg11[%c32, %c0_17], %13 {strides = array<i32>} : memref<256x4xf32, #tpu.memory_space<vmem>>, vector<8x4xf32>,
    %c0_18 = arith.constant 0 : index
    %c0_19 = arith.constant 0 : index
    %c2_20 = arith.constant 2 : index
    %15 = vector.load %arg4[%c0_18, %c0_19, %c2_20] : memref<1x8x19xf32, #tpu.memory_space<vmem>>, vector<1x8x4xf32>
    %16 = vector.shape_cast %15 : vector<1x8x4xf32> to vector<8x4xf32>
    %c40 = arith.constant 40 : index
    %c0_21 = arith.constant 0 : index
    %17 = vector.load %arg11[%c40, %c0_21] : memref<256x4xf32, #tpu.memory_space<vmem>>, vector<8x4xf32>
    tpu.vector_store %arg11[%c40, %c0_21], %16 {strides = array<i32>} : memref<256x4xf32, #tpu.memory_space<vmem>>, vector<8x4xf32>,
    %c0_22 = arith.constant 0 : index
    %c0_23 = arith.constant 0 : index
    %c3 = arith.constant 3 : index
    %18 = vector.load %arg3[%c0_22, %c0_23, %c3] : memref<1x8x19xf32, #tpu.memory_space<vmem>>, vector<1x8x4xf32>
    %19 = vector.shape_cast %18 : vector<1x8x4xf32> to vector<8x4xf32>
    %c48 = arith.constant 48 : index
    %c0_24 = arith.constant 0 : index
    %20 = vector.load %arg11[%c48, %c0_24] : memref<256x4xf32, #tpu.memory_space<vmem>>, vector<8x4xf32>
    tpu.vector_store %arg11[%c48, %c0_24], %19 {strides = array<i32>} : memref<256x4xf32, #tpu.memory_space<vmem>>, vector<8x4xf32>,
    %c0_25 = arith.constant 0 : index
    %c0_26 = arith.constant 0 : index
    %c3_27 = arith.constant 3 : index
    %21 = vector.load %arg4[%c0_25, %c0_26, %c3_27] : memref<1x8x19xf32, #tpu.memory_space<vmem>>, vector<1x8x4xf32>
    %22 = vector.shape_cast %21 : vector<1x8x4xf32> to vector<8x4xf32>
    %c56 = arith.constant 56 : index
    %c0_28 = arith.constant 0 : index
    %23 = vector.load %arg11[%c56, %c0_28] : memref<256x4xf32, #tpu.memory_space<vmem>>, vector<8x4xf32>
    tpu.vector_store %arg11[%c56, %c0_28], %22 {strides = array<i32>} : memref<256x4xf32, #tpu.memory_space<vmem>>, vector<8x4xf32>,
    %c0_29 = arith.constant 0 : index
    %c0_30 = arith.constant 0 : index
    %c4 = arith.constant 4 : index
    %24 = vector.load %arg3[%c0_29, %c0_30, %c4] : memref<1x8x19xf32, #tpu.memory_space<vmem>>, vector<1x8x4xf32>
    %25 = vector.shape_cast %24 : vector<1x8x4xf32> to vector<8x4xf32>
    %c64 = arith.constant 64 : index
    %c0_31 = arith.constant 0 : index
    %26 = vector.load %arg11[%c64, %c0_31] : memref<256x4xf32, #tpu.memory_space<vmem>>, vector<8x4xf32>
    tpu.vector_store %arg11[%c64, %c0_31], %25 {strides = array<i32>} : memref<256x4xf32, #tpu.memory_space<vmem>>, vector<8x4xf32>,
    %c0_32 = arith.constant 0 : index
    %c0_33 = arith.constant 0 : index
    %c4_34 = arith.constant 4 : index
    %27 = vector.load %arg4[%c0_32, %c0_33, %c4_34] : memref<1x8x19xf32, #tpu.memory_space<vmem>>, vector<1x8x4xf32>
    %28 = vector.shape_cast %27 : vector<1x8x4xf32> to vector<8x4xf32>
    %c72 = arith.constant 72 : index
    %c0_35 = arith.constant 0 : index
    %29 = vector.load %arg11[%c72, %c0_35] : memref<256x4xf32, #tpu.memory_space<vmem>>, vector<8x4xf32>
    tpu.vector_store %arg11[%c72, %c0_35], %28 {strides = array<i32>} : memref<256x4xf32, #tpu.memory_space<vmem>>, vector<8x4xf32>,
    %c0_36 = arith.constant 0 : index
    %c0_37 = arith.constant 0 : index
    %c5 = arith.constant 5 : index
    %30 = vector.load %arg3[%c0_36, %c0_37, %c5] : memref<1x8x19xf32, #tpu.memory_space<vmem>>, vector<1x8x4xf32>
    %31 = vector.shape_cast %30 : vector<1x8x4xf32> to vector<8x4xf32>
    %c80 = arith.constant 80 : index
    %c0_38 = arith.constant 0 : index
    %32 = vector.load %arg11[%c80, %c0_38] : memref<256x4xf32, #tpu.memory_space<vmem>>, vector<8x4xf32>
    tpu.vector_store %arg11[%c80, %c0_38], %31 {strides = array<i32>} : memref<256x4xf32, #tpu.memory_space<vmem>>, vector<8x4xf32>,
    %c0_39 = arith.constant 0 : index
    %c0_40 = arith.constant 0 : index
    %c5_41 = arith.constant 5 : index
    %33 = vector.load %arg4[%c0_39, %c0_40, %c5_41] : memref<1x8x19xf32, #tpu.memory_space<vmem>>, vector<1x8x4xf32>
    %34 = vector.shape_cast %33 : vector<1x8x4xf32> to vector<8x4xf32>
    %c88 = arith.constant 88 : index
    %c0_42 = arith.constant 0 : index
    %35 = vector.load %arg11[%c88, %c0_42] : memref<256x4xf32, #tpu.memory_space<vmem>>, vector<8x4xf32>
    tpu.vector_store %arg11[%c88, %c0_42], %34 {strides = array<i32>} : memref<256x4xf32, #tpu.memory_space<vmem>>, vector<8x4xf32>,
    %c0_43 = arith.constant 0 : index
    %c0_44 = arith.constant 0 : index
    %c6 = arith.constant 6 : index
    %36 = vector.load %arg3[%c0_43, %c0_44, %c6] : memref<1x8x19xf32, #tpu.memory_space<vmem>>, vector<1x8x4xf32>
    %37 = vector.shape_cast %36 : vector<1x8x4xf32> to vector<8x4xf32>
    %c96 = arith.constant 96 : index
    %c0_45 = arith.constant 0 : index
    %38 = vector.load %arg11[%c96, %c0_45] : memref<256x4xf32, #tpu.memory_space<vmem>>, vector<8x4xf32>
    tpu.vector_store %arg11[%c96, %c0_45], %37 {strides = array<i32>} : memref<256x4xf32, #tpu.memory_space<vmem>>, vector<8x4xf32>,
    %c0_46 = arith.constant 0 : index
    %c0_47 = arith.constant 0 : index
    %c6_48 = arith.constant 6 : index
    %39 = vector.load %arg4[%c0_46, %c0_47, %c6_48] : memref<1x8x19xf32, #tpu.memory_space<vmem>>, vector<1x8x4xf32>
    %40 = vector.shape_cast %39 : vector<1x8x4xf32> to vector<8x4xf32>
    %c104 = arith.constant 104 : index
    %c0_49 = arith.constant 0 : index
    %41 = vector.load %arg11[%c104, %c0_49] : memref<256x4xf32, #tpu.memory_space<vmem>>, vector<8x4xf32>
    tpu.vector_store %arg11[%c104, %c0_49], %40 {strides = array<i32>} : memref<256x4xf32, #tpu.memory_space<vmem>>, vector<8x4xf32>,
    %c0_50 = arith.constant 0 : index
    %c0_51 = arith.constant 0 : index
    %c7 = arith.constant 7 : index
    %42 = vector.load %arg3[%c0_50, %c0_51, %c7] : memref<1x8x19xf32, #tpu.memory_space<vmem>>, vector<1x8x4xf32>
    %43 = vector.shape_cast %42 : vector<1x8x4xf32> to vector<8x4xf32>
    %c112 = arith.constant 112 : index
    %c0_52 = arith.constant 0 : index
    %44 = vector.load %arg11[%c112, %c0_52] : memref<256x4xf32, #tpu.memory_space<vmem>>, vector<8x4xf32>
    tpu.vector_store %arg11[%c112, %c0_52], %43 {strides = array<i32>} : memref<256x4xf32, #tpu.memory_space<vmem>>, vector<8x4xf32>,
    %c0_53 = arith.constant 0 : index
    %c0_54 = arith.constant 0 : index
    %c7_55 = arith.constant 7 : index
    %45 = vector.load %arg4[%c0_53, %c0_54, %c7_55] : memref<1x8x19xf32, #tpu.memory_space<vmem>>, vector<1x8x4xf32>
    %46 = vector.shape_cast %45 : vector<1x8x4xf32> to vector<8x4xf32>
    %c120 = arith.constant 120 : index
    %c0_56 = arith.constant 0 : index
    %47 = vector.load %arg11[%c120, %c0_56] : memref<256x4xf32, #tpu.memory_space<vmem>>, vector<8x4xf32>
    tpu.vector_store %arg11[%c120, %c0_56], %46 {strides = array<i32>} : memref<256x4xf32, #tpu.memory_space<vmem>>, vector<8x4xf32>,
    %c0_57 = arith.constant 0 : index
    %c0_58 = arith.constant 0 : index
    %c8_59 = arith.constant 8 : index
    %48 = vector.load %arg3[%c0_57, %c0_58, %c8_59] : memref<1x8x19xf32, #tpu.memory_space<vmem>>, vector<1x8x4xf32>
    %49 = vector.shape_cast %48 : vector<1x8x4xf32> to vector<8x4xf32>
    %c128 = arith.constant 128 : index
    %c0_60 = arith.constant 0 : index
    %50 = vector.load %arg11[%c128, %c0_60] : memref<256x4xf32, #tpu.memory_space<vmem>>, vector<8x4xf32>
    tpu.vector_store %arg11[%c128, %c0_60], %49 {strides = array<i32>} : memref<256x4xf32, #tpu.memory_space<vmem>>, vector<8x4xf32>,
    %c0_61 = arith.constant 0 : index
    %c0_62 = arith.constant 0 : index
    %c8_63 = arith.constant 8 : index
    %51 = vector.load %arg4[%c0_61, %c0_62, %c8_63] : memref<1x8x19xf32, #tpu.memory_space<vmem>>, vector<1x8x4xf32>
    %52 = vector.shape_cast %51 : vector<1x8x4xf32> to vector<8x4xf32>
    %c136 = arith.constant 136 : index
    %c0_64 = arith.constant 0 : index
    %53 = vector.load %arg11[%c136, %c0_64] : memref<256x4xf32, #tpu.memory_space<vmem>>, vector<8x4xf32>
    tpu.vector_store %arg11[%c136, %c0_64], %52 {strides = array<i32>} : memref<256x4xf32, #tpu.memory_space<vmem>>, vector<8x4xf32>,
    %c0_65 = arith.constant 0 : index
    %c0_66 = arith.constant 0 : index
    %c9 = arith.constant 9 : index
    %54 = vector.load %arg3[%c0_65, %c0_66, %c9] : memref<1x8x19xf32, #tpu.memory_space<vmem>>, vector<1x8x4xf32>
    %55 = vector.shape_cast %54 : vector<1x8x4xf32> to vector<8x4xf32>
    %c144 = arith.constant 144 : index
    %c0_67 = arith.constant 0 : index
    %56 = vector.load %arg11[%c144, %c0_67] : memref<256x4xf32, #tpu.memory_space<vmem>>, vector<8x4xf32>
    tpu.vector_store %arg11[%c144, %c0_67], %55 {strides = array<i32>} : memref<256x4xf32, #tpu.memory_space<vmem>>, vector<8x4xf32>,
    %c0_68 = arith.constant 0 : index
    %c0_69 = arith.constant 0 : index
    %c9_70 = arith.constant 9 : index
    %57 = vector.load %arg4[%c0_68, %c0_69, %c9_70] : memref<1x8x19xf32, #tpu.memory_space<vmem>>, vector<1x8x4xf32>
    %58 = vector.shape_cast %57 : vector<1x8x4xf32> to vector<8x4xf32>
    %c152 = arith.constant 152 : index
    %c0_71 = arith.constant 0 : index
    %59 = vector.load %arg11[%c152, %c0_71] : memref<256x4xf32, #tpu.memory_space<vmem>>, vector<8x4xf32>
    tpu.vector_store %arg11[%c152, %c0_71], %58 {strides = array<i32>} : memref<256x4xf32, #tpu.memory_space<vmem>>, vector<8x4xf32>,
    %c0_72 = arith.constant 0 : index
    %c0_73 = arith.constant 0 : index
    %c10 = arith.constant 10 : index
    %60 = vector.load %arg3[%c0_72, %c0_73, %c10] : memref<1x8x19xf32, #tpu.memory_space<vmem>>, vector<1x8x4xf32>
    %61 = vector.shape_cast %60 : vector<1x8x4xf32> to vector<8x4xf32>
    %c160 = arith.constant 160 : index
    %c0_74 = arith.constant 0 : index
    %62 = vector.load %arg11[%c160, %c0_74] : memref<256x4xf32, #tpu.memory_space<vmem>>, vector<8x4xf32>
    tpu.vector_store %arg11[%c160, %c0_74], %61 {strides = array<i32>} : memref<256x4xf32, #tpu.memory_space<vmem>>, vector<8x4xf32>,
    %c0_75 = arith.constant 0 : index
    %c0_76 = arith.constant 0 : index
    %c10_77 = arith.constant 10 : index
    %63 = vector.load %arg4[%c0_75, %c0_76, %c10_77] : memref<1x8x19xf32, #tpu.memory_space<vmem>>, vector<1x8x4xf32>
    %64 = vector.shape_cast %63 : vector<1x8x4xf32> to vector<8x4xf32>
    %c168 = arith.constant 168 : index
    %c0_78 = arith.constant 0 : index
    %65 = vector.load %arg11[%c168, %c0_78] : memref<256x4xf32, #tpu.memory_space<vmem>>, vector<8x4xf32>
    tpu.vector_store %arg11[%c168, %c0_78], %64 {strides = array<i32>} : memref<256x4xf32, #tpu.memory_space<vmem>>, vector<8x4xf32>,
    %c0_79 = arith.constant 0 : index
    %c0_80 = arith.constant 0 : index
    %c11 = arith.constant 11 : index
    %66 = vector.load %arg3[%c0_79, %c0_80, %c11] : memref<1x8x19xf32, #tpu.memory_space<vmem>>, vector<1x8x4xf32>
    %67 = vector.shape_cast %66 : vector<1x8x4xf32> to vector<8x4xf32>
    %c176 = arith.constant 176 : index
    %c0_81 = arith.constant 0 : index
    %68 = vector.load %arg11[%c176, %c0_81] : memref<256x4xf32, #tpu.memory_space<vmem>>, vector<8x4xf32>
    tpu.vector_store %arg11[%c176, %c0_81], %67 {strides = array<i32>} : memref<256x4xf32, #tpu.memory_space<vmem>>, vector<8x4xf32>,
    %c0_82 = arith.constant 0 : index
    %c0_83 = arith.constant 0 : index
    %c11_84 = arith.constant 11 : index
    %69 = vector.load %arg4[%c0_82, %c0_83, %c11_84] : memref<1x8x19xf32, #tpu.memory_space<vmem>>, vector<1x8x4xf32>
    %70 = vector.shape_cast %69 : vector<1x8x4xf32> to vector<8x4xf32>
    %c184 = arith.constant 184 : index
    %c0_85 = arith.constant 0 : index
    %71 = vector.load %arg11[%c184, %c0_85] : memref<256x4xf32, #tpu.memory_space<vmem>>, vector<8x4xf32>
    tpu.vector_store %arg11[%c184, %c0_85], %70 {strides = array<i32>} : memref<256x4xf32, #tpu.memory_space<vmem>>, vector<8x4xf32>,
    %c0_86 = arith.constant 0 : index
    %c0_87 = arith.constant 0 : index
    %c12 = arith.constant 12 : index
    %72 = vector.load %arg3[%c0_86, %c0_87, %c12] : memref<1x8x19xf32, #tpu.memory_space<vmem>>, vector<1x8x4xf32>
    %73 = vector.shape_cast %72 : vector<1x8x4xf32> to vector<8x4xf32>
    %c192 = arith.constant 192 : index
    %c0_88 = arith.constant 0 : index
    %74 = vector.load %arg11[%c192, %c0_88] : memref<256x4xf32, #tpu.memory_space<vmem>>, vector<8x4xf32>
    tpu.vector_store %arg11[%c192, %c0_88], %73 {strides = array<i32>} : memref<256x4xf32, #tpu.memory_space<vmem>>, vector<8x4xf32>,
    %c0_89 = arith.constant 0 : index
    %c0_90 = arith.constant 0 : index
    %c12_91 = arith.constant 12 : index
    %75 = vector.load %arg4[%c0_89, %c0_90, %c12_91] : memref<1x8x19xf32, #tpu.memory_space<vmem>>, vector<1x8x4xf32>
    %76 = vector.shape_cast %75 : vector<1x8x4xf32> to vector<8x4xf32>
    %c200 = arith.constant 200 : index
    %c0_92 = arith.constant 0 : index
    %77 = vector.load %arg11[%c200, %c0_92] : memref<256x4xf32, #tpu.memory_space<vmem>>, vector<8x4xf32>
    tpu.vector_store %arg11[%c200, %c0_92], %76 {strides = array<i32>} : memref<256x4xf32, #tpu.memory_space<vmem>>, vector<8x4xf32>,
    %c0_93 = arith.constant 0 : index
    %c0_94 = arith.constant 0 : index
    %c13 = arith.constant 13 : index
    %78 = vector.load %arg3[%c0_93, %c0_94, %c13] : memref<1x8x19xf32, #tpu.memory_space<vmem>>, vector<1x8x4xf32>
    %79 = vector.shape_cast %78 : vector<1x8x4xf32> to vector<8x4xf32>
    %c208 = arith.constant 208 : index
    %c0_95 = arith.constant 0 : index
    %80 = vector.load %arg11[%c208, %c0_95] : memref<256x4xf32, #tpu.memory_space<vmem>>, vector<8x4xf32>
    tpu.vector_store %arg11[%c208, %c0_95], %79 {strides = array<i32>} : memref<256x4xf32, #tpu.memory_space<vmem>>, vector<8x4xf32>,
    %c0_96 = arith.constant 0 : index
    %c0_97 = arith.constant 0 : index
    %c13_98 = arith.constant 13 : index
    %81 = vector.load %arg4[%c0_96, %c0_97, %c13_98] : memref<1x8x19xf32, #tpu.memory_space<vmem>>, vector<1x8x4xf32>
    %82 = vector.shape_cast %81 : vector<1x8x4xf32> to vector<8x4xf32>
    %c216 = arith.constant 216 : index
    %c0_99 = arith.constant 0 : index
    %83 = vector.load %arg11[%c216, %c0_99] : memref<256x4xf32, #tpu.memory_space<vmem>>, vector<8x4xf32>
    tpu.vector_store %arg11[%c216, %c0_99], %82 {strides = array<i32>} : memref<256x4xf32, #tpu.memory_space<vmem>>, vector<8x4xf32>,
    %c0_100 = arith.constant 0 : index
    %c0_101 = arith.constant 0 : index
    %c14 = arith.constant 14 : index
    %84 = vector.load %arg3[%c0_100, %c0_101, %c14] : memref<1x8x19xf32, #tpu.memory_space<vmem>>, vector<1x8x4xf32>
    %85 = vector.shape_cast %84 : vector<1x8x4xf32> to vector<8x4xf32>
    %c224 = arith.constant 224 : index
    %c0_102 = arith.constant 0 : index
    %86 = vector.load %arg11[%c224, %c0_102] : memref<256x4xf32, #tpu.memory_space<vmem>>, vector<8x4xf32>
    tpu.vector_store %arg11[%c224, %c0_102], %85 {strides = array<i32>} : memref<256x4xf32, #tpu.memory_space<vmem>>, vector<8x4xf32>,
    %c0_103 = arith.constant 0 : index
    %c0_104 = arith.constant 0 : index
    %c14_105 = arith.constant 14 : index
    %87 = vector.load %arg4[%c0_103, %c0_104, %c14_105] : memref<1x8x19xf32, #tpu.memory_space<vmem>>, vector<1x8x4xf32>
    %88 = vector.shape_cast %87 : vector<1x8x4xf32> to vector<8x4xf32>
    %c232 = arith.constant 232 : index
    %c0_106 = arith.constant 0 : index
    %89 = vector.load %arg11[%c232, %c0_106] : memref<256x4xf32, #tpu.memory_space<vmem>>, vector<8x4xf32>
    tpu.vector_store %arg11[%c232, %c0_106], %88 {strides = array<i32>} : memref<256x4xf32, #tpu.memory_space<vmem>>, vector<8x4xf32>,
    %c0_107 = arith.constant 0 : index
    %c0_108 = arith.constant 0 : index
    %c15 = arith.constant 15 : index
    %90 = vector.load %arg3[%c0_107, %c0_108, %c15] : memref<1x8x19xf32, #tpu.memory_space<vmem>>, vector<1x8x4xf32>
    %91 = vector.shape_cast %90 : vector<1x8x4xf32> to vector<8x4xf32>
    %c240 = arith.constant 240 : index
    %c0_109 = arith.constant 0 : index
    %92 = vector.load %arg11[%c240, %c0_109] : memref<256x4xf32, #tpu.memory_space<vmem>>, vector<8x4xf32>
    tpu.vector_store %arg11[%c240, %c0_109], %91 {strides = array<i32>} : memref<256x4xf32, #tpu.memory_space<vmem>>, vector<8x4xf32>,
    %c0_110 = arith.constant 0 : index
    %c0_111 = arith.constant 0 : index
    %c15_112 = arith.constant 15 : index
    %93 = vector.load %arg4[%c0_110, %c0_111, %c15_112] : memref<1x8x19xf32, #tpu.memory_space<vmem>>, vector<1x8x4xf32>
    %94 = vector.shape_cast %93 : vector<1x8x4xf32> to vector<8x4xf32>
    %c248 = arith.constant 248 : index
    %c0_113 = arith.constant 0 : index
    %95 = vector.load %arg11[%c248, %c0_113] : memref<256x4xf32, #tpu.memory_space<vmem>>, vector<8x4xf32>
    tpu.vector_store %arg11[%c248, %c0_113], %94 {strides = array<i32>} : memref<256x4xf32, #tpu.memory_space<vmem>>, vector<8x4xf32>,
    %c0_114 = arith.constant 0 : index
    %c0_115 = arith.constant 0 : index
    %96 = vector.load %arg5[%c0_114, %c0_115] : memref<4x256xf32, #tpu.memory_space<vmem>>, vector<4x256xf32>
    %c0_116 = arith.constant 0 : index
    %c0_117 = arith.constant 0 : index
    %97 = vector.load %arg11[%c0_116, %c0_117] : memref<256x4xf32, #tpu.memory_space<vmem>>, vector<256x4xf32>
    %cst = arith.constant dense<0.000000e+00> : vector<4x4xf32>
    %98 = tpu.matmul %96, %97, %cst {dimension_numbers = #tpu.dot_dimension_numbers<[1], [0], [0], [1], [0, 0, 1, 1], [], []>} : vector<4x256xf32>, vector<256x4xf32>, vector<4x4xf32> -> vector<4x4xf32>
    %c0_118 = arith.constant 0 : index
    %c0_119 = arith.constant 0 : index
    %99 = vector.load %arg6[%c0_118, %c0_119] : memref<4x256xf32, #tpu.memory_space<vmem>>, vector<4x256xf32>
    %c0_120 = arith.constant 0 : index
    %c0_121 = arith.constant 0 : index
    %100 = vector.load %arg11[%c0_120, %c0_121] : memref<256x4xf32, #tpu.memory_space<vmem>>, vector<256x4xf32>
    %cst_122 = arith.constant dense<0.000000e+00> : vector<4x4xf32>
    %101 = tpu.matmul %99, %100, %cst_122 {dimension_numbers = #tpu.dot_dimension_numbers<[1], [0], [0], [1], [0, 0, 1, 1], [], []>} : vector<4x256xf32>, vector<256x4xf32>, vector<4x4xf32> -> vector<4x4xf32>
    %c0_123 = arith.constant 0 : index
    %c0_124 = arith.constant 0 : index
    %102 = vector.load %arg7[%c0_123, %c0_124] : memref<4x1xf32, #tpu.memory_space<vmem>>, vector<4x1xf32>
    %c0_125 = arith.constant 0 : index
    %103 = memref.load %arg8[%c0_125] : memref<1xf32, #tpu.memory_space<smem>>
    %104 = vector.broadcast %102 : vector<4x1xf32> to vector<4x4xf32>
    %105 = arith.addf %98, %104 : vector<4x4xf32>
    %106 = vector.broadcast %102 : vector<4x1xf32> to vector<4x4xf32>
    %107 = arith.addf %101, %106 : vector<4x4xf32>
    %cst_126 = arith.constant 0.000000e+00 : f32
    %108 = vector.broadcast %cst_126 : f32 to vector<4x4xf32>
    %109 = arith.cmpf ogt, %105, %108 : vector<4x4xf32>
    %110 = vector.broadcast %103 : f32 to vector<4x4xf32>
    %111 = arith.mulf %110, %105 : vector<4x4xf32>
    %112 = arith.select %109, %105, %111 : vector<4x4xi1>, vector<4x4xf32>
    %c0_127 = arith.constant 0 : index
    %c0_128 = arith.constant 0 : index
    %c0_129 = arith.constant 0 : index
    %113 = vector.load %arg9[%c0_127, %c0_128, %c0_129] : memref<1x4x4xf32, #tpu.memory_space<vmem>>, vector<1x4x4xf32>
    %114 = vector.shape_cast %113 : vector<1x4x4xf32> to vector<4x4xf32>
    %115 = vector.shape_cast %112 : vector<4x4xf32> to vector<1x4x4xf32>
    tpu.vector_store %arg9[%c0_127, %c0_128, %c0_129], %115 {strides = array<i32>} : memref<1x4x4xf32, #tpu.memory_space<vmem>>, vector<1x4x4xf32>,
    %cst_130 = arith.constant 0.000000e+00 : f32
    %116 = vector.broadcast %cst_130 : f32 to vector<4x4xf32>
    %117 = arith.cmpf ogt, %107, %116 : vector<4x4xf32>
    %118 = vector.broadcast %103 : f32 to vector<4x4xf32>
    %119 = arith.mulf %118, %107 : vector<4x4xf32>
    %120 = arith.select %117, %107, %119 : vector<4x4xi1>, vector<4x4xf32>
    %c0_131 = arith.constant 0 : index
    %c0_132 = arith.constant 0 : index
    %c0_133 = arith.constant 0 : index
    %121 = vector.load %arg10[%c0_131, %c0_132, %c0_133] : memref<1x4x4xf32, #tpu.memory_space<vmem>>, vector<1x4x4xf32>
    %122 = vector.shape_cast %121 : vector<1x4x4xf32> to vector<4x4xf32>
    %123 = vector.shape_cast %120 : vector<4x4xf32> to vector<1x4x4xf32>
    tpu.vector_store %arg10[%c0_131, %c0_132, %c0_133], %123 {strides = array<i32>} : memref<1x4x4xf32, #tpu.memory_space<vmem>>, vector<1x4x4xf32>,
    return
  }
  func.func @transform_0(%arg0: i32, %arg1: i32, %arg2: i32) -> (i32, i32, i32) {
    %c0_i32 = arith.constant 0 : i32
    %c0_i32_0 = arith.constant 0 : i32
    %c0_i32_1 = arith.constant 0 : i32
    return %arg1, %c0_i32, %c0_i32_0 : i32, i32, i32
  }
  func.func @transform_1(%arg0: i32, %arg1: i32, %arg2: i32) -> (i32, i32, i32) {
    %c0_i32 = arith.constant 0 : i32
    %c0_i32_0 = arith.constant 0 : i32
    %c0_i32_1 = arith.constant 0 : i32
    return %arg1, %c0_i32, %c0_i32_0 : i32, i32, i32
  }
  func.func @transform_2(%arg0: i32, %arg1: i32, %arg2: i32) -> (i32, i32) {
    %c0_i32 = arith.constant 0 : i32
    %c0_i32_0 = arith.constant 0 : i32
    return %arg0, %c0_i32 : i32, i32
  }
  func.func @transform_3(%arg0: i32, %arg1: i32, %arg2: i32) -> (i32, i32) {
    %c0_i32 = arith.constant 0 : i32
    %c0_i32_0 = arith.constant 0 : i32
    return %arg0, %c0_i32 : i32, i32
  }
  func.func @transform_4(%arg0: i32, %arg1: i32, %arg2: i32) -> (i32, i32) {
    %c0_i32 = arith.constant 0 : i32
    %c0_i32_0 = arith.constant 0 : i32
    return %arg0, %c0_i32 : i32, i32
  }
  func.func @transform_5(%arg0: i32, %arg1: i32, %arg2: i32) -> i32 {
    %c0_i32 = arith.constant 0 : i32
    %c0_i32_0 = arith.constant 0 : i32
    return %c0_i32 : i32
  }
  func.func @transform_6(%arg0: i32, %arg1: i32, %arg2: i32) -> (i32, i32, i32) {
    %c0_i32 = arith.constant 0 : i32
    return %arg1, %arg0, %arg2 : i32, i32, i32
  }
  func.func @transform_7(%arg0: i32, %arg1: i32, %arg2: i32) -> (i32, i32, i32) {
    %c0_i32 = arith.constant 0 : i32
    return %arg1, %arg0, %arg2 : i32, i32, i32
  }
}

module attributes {stable_mosaic.version = 11 : i64} {
  func.func @_dec_kernel_stacked(%arg0: i32, %arg1: i32, %arg2: i32, %arg3: memref<1x4x23xf32, #tpu.memory_space<vmem>>, %arg4: memref<1x4x23xf32, #tpu.memory_space<vmem>>, %arg5: memref<1x128xf32, #tpu.memory_space<vmem>>, %arg6: memref<1x128xf32, #tpu.memory_space<vmem>>, %arg7: memref<1x1xf32, #tpu.memory_space<vmem>>, %arg8: memref<1xf32, #tpu.memory_space<smem>>, %arg9: memref<1x1x8xf32, #tpu.memory_space<vmem>>, %arg10: memref<1x1x8xf32, #tpu.memory_space<vmem>>, %arg11: memref<128x8xf32, #tpu.memory_space<vmem>>) attributes {dimension_semantics = [#tpu.dimension_semantics<parallel>, #tpu.dimension_semantics<parallel>, #tpu.dimension_semantics<parallel>], iteration_bounds = array<i64: 1, 2, 1>, scalar_prefetch = 0 : i64, scratch_operands = 1 : i64, tpu.core_type = #tpu.core_type<tc>, window_params = [{transform_indices = @transform_0, window_bounds = array<i64: 1, 4, 23>}, {transform_indices = @transform_1, window_bounds = array<i64: 1, 4, 23>}, {transform_indices = @transform_2, window_bounds = array<i64: 1, 128>}, {transform_indices = @transform_3, window_bounds = array<i64: 1, 128>}, {transform_indices = @transform_4, window_bounds = array<i64: 1, 1>}, {transform_indices = @transform_5, window_bounds = array<i64: 1>}, {transform_indices = @transform_6, window_bounds = array<i64: 1, 1, 8>}, {transform_indices = @transform_7, window_bounds = array<i64: 1, 1, 8>}]} {
    %c0 = arith.constant 0 : index
    %c0_0 = arith.constant 0 : index
    %c0_1 = arith.constant 0 : index
    %0 = vector.load %arg3[%c0, %c0_0, %c0_1] : memref<1x4x23xf32, #tpu.memory_space<vmem>>, vector<1x4x8xf32>
    %1 = vector.shape_cast %0 : vector<1x4x8xf32> to vector<4x8xf32>
    %c0_2 = arith.constant 0 : index
    %c0_3 = arith.constant 0 : index
    %2 = vector.load %arg11[%c0_2, %c0_3] : memref<128x8xf32, #tpu.memory_space<vmem>>, vector<4x8xf32>
    tpu.vector_store %arg11[%c0_2, %c0_3], %1 {strides = array<i32>} : memref<128x8xf32, #tpu.memory_space<vmem>>, vector<4x8xf32>,
    %c0_4 = arith.constant 0 : index
    %c0_5 = arith.constant 0 : index
    %c0_6 = arith.constant 0 : index
    %3 = vector.load %arg4[%c0_4, %c0_5, %c0_6] : memref<1x4x23xf32, #tpu.memory_space<vmem>>, vector<1x4x8xf32>
    %4 = vector.shape_cast %3 : vector<1x4x8xf32> to vector<4x8xf32>
    %c4 = arith.constant 4 : index
    %c0_7 = arith.constant 0 : index
    %5 = vector.load %arg11[%c4, %c0_7] : memref<128x8xf32, #tpu.memory_space<vmem>>, vector<4x8xf32>
    tpu.vector_store %arg11[%c4, %c0_7], %4 {strides = array<i32>} : memref<128x8xf32, #tpu.memory_space<vmem>>, vector<4x8xf32>,
    %c0_8 = arith.constant 0 : index
    %c0_9 = arith.constant 0 : index
    %c1 = arith.constant 1 : index
    %6 = vector.load %arg3[%c0_8, %c0_9, %c1] : memref<1x4x23xf32, #tpu.memory_space<vmem>>, vector<1x4x8xf32>
    %7 = vector.shape_cast %6 : vector<1x4x8xf32> to vector<4x8xf32>
    %c8 = arith.constant 8 : index
    %c0_10 = arith.constant 0 : index
    %8 = vector.load %arg11[%c8, %c0_10] : memref<128x8xf32, #tpu.memory_space<vmem>>, vector<4x8xf32>
    tpu.vector_store %arg11[%c8, %c0_10], %7 {strides = array<i32>} : memref<128x8xf32, #tpu.memory_space<vmem>>, vector<4x8xf32>,
    %c0_11 = arith.constant 0 : index
    %c0_12 = arith.constant 0 : index
    %c1_13 = arith.constant 1 : index
    %9 = vector.load %arg4[%c0_11, %c0_12, %c1_13] : memref<1x4x23xf32, #tpu.memory_space<vmem>>, vector<1x4x8xf32>
    %10 = vector.shape_cast %9 : vector<1x4x8xf32> to vector<4x8xf32>
    %c12 = arith.constant 12 : index
    %c0_14 = arith.constant 0 : index
    %11 = vector.load %arg11[%c12, %c0_14] : memref<128x8xf32, #tpu.memory_space<vmem>>, vector<4x8xf32>
    tpu.vector_store %arg11[%c12, %c0_14], %10 {strides = array<i32>} : memref<128x8xf32, #tpu.memory_space<vmem>>, vector<4x8xf32>,
    %c0_15 = arith.constant 0 : index
    %c0_16 = arith.constant 0 : index
    %c2 = arith.constant 2 : index
    %12 = vector.load %arg3[%c0_15, %c0_16, %c2] : memref<1x4x23xf32, #tpu.memory_space<vmem>>, vector<1x4x8xf32>
    %13 = vector.shape_cast %12 : vector<1x4x8xf32> to vector<4x8xf32>
    %c16 = arith.constant 16 : index
    %c0_17 = arith.constant 0 : index
    %14 = vector.load %arg11[%c16, %c0_17] : memref<128x8xf32, #tpu.memory_space<vmem>>, vector<4x8xf32>
    tpu.vector_store %arg11[%c16, %c0_17], %13 {strides = array<i32>} : memref<128x8xf32, #tpu.memory_space<vmem>>, vector<4x8xf32>,
    %c0_18 = arith.constant 0 : index
    %c0_19 = arith.constant 0 : index
    %c2_20 = arith.constant 2 : index
    %15 = vector.load %arg4[%c0_18, %c0_19, %c2_20] : memref<1x4x23xf32, #tpu.memory_space<vmem>>, vector<1x4x8xf32>
    %16 = vector.shape_cast %15 : vector<1x4x8xf32> to vector<4x8xf32>
    %c20 = arith.constant 20 : index
    %c0_21 = arith.constant 0 : index
    %17 = vector.load %arg11[%c20, %c0_21] : memref<128x8xf32, #tpu.memory_space<vmem>>, vector<4x8xf32>
    tpu.vector_store %arg11[%c20, %c0_21], %16 {strides = array<i32>} : memref<128x8xf32, #tpu.memory_space<vmem>>, vector<4x8xf32>,
    %c0_22 = arith.constant 0 : index
    %c0_23 = arith.constant 0 : index
    %c3 = arith.constant 3 : index
    %18 = vector.load %arg3[%c0_22, %c0_23, %c3] : memref<1x4x23xf32, #tpu.memory_space<vmem>>, vector<1x4x8xf32>
    %19 = vector.shape_cast %18 : vector<1x4x8xf32> to vector<4x8xf32>
    %c24 = arith.constant 24 : index
    %c0_24 = arith.constant 0 : index
    %20 = vector.load %arg11[%c24, %c0_24] : memref<128x8xf32, #tpu.memory_space<vmem>>, vector<4x8xf32>
    tpu.vector_store %arg11[%c24, %c0_24], %19 {strides = array<i32>} : memref<128x8xf32, #tpu.memory_space<vmem>>, vector<4x8xf32>,
    %c0_25 = arith.constant 0 : index
    %c0_26 = arith.constant 0 : index
    %c3_27 = arith.constant 3 : index
    %21 = vector.load %arg4[%c0_25, %c0_26, %c3_27] : memref<1x4x23xf32, #tpu.memory_space<vmem>>, vector<1x4x8xf32>
    %22 = vector.shape_cast %21 : vector<1x4x8xf32> to vector<4x8xf32>
    %c28 = arith.constant 28 : index
    %c0_28 = arith.constant 0 : index
    %23 = vector.load %arg11[%c28, %c0_28] : memref<128x8xf32, #tpu.memory_space<vmem>>, vector<4x8xf32>
    tpu.vector_store %arg11[%c28, %c0_28], %22 {strides = array<i32>} : memref<128x8xf32, #tpu.memory_space<vmem>>, vector<4x8xf32>,
    %c0_29 = arith.constant 0 : index
    %c0_30 = arith.constant 0 : index
    %c4_31 = arith.constant 4 : index
    %24 = vector.load %arg3[%c0_29, %c0_30, %c4_31] : memref<1x4x23xf32, #tpu.memory_space<vmem>>, vector<1x4x8xf32>
    %25 = vector.shape_cast %24 : vector<1x4x8xf32> to vector<4x8xf32>
    %c32 = arith.constant 32 : index
    %c0_32 = arith.constant 0 : index
    %26 = vector.load %arg11[%c32, %c0_32] : memref<128x8xf32, #tpu.memory_space<vmem>>, vector<4x8xf32>
    tpu.vector_store %arg11[%c32, %c0_32], %25 {strides = array<i32>} : memref<128x8xf32, #tpu.memory_space<vmem>>, vector<4x8xf32>,
    %c0_33 = arith.constant 0 : index
    %c0_34 = arith.constant 0 : index
    %c4_35 = arith.constant 4 : index
    %27 = vector.load %arg4[%c0_33, %c0_34, %c4_35] : memref<1x4x23xf32, #tpu.memory_space<vmem>>, vector<1x4x8xf32>
    %28 = vector.shape_cast %27 : vector<1x4x8xf32> to vector<4x8xf32>
    %c36 = arith.constant 36 : index
    %c0_36 = arith.constant 0 : index
    %29 = vector.load %arg11[%c36, %c0_36] : memref<128x8xf32, #tpu.memory_space<vmem>>, vector<4x8xf32>
    tpu.vector_store %arg11[%c36, %c0_36], %28 {strides = array<i32>} : memref<128x8xf32, #tpu.memory_space<vmem>>, vector<4x8xf32>,
    %c0_37 = arith.constant 0 : index
    %c0_38 = arith.constant 0 : index
    %c5 = arith.constant 5 : index
    %30 = vector.load %arg3[%c0_37, %c0_38, %c5] : memref<1x4x23xf32, #tpu.memory_space<vmem>>, vector<1x4x8xf32>
    %31 = vector.shape_cast %30 : vector<1x4x8xf32> to vector<4x8xf32>
    %c40 = arith.constant 40 : index
    %c0_39 = arith.constant 0 : index
    %32 = vector.load %arg11[%c40, %c0_39] : memref<128x8xf32, #tpu.memory_space<vmem>>, vector<4x8xf32>
    tpu.vector_store %arg11[%c40, %c0_39], %31 {strides = array<i32>} : memref<128x8xf32, #tpu.memory_space<vmem>>, vector<4x8xf32>,
    %c0_40 = arith.constant 0 : index
    %c0_41 = arith.constant 0 : index
    %c5_42 = arith.constant 5 : index
    %33 = vector.load %arg4[%c0_40, %c0_41, %c5_42] : memref<1x4x23xf32, #tpu.memory_space<vmem>>, vector<1x4x8xf32>
    %34 = vector.shape_cast %33 : vector<1x4x8xf32> to vector<4x8xf32>
    %c44 = arith.constant 44 : index
    %c0_43 = arith.constant 0 : index
    %35 = vector.load %arg11[%c44, %c0_43] : memref<128x8xf32, #tpu.memory_space<vmem>>, vector<4x8xf32>
    tpu.vector_store %arg11[%c44, %c0_43], %34 {strides = array<i32>} : memref<128x8xf32, #tpu.memory_space<vmem>>, vector<4x8xf32>,
    %c0_44 = arith.constant 0 : index
    %c0_45 = arith.constant 0 : index
    %c6 = arith.constant 6 : index
    %36 = vector.load %arg3[%c0_44, %c0_45, %c6] : memref<1x4x23xf32, #tpu.memory_space<vmem>>, vector<1x4x8xf32>
    %37 = vector.shape_cast %36 : vector<1x4x8xf32> to vector<4x8xf32>
    %c48 = arith.constant 48 : index
    %c0_46 = arith.constant 0 : index
    %38 = vector.load %arg11[%c48, %c0_46] : memref<128x8xf32, #tpu.memory_space<vmem>>, vector<4x8xf32>
    tpu.vector_store %arg11[%c48, %c0_46], %37 {strides = array<i32>} : memref<128x8xf32, #tpu.memory_space<vmem>>, vector<4x8xf32>,
    %c0_47 = arith.constant 0 : index
    %c0_48 = arith.constant 0 : index
    %c6_49 = arith.constant 6 : index
    %39 = vector.load %arg4[%c0_47, %c0_48, %c6_49] : memref<1x4x23xf32, #tpu.memory_space<vmem>>, vector<1x4x8xf32>
    %40 = vector.shape_cast %39 : vector<1x4x8xf32> to vector<4x8xf32>
    %c52 = arith.constant 52 : index
    %c0_50 = arith.constant 0 : index
    %41 = vector.load %arg11[%c52, %c0_50] : memref<128x8xf32, #tpu.memory_space<vmem>>, vector<4x8xf32>
    tpu.vector_store %arg11[%c52, %c0_50], %40 {strides = array<i32>} : memref<128x8xf32, #tpu.memory_space<vmem>>, vector<4x8xf32>,
    %c0_51 = arith.constant 0 : index
    %c0_52 = arith.constant 0 : index
    %c7 = arith.constant 7 : index
    %42 = vector.load %arg3[%c0_51, %c0_52, %c7] : memref<1x4x23xf32, #tpu.memory_space<vmem>>, vector<1x4x8xf32>
    %43 = vector.shape_cast %42 : vector<1x4x8xf32> to vector<4x8xf32>
    %c56 = arith.constant 56 : index
    %c0_53 = arith.constant 0 : index
    %44 = vector.load %arg11[%c56, %c0_53] : memref<128x8xf32, #tpu.memory_space<vmem>>, vector<4x8xf32>
    tpu.vector_store %arg11[%c56, %c0_53], %43 {strides = array<i32>} : memref<128x8xf32, #tpu.memory_space<vmem>>, vector<4x8xf32>,
    %c0_54 = arith.constant 0 : index
    %c0_55 = arith.constant 0 : index
    %c7_56 = arith.constant 7 : index
    %45 = vector.load %arg4[%c0_54, %c0_55, %c7_56] : memref<1x4x23xf32, #tpu.memory_space<vmem>>, vector<1x4x8xf32>
    %46 = vector.shape_cast %45 : vector<1x4x8xf32> to vector<4x8xf32>
    %c60 = arith.constant 60 : index
    %c0_57 = arith.constant 0 : index
    %47 = vector.load %arg11[%c60, %c0_57] : memref<128x8xf32, #tpu.memory_space<vmem>>, vector<4x8xf32>
    tpu.vector_store %arg11[%c60, %c0_57], %46 {strides = array<i32>} : memref<128x8xf32, #tpu.memory_space<vmem>>, vector<4x8xf32>,
    %c0_58 = arith.constant 0 : index
    %c0_59 = arith.constant 0 : index
    %c8_60 = arith.constant 8 : index
    %48 = vector.load %arg3[%c0_58, %c0_59, %c8_60] : memref<1x4x23xf32, #tpu.memory_space<vmem>>, vector<1x4x8xf32>
    %49 = vector.shape_cast %48 : vector<1x4x8xf32> to vector<4x8xf32>
    %c64 = arith.constant 64 : index
    %c0_61 = arith.constant 0 : index
    %50 = vector.load %arg11[%c64, %c0_61] : memref<128x8xf32, #tpu.memory_space<vmem>>, vector<4x8xf32>
    tpu.vector_store %arg11[%c64, %c0_61], %49 {strides = array<i32>} : memref<128x8xf32, #tpu.memory_space<vmem>>, vector<4x8xf32>,
    %c0_62 = arith.constant 0 : index
    %c0_63 = arith.constant 0 : index
    %c8_64 = arith.constant 8 : index
    %51 = vector.load %arg4[%c0_62, %c0_63, %c8_64] : memref<1x4x23xf32, #tpu.memory_space<vmem>>, vector<1x4x8xf32>
    %52 = vector.shape_cast %51 : vector<1x4x8xf32> to vector<4x8xf32>
    %c68 = arith.constant 68 : index
    %c0_65 = arith.constant 0 : index
    %53 = vector.load %arg11[%c68, %c0_65] : memref<128x8xf32, #tpu.memory_space<vmem>>, vector<4x8xf32>
    tpu.vector_store %arg11[%c68, %c0_65], %52 {strides = array<i32>} : memref<128x8xf32, #tpu.memory_space<vmem>>, vector<4x8xf32>,
    %c0_66 = arith.constant 0 : index
    %c0_67 = arith.constant 0 : index
    %c9 = arith.constant 9 : index
    %54 = vector.load %arg3[%c0_66, %c0_67, %c9] : memref<1x4x23xf32, #tpu.memory_space<vmem>>, vector<1x4x8xf32>
    %55 = vector.shape_cast %54 : vector<1x4x8xf32> to vector<4x8xf32>
    %c72 = arith.constant 72 : index
    %c0_68 = arith.constant 0 : index
    %56 = vector.load %arg11[%c72, %c0_68] : memref<128x8xf32, #tpu.memory_space<vmem>>, vector<4x8xf32>
    tpu.vector_store %arg11[%c72, %c0_68], %55 {strides = array<i32>} : memref<128x8xf32, #tpu.memory_space<vmem>>, vector<4x8xf32>,
    %c0_69 = arith.constant 0 : index
    %c0_70 = arith.constant 0 : index
    %c9_71 = arith.constant 9 : index
    %57 = vector.load %arg4[%c0_69, %c0_70, %c9_71] : memref<1x4x23xf32, #tpu.memory_space<vmem>>, vector<1x4x8xf32>
    %58 = vector.shape_cast %57 : vector<1x4x8xf32> to vector<4x8xf32>
    %c76 = arith.constant 76 : index
    %c0_72 = arith.constant 0 : index
    %59 = vector.load %arg11[%c76, %c0_72] : memref<128x8xf32, #tpu.memory_space<vmem>>, vector<4x8xf32>
    tpu.vector_store %arg11[%c76, %c0_72], %58 {strides = array<i32>} : memref<128x8xf32, #tpu.memory_space<vmem>>, vector<4x8xf32>,
    %c0_73 = arith.constant 0 : index
    %c0_74 = arith.constant 0 : index
    %c10 = arith.constant 10 : index
    %60 = vector.load %arg3[%c0_73, %c0_74, %c10] : memref<1x4x23xf32, #tpu.memory_space<vmem>>, vector<1x4x8xf32>
    %61 = vector.shape_cast %60 : vector<1x4x8xf32> to vector<4x8xf32>
    %c80 = arith.constant 80 : index
    %c0_75 = arith.constant 0 : index
    %62 = vector.load %arg11[%c80, %c0_75] : memref<128x8xf32, #tpu.memory_space<vmem>>, vector<4x8xf32>
    tpu.vector_store %arg11[%c80, %c0_75], %61 {strides = array<i32>} : memref<128x8xf32, #tpu.memory_space<vmem>>, vector<4x8xf32>,
    %c0_76 = arith.constant 0 : index
    %c0_77 = arith.constant 0 : index
    %c10_78 = arith.constant 10 : index
    %63 = vector.load %arg4[%c0_76, %c0_77, %c10_78] : memref<1x4x23xf32, #tpu.memory_space<vmem>>, vector<1x4x8xf32>
    %64 = vector.shape_cast %63 : vector<1x4x8xf32> to vector<4x8xf32>
    %c84 = arith.constant 84 : index
    %c0_79 = arith.constant 0 : index
    %65 = vector.load %arg11[%c84, %c0_79] : memref<128x8xf32, #tpu.memory_space<vmem>>, vector<4x8xf32>
    tpu.vector_store %arg11[%c84, %c0_79], %64 {strides = array<i32>} : memref<128x8xf32, #tpu.memory_space<vmem>>, vector<4x8xf32>,
    %c0_80 = arith.constant 0 : index
    %c0_81 = arith.constant 0 : index
    %c11 = arith.constant 11 : index
    %66 = vector.load %arg3[%c0_80, %c0_81, %c11] : memref<1x4x23xf32, #tpu.memory_space<vmem>>, vector<1x4x8xf32>
    %67 = vector.shape_cast %66 : vector<1x4x8xf32> to vector<4x8xf32>
    %c88 = arith.constant 88 : index
    %c0_82 = arith.constant 0 : index
    %68 = vector.load %arg11[%c88, %c0_82] : memref<128x8xf32, #tpu.memory_space<vmem>>, vector<4x8xf32>
    tpu.vector_store %arg11[%c88, %c0_82], %67 {strides = array<i32>} : memref<128x8xf32, #tpu.memory_space<vmem>>, vector<4x8xf32>,
    %c0_83 = arith.constant 0 : index
    %c0_84 = arith.constant 0 : index
    %c11_85 = arith.constant 11 : index
    %69 = vector.load %arg4[%c0_83, %c0_84, %c11_85] : memref<1x4x23xf32, #tpu.memory_space<vmem>>, vector<1x4x8xf32>
    %70 = vector.shape_cast %69 : vector<1x4x8xf32> to vector<4x8xf32>
    %c92 = arith.constant 92 : index
    %c0_86 = arith.constant 0 : index
    %71 = vector.load %arg11[%c92, %c0_86] : memref<128x8xf32, #tpu.memory_space<vmem>>, vector<4x8xf32>
    tpu.vector_store %arg11[%c92, %c0_86], %70 {strides = array<i32>} : memref<128x8xf32, #tpu.memory_space<vmem>>, vector<4x8xf32>,
    %c0_87 = arith.constant 0 : index
    %c0_88 = arith.constant 0 : index
    %c12_89 = arith.constant 12 : index
    %72 = vector.load %arg3[%c0_87, %c0_88, %c12_89] : memref<1x4x23xf32, #tpu.memory_space<vmem>>, vector<1x4x8xf32>
    %73 = vector.shape_cast %72 : vector<1x4x8xf32> to vector<4x8xf32>
    %c96 = arith.constant 96 : index
    %c0_90 = arith.constant 0 : index
    %74 = vector.load %arg11[%c96, %c0_90] : memref<128x8xf32, #tpu.memory_space<vmem>>, vector<4x8xf32>
    tpu.vector_store %arg11[%c96, %c0_90], %73 {strides = array<i32>} : memref<128x8xf32, #tpu.memory_space<vmem>>, vector<4x8xf32>,
    %c0_91 = arith.constant 0 : index
    %c0_92 = arith.constant 0 : index
    %c12_93 = arith.constant 12 : index
    %75 = vector.load %arg4[%c0_91, %c0_92, %c12_93] : memref<1x4x23xf32, #tpu.memory_space<vmem>>, vector<1x4x8xf32>
    %76 = vector.shape_cast %75 : vector<1x4x8xf32> to vector<4x8xf32>
    %c100 = arith.constant 100 : index
    %c0_94 = arith.constant 0 : index
    %77 = vector.load %arg11[%c100, %c0_94] : memref<128x8xf32, #tpu.memory_space<vmem>>, vector<4x8xf32>
    tpu.vector_store %arg11[%c100, %c0_94], %76 {strides = array<i32>} : memref<128x8xf32, #tpu.memory_space<vmem>>, vector<4x8xf32>,
    %c0_95 = arith.constant 0 : index
    %c0_96 = arith.constant 0 : index
    %c13 = arith.constant 13 : index
    %78 = vector.load %arg3[%c0_95, %c0_96, %c13] : memref<1x4x23xf32, #tpu.memory_space<vmem>>, vector<1x4x8xf32>
    %79 = vector.shape_cast %78 : vector<1x4x8xf32> to vector<4x8xf32>
    %c104 = arith.constant 104 : index
    %c0_97 = arith.constant 0 : index
    %80 = vector.load %arg11[%c104, %c0_97] : memref<128x8xf32, #tpu.memory_space<vmem>>, vector<4x8xf32>
    tpu.vector_store %arg11[%c104, %c0_97], %79 {strides = array<i32>} : memref<128x8xf32, #tpu.memory_space<vmem>>, vector<4x8xf32>,
    %c0_98 = arith.constant 0 : index
    %c0_99 = arith.constant 0 : index
    %c13_100 = arith.constant 13 : index
    %81 = vector.load %arg4[%c0_98, %c0_99, %c13_100] : memref<1x4x23xf32, #tpu.memory_space<vmem>>, vector<1x4x8xf32>
    %82 = vector.shape_cast %81 : vector<1x4x8xf32> to vector<4x8xf32>
    %c108 = arith.constant 108 : index
    %c0_101 = arith.constant 0 : index
    %83 = vector.load %arg11[%c108, %c0_101] : memref<128x8xf32, #tpu.memory_space<vmem>>, vector<4x8xf32>
    tpu.vector_store %arg11[%c108, %c0_101], %82 {strides = array<i32>} : memref<128x8xf32, #tpu.memory_space<vmem>>, vector<4x8xf32>,
    %c0_102 = arith.constant 0 : index
    %c0_103 = arith.constant 0 : index
    %c14 = arith.constant 14 : index
    %84 = vector.load %arg3[%c0_102, %c0_103, %c14] : memref<1x4x23xf32, #tpu.memory_space<vmem>>, vector<1x4x8xf32>
    %85 = vector.shape_cast %84 : vector<1x4x8xf32> to vector<4x8xf32>
    %c112 = arith.constant 112 : index
    %c0_104 = arith.constant 0 : index
    %86 = vector.load %arg11[%c112, %c0_104] : memref<128x8xf32, #tpu.memory_space<vmem>>, vector<4x8xf32>
    tpu.vector_store %arg11[%c112, %c0_104], %85 {strides = array<i32>} : memref<128x8xf32, #tpu.memory_space<vmem>>, vector<4x8xf32>,
    %c0_105 = arith.constant 0 : index
    %c0_106 = arith.constant 0 : index
    %c14_107 = arith.constant 14 : index
    %87 = vector.load %arg4[%c0_105, %c0_106, %c14_107] : memref<1x4x23xf32, #tpu.memory_space<vmem>>, vector<1x4x8xf32>
    %88 = vector.shape_cast %87 : vector<1x4x8xf32> to vector<4x8xf32>
    %c116 = arith.constant 116 : index
    %c0_108 = arith.constant 0 : index
    %89 = vector.load %arg11[%c116, %c0_108] : memref<128x8xf32, #tpu.memory_space<vmem>>, vector<4x8xf32>
    tpu.vector_store %arg11[%c116, %c0_108], %88 {strides = array<i32>} : memref<128x8xf32, #tpu.memory_space<vmem>>, vector<4x8xf32>,
    %c0_109 = arith.constant 0 : index
    %c0_110 = arith.constant 0 : index
    %c15 = arith.constant 15 : index
    %90 = vector.load %arg3[%c0_109, %c0_110, %c15] : memref<1x4x23xf32, #tpu.memory_space<vmem>>, vector<1x4x8xf32>
    %91 = vector.shape_cast %90 : vector<1x4x8xf32> to vector<4x8xf32>
    %c120 = arith.constant 120 : index
    %c0_111 = arith.constant 0 : index
    %92 = vector.load %arg11[%c120, %c0_111] : memref<128x8xf32, #tpu.memory_space<vmem>>, vector<4x8xf32>
    tpu.vector_store %arg11[%c120, %c0_111], %91 {strides = array<i32>} : memref<128x8xf32, #tpu.memory_space<vmem>>, vector<4x8xf32>,
    %c0_112 = arith.constant 0 : index
    %c0_113 = arith.constant 0 : index
    %c15_114 = arith.constant 15 : index
    %93 = vector.load %arg4[%c0_112, %c0_113, %c15_114] : memref<1x4x23xf32, #tpu.memory_space<vmem>>, vector<1x4x8xf32>
    %94 = vector.shape_cast %93 : vector<1x4x8xf32> to vector<4x8xf32>
    %c124 = arith.constant 124 : index
    %c0_115 = arith.constant 0 : index
    %95 = vector.load %arg11[%c124, %c0_115] : memref<128x8xf32, #tpu.memory_space<vmem>>, vector<4x8xf32>
    tpu.vector_store %arg11[%c124, %c0_115], %94 {strides = array<i32>} : memref<128x8xf32, #tpu.memory_space<vmem>>, vector<4x8xf32>,
    %c0_116 = arith.constant 0 : index
    %c0_117 = arith.constant 0 : index
    %96 = vector.load %arg5[%c0_116, %c0_117] : memref<1x128xf32, #tpu.memory_space<vmem>>, vector<1x128xf32>
    %c0_118 = arith.constant 0 : index
    %c0_119 = arith.constant 0 : index
    %97 = vector.load %arg11[%c0_118, %c0_119] : memref<128x8xf32, #tpu.memory_space<vmem>>, vector<128x8xf32>
    %cst = arith.constant dense<0.000000e+00> : vector<1x8xf32>
    %98 = tpu.matmul %96, %97, %cst {dimension_numbers = #tpu.dot_dimension_numbers<[1], [0], [0], [1], [0, 0, 1, 1], [], []>} : vector<1x128xf32>, vector<128x8xf32>, vector<1x8xf32> -> vector<1x8xf32>
    %c0_120 = arith.constant 0 : index
    %c0_121 = arith.constant 0 : index
    %99 = vector.load %arg6[%c0_120, %c0_121] : memref<1x128xf32, #tpu.memory_space<vmem>>, vector<1x128xf32>
    %c0_122 = arith.constant 0 : index
    %c0_123 = arith.constant 0 : index
    %100 = vector.load %arg11[%c0_122, %c0_123] : memref<128x8xf32, #tpu.memory_space<vmem>>, vector<128x8xf32>
    %cst_124 = arith.constant dense<0.000000e+00> : vector<1x8xf32>
    %101 = tpu.matmul %99, %100, %cst_124 {dimension_numbers = #tpu.dot_dimension_numbers<[1], [0], [0], [1], [0, 0, 1, 1], [], []>} : vector<1x128xf32>, vector<128x8xf32>, vector<1x8xf32> -> vector<1x8xf32>
    %c0_125 = arith.constant 0 : index
    %c0_126 = arith.constant 0 : index
    %102 = vector.load %arg7[%c0_125, %c0_126] : memref<1x1xf32, #tpu.memory_space<vmem>>, vector<1x1xf32>
    %c0_127 = arith.constant 0 : index
    %103 = memref.load %arg8[%c0_127] : memref<1xf32, #tpu.memory_space<smem>>
    %104 = vector.broadcast %102 : vector<1x1xf32> to vector<1x8xf32>
    %105 = arith.addf %98, %104 : vector<1x8xf32>
    %106 = vector.broadcast %102 : vector<1x1xf32> to vector<1x8xf32>
    %107 = arith.addf %101, %106 : vector<1x8xf32>
    %cst_128 = arith.constant 0.000000e+00 : f32
    %108 = vector.broadcast %cst_128 : f32 to vector<1x8xf32>
    %109 = arith.cmpf ogt, %105, %108 : vector<1x8xf32>
    %110 = vector.broadcast %103 : f32 to vector<1x8xf32>
    %111 = arith.mulf %110, %105 : vector<1x8xf32>
    %112 = arith.select %109, %105, %111 : vector<1x8xi1>, vector<1x8xf32>
    %c0_129 = arith.constant 0 : index
    %c0_130 = arith.constant 0 : index
    %c0_131 = arith.constant 0 : index
    %113 = vector.load %arg9[%c0_129, %c0_130, %c0_131] : memref<1x1x8xf32, #tpu.memory_space<vmem>>, vector<1x1x8xf32>
    %114 = vector.shape_cast %113 : vector<1x1x8xf32> to vector<1x8xf32>
    %115 = vector.shape_cast %112 : vector<1x8xf32> to vector<1x1x8xf32>
    tpu.vector_store %arg9[%c0_129, %c0_130, %c0_131], %115 {strides = array<i32>} : memref<1x1x8xf32, #tpu.memory_space<vmem>>, vector<1x1x8xf32>,
    %cst_132 = arith.constant 0.000000e+00 : f32
    %116 = vector.broadcast %cst_132 : f32 to vector<1x8xf32>
    %117 = arith.cmpf ogt, %107, %116 : vector<1x8xf32>
    %118 = vector.broadcast %103 : f32 to vector<1x8xf32>
    %119 = arith.mulf %118, %107 : vector<1x8xf32>
    %120 = arith.select %117, %107, %119 : vector<1x8xi1>, vector<1x8xf32>
    %c0_133 = arith.constant 0 : index
    %c0_134 = arith.constant 0 : index
    %c0_135 = arith.constant 0 : index
    %121 = vector.load %arg10[%c0_133, %c0_134, %c0_135] : memref<1x1x8xf32, #tpu.memory_space<vmem>>, vector<1x1x8xf32>
    %122 = vector.shape_cast %121 : vector<1x1x8xf32> to vector<1x8xf32>
    %123 = vector.shape_cast %120 : vector<1x8xf32> to vector<1x1x8xf32>
    tpu.vector_store %arg10[%c0_133, %c0_134, %c0_135], %123 {strides = array<i32>} : memref<1x1x8xf32, #tpu.memory_space<vmem>>, vector<1x1x8xf32>,
    return
  }
  func.func @transform_0(%arg0: i32, %arg1: i32, %arg2: i32) -> (i32, i32, i32) {
    %c0_i32 = arith.constant 0 : i32
    %c0_i32_0 = arith.constant 0 : i32
    %c0_i32_1 = arith.constant 0 : i32
    return %arg1, %c0_i32, %c0_i32_0 : i32, i32, i32
  }
  func.func @transform_1(%arg0: i32, %arg1: i32, %arg2: i32) -> (i32, i32, i32) {
    %c0_i32 = arith.constant 0 : i32
    %c0_i32_0 = arith.constant 0 : i32
    %c0_i32_1 = arith.constant 0 : i32
    return %arg1, %c0_i32, %c0_i32_0 : i32, i32, i32
  }
  func.func @transform_2(%arg0: i32, %arg1: i32, %arg2: i32) -> (i32, i32) {
    %c0_i32 = arith.constant 0 : i32
    %c0_i32_0 = arith.constant 0 : i32
    return %arg0, %c0_i32 : i32, i32
  }
  func.func @transform_3(%arg0: i32, %arg1: i32, %arg2: i32) -> (i32, i32) {
    %c0_i32 = arith.constant 0 : i32
    %c0_i32_0 = arith.constant 0 : i32
    return %arg0, %c0_i32 : i32, i32
  }
  func.func @transform_4(%arg0: i32, %arg1: i32, %arg2: i32) -> (i32, i32) {
    %c0_i32 = arith.constant 0 : i32
    %c0_i32_0 = arith.constant 0 : i32
    return %arg0, %c0_i32 : i32, i32
  }
  func.func @transform_5(%arg0: i32, %arg1: i32, %arg2: i32) -> i32 {
    %c0_i32 = arith.constant 0 : i32
    %c0_i32_0 = arith.constant 0 : i32
    return %c0_i32 : i32
  }
  func.func @transform_6(%arg0: i32, %arg1: i32, %arg2: i32) -> (i32, i32, i32) {
    %c0_i32 = arith.constant 0 : i32
    return %arg1, %arg0, %arg2 : i32, i32, i32
  }
  func.func @transform_7(%arg0: i32, %arg1: i32, %arg2: i32) -> (i32, i32, i32) {
    %c0_i32 = arith.constant 0 : i32
    return %arg1, %arg0, %arg2 : i32, i32, i32
  }
}

</mosaic_0001>

<bundles_post_ra>
// kernel: segan_generator_forward.8
= control target key start
LH: loop header
LB: loop body
LE: loop exit
PB: predicated region body
PF: predicated region fallthrough
CT: control target
= control target key end

     0   :  { %s991_s20 = smov 0   ;;  %s993_s21 = smov 0   ;;  %s1120_s0 = inlined_call_operand.vmem [shape: f32[2,8,17], index: 0, kind: input, shape index: {}]   ;;  %s1121_s1 = inlined_call_operand.vmem [shape: f32[2,8,17], index: 1, kind: input, shape index: {}]   ;;  %s1122_s2 = inlined_call_operand.vmem [shape: f32[16,248], index: 2, kind: input, shape index: {}]   ;;  %s1123_s3 = inlined_call_operand.vmem [shape: f32[16,1], index: 3, kind: input, shape index: {}]   ;;  %s1124_s4 = inlined_call_operand.<no memory space> [shape: f32[1], index: 4, kind: input, shape index: {}]   ;;  %s1125_s5 = inlined_call_operand.vmem [shape: f32[2,16,2], index: 5, kind: output, shape index: {}]  }
   0x1   :  { %10 = sst [smem:[#allocation3]] %s1124_s4  ;;  %s995_s22 = smov 0  }
   0x2 LB: > { %s31_s4 = sadd.s32 1, %s934_s21  ;;  %p785_p0 = scmp.ge.s32.totalorder %s938_s22, 1  ;;  %s938_s22 = sphi %s995_s22, %s16_s22   ;;  %s934_s21 = sphi %s993_s21, %s1127_s21   ;;  %s930_s20 = sphi %s991_s20, %s1126_s20  }
   0x3   : > { %p33_p1 = scmp.ge.s32.totalorder %s31_s4, 2  ;;  %p242_p2 = scmp.lt.s32.totalorder %s938_s22, 3 }
   0x5   : > { %s1129_s4 = smov (%p33_p1, %s31_s4), 0  ;;  %p243_p3 = pnand %p785_p0, %p242_p2 }
   0x6   : > { %p291_p4 = scmp.lt.s32.totalorder (!%p243_p3), %s930_s20, 1  ;;  %v940_v0 = vmov (!%p243_p3), 0.0|0.0   ;;  %vm326_vm0 = vcmask (!%p243_p3), 15360   ;;  %s941_s27 = smov (!%p243_p3), 127   ;;  %v505_v3 = vld [vmem:[%s1122_s2 + $0x8] sm:$0xff] (!%p243_p3)  ;;  %vm551_vm1 = vcmask (!%p243_p3), 982016  }
   0x7   : > { %246 = sbr.rel (%p243_p3) target bundleno = 422 (0x1a6), region = 40  ;;  %795 = vmatprep.subr.bf16.mxu0 (!%p243_p3), %v940_v0  ;;  %840 = vmatprep.subr.bf16.mxu1 (!%p243_p3), %v940_v0  ;;  %s942_s28 = smov (!%p243_p3), 125   ;;  %v507_v4 = vld [vmem:[%s1122_s2 + $0x18] sm:$0xff] (!%p243_p3)  ;;  %v539_v5 = vld [vmem:[%s1123_s3] sm:$0xff] (!%p243_p3)  ;;  %v540_v6 = vld [vmem:[%s1123_s3 + $0x8] sm:$0xff] (!%p243_p3)  ;;  %v956_v7 = vmov (!%p243_p3), 0  }
   0x8   : > { %s943_s7 = smov (!%p243_p3), 126   ;;  %s944_s8 = smov (!%p243_p3), 124   ;;  %790 = vmatprep.mubr.msk.f32.mxu0 (!%p243_p3), %vm551_vm1, %v505_v3  ;;  %791 = vmatprep.mubr.msk.f32.mxu1 (!%p243_p3), %vm551_vm1, %v507_v4 }
   0x9   : > { %s945_s9 = smov (!%p243_p3), 123   ;;  %s946_s10 = smov (!%p243_p3), 122   ;;  %915 = vset.pattern.permute.xlu0 (!%p243_p3), %v956_v7  ;;  %914 = vset.pattern.permute.xlu1 (!%p243_p3), %v956_v7 }
   0xa   : > { %s947_s11 = smov (!%p243_p3), 121   ;;  %s948_s12 = smov (!%p243_p3), 120  }
   0xb   : > { %s949_s13 = smov (!%p243_p3), 119   ;;  %s950_s14 = smov (!%p243_p3), 118  }
   0xc   : > { %s951_s15 = smov (!%p243_p3), 117   ;;  %s952_s16 = smov (!%p243_p3), 116  }
   0xd   : > { %s953_s17 = smov (!%p243_p3), 115   ;;  %s954_s18 = smov (!%p243_p3), 114  }
   0xe   : > { %s1131_s20 = smov (!%p291_p4, %s930_s20), 1  ;;  %s955_s19 = smov 113  }
   0xf   : > { %s786_s23 = sshll.u32 %s1131_s20, 3 }
  0x10   : > { %s294_s26 = scalar_lea.vmem %s1120_s0, %s786_s23  ;;  %s298_s6 = scalar_lea.vmem %s1121_s1, %s786_s23 }
  0x11   : > { %v328_v1 = vld [vmem:[%s294_s26] sm:$0xff] }
  0x12   : > { %330 = vrot.lane.b32.xlu0 %v328_v1, %s941_s27  ;;  %342 = vrot.lane.b32.xlu1 %v328_v1, %s942_s28  ;;  %327 = vst.msk [vmem:[#allocation2] sm:$0xff] %vm326_vm0, %v328_v1  ;;  %v420_v2 = vld [vmem:[%s298_s6] sm:$0xff] }
  0x13   : > { %419 = vst.msk [vmem:[#allocation2 + $0x80] sm:$0xff] %vm326_vm0, %v420_v2 }
  0x16   : > { %336 = vrot.lane.b32.xlu0 %v328_v1, %s943_s7  ;;  %348 = vrot.lane.b32.xlu1 %v328_v1, %s944_s8 }
  0x19   : > { %v508_v12 = vld [vmem:[#allocation2] sm:$0xff] }
  0x1a   : > { %354 = vrot.lane.b32.xlu0 %v328_v1, %s945_s9  ;;  %360 = vrot.lane.b32.xlu1 %v328_v1, %s946_s10  ;;  %v524_v51 = vld [vmem:[#allocation2 + $0x80] sm:$0xff] }
  0x1e   : > { %366 = vrot.lane.b32.xlu0 %v328_v1, %s947_s11  ;;  %372 = vrot.lane.b32.xlu1 %v328_v1, %s948_s12 }
  0x22   : > { %378 = vrot.lane.b32.xlu0 %v328_v1, %s949_s13  ;;  %384 = vrot.lane.b32.xlu1 %v328_v1, %s950_s14 }
  0x26   : > { %390 = vrot.lane.b32.xlu0 %v328_v1, %s951_s15  ;;  %396 = vrot.lane.b32.xlu1 %v328_v1, %s952_s16 }
  0x2a   : > { %402 = vrot.lane.b32.xlu0 %v328_v1, %s953_s17  ;;  %408 = vrot.lane.b32.xlu1 %v328_v1, %s954_s18 }
  0x2e   : > { %414 = vrot.lane.b32.xlu0 %v328_v1, %s955_s19  ;;  %422 = vrot.lane.b32.xlu1 %v420_v2, %s941_s27 }
  0x32   : > { %434 = vrot.lane.b32.xlu1 %v420_v2, %s942_s28  ;;  %428 = vrot.lane.b32.xlu0 %v420_v2, %s943_s7 }
  0x36   : > { %446 = vrot.lane.b32.xlu1 %v420_v2, %s945_s9  ;;  %440 = vrot.lane.b32.xlu0 %v420_v2, %s944_s8 }
  0x3a   : > { %458 = vrot.lane.b32.xlu1 %v420_v2, %s947_s11  ;;  %452 = vrot.lane.b32.xlu0 %v420_v2, %s946_s10  ;;  %s633_s10 = sld [smem:[#allocation3]]  ;;  %s794_s11 = sshll.u32 %s1131_s20, 4 }
  0x3e   : > { %470 = vrot.lane.b32.xlu1 %v420_v2, %s949_s13  ;;  %464 = vrot.lane.b32.xlu0 %v420_v2, %s948_s12 }
  0x42   : > { %482 = vrot.lane.b32.xlu1 %v420_v2, %s951_s15  ;;  %476 = vrot.lane.b32.xlu0 %v420_v2, %s950_s14  ;;  %s323_s14 = scalar_lea.vmem %s1125_s5, %s794_s11 }
  0x46   : > { %494 = vrot.lane.b32.xlu1 %v420_v2, %s953_s17  ;;  %488 = vrot.lane.b32.xlu0 %v420_v2, %s952_s16 }
  0x4a   : > { %500 = vrot.lane.b32.xlu0 %v420_v2, %s954_s18  ;;  %543 = vperm.xlu1 %914, %v539_v5  }
  0x4e   : > { %548 = vperm.xlu0 %915, %v540_v6  }
  0x84   : > { %v331_v8 = vpop.permute.xlu0 %330  ;;  %v343_v9 = vpop.permute.xlu1 %342 }
  0x85   : > { %333 = vst.msk [vmem:[#allocation2 + $0x8] sm:$0xff] %vm326_vm0, %v331_v8  ;;  %345 = vst.msk [vmem:[#allocation2 + $0x18] sm:$0xff] %vm326_vm0, %v343_v9 }
  0x88   : > { %v337_v10 = vpop.permute.xlu0 %336  ;;  %v349_v11 = vpop.permute.xlu1 %348 }
  0x89   : > { %339 = vst.msk [vmem:[#allocation2 + $0x10] sm:$0xff] %vm326_vm0, %v337_v10  ;;  %351 = vst.msk [vmem:[#allocation2 + $0x20] sm:$0xff] %vm326_vm0, %v349_v11 }
  0x8c   : > { %v355_v13 = vpop.permute.xlu0 %354  ;;  %v509_v14 = vld [vmem:[#allocation2 + $0x8] sm:$0xff]  ;;  %v361_v15 = vpop.permute.xlu1 %360  ;;  %v511_v17 = vld [vmem:[#allocation2 + $0x18] sm:$0xff] }
  0x8d   : > { %357 = vst.msk [vmem:[#allocation2 + $0x28] sm:$0xff] %vm326_vm0, %v355_v13  ;;  %v796_v16 = vpack.c.bf16 %v509_v14, %v508_v12  ;;  %363 = vst.msk [vmem:[#allocation2 + $0x30] sm:$0xff] %vm326_vm0, %v361_v15 }
  0x8f   : > { %797 = vmatpush1.bf16.msra.mxu0 %v796_v16  ;;  %856 = vmatpush1.bf16.msra.mxu1 %v796_v16 }
  0x90   : > { %v367_v18 = vpop.permute.xlu0 %366  ;;  %798 = vmatprep.subr.bf16.mxu0 %v940_v0  ;;  %841 = vmatprep.subr.bf16.mxu1 %v940_v0  ;;  %v510_v19 = vld [vmem:[#allocation2 + $0x10] sm:$0xff]  ;;  %v373_v20 = vpop.permute.xlu1 %372  ;;  %v512_v22 = vld [vmem:[#allocation2 + $0x20] sm:$0xff] }
  0x91   : > { %369 = vst.msk [vmem:[#allocation2 + $0x38] sm:$0xff] %vm326_vm0, %v367_v18  ;;  %v799_v21 = vpack.c.bf16 %v511_v17, %v510_v19  ;;  %375 = vst.msk [vmem:[#allocation2 + $0x40] sm:$0xff] %vm326_vm0, %v373_v20  ;;  %v957_v19 = vmov 0.0  }
  0x93   : > { %800 = vmatpush1.bf16.msra.mxu0 %v799_v21  ;;  %857 = vmatpush1.bf16.msra.mxu1 %v799_v21  ;;  %v504_v21 = vld [vmem:[%s1122_s2] sm:$0xff] }
  0x94   : > { %v379_v23 = vpop.permute.xlu0 %378  ;;  %801 = vmatprep.subr.bf16.mxu0 %v940_v0  ;;  %842 = vmatprep.subr.bf16.mxu1 %v940_v0  ;;  %v513_v24 = vld [vmem:[#allocation2 + $0x28] sm:$0xff]  ;;  %v385_v25 = vpop.permute.xlu1 %384  ;;  %v514_v27 = vld [vmem:[#allocation2 + $0x30] sm:$0xff] }
  0x95   : > { %381 = vst.msk [vmem:[#allocation2 + $0x48] sm:$0xff] %vm326_vm0, %v379_v23  ;;  %v802_v26 = vpack.c.bf16 %v513_v24, %v512_v22  ;;  %387 = vst.msk [vmem:[#allocation2 + $0x50] sm:$0xff] %vm326_vm0, %v385_v25  ;;  %v506_v22 = vld [vmem:[%s1122_s2 + $0x10] sm:$0xff]  ;;  %v636_v25 = vstv %s633_s10 }
  0x97   : > { %803 = vmatpush1.bf16.msra.mxu0 %v802_v26  ;;  %858 = vmatpush1.bf16.msra.mxu1 %v802_v26 }
  0x98   : > { %v391_v28 = vpop.permute.xlu0 %390  ;;  %804 = vmatprep.subr.bf16.mxu0 %v940_v0  ;;  %843 = vmatprep.subr.bf16.mxu1 %v940_v0  ;;  %v515_v29 = vld [vmem:[#allocation2 + $0x38] sm:$0xff]  ;;  %v397_v30 = vpop.permute.xlu1 %396  ;;  %v516_v32 = vld [vmem:[#allocation2 + $0x40] sm:$0xff] }
  0x99   : > { %393 = vst.msk [vmem:[#allocation2 + $0x58] sm:$0xff] %vm326_vm0, %v391_v28  ;;  %v805_v31 = vpack.c.bf16 %v515_v29, %v514_v27  ;;  %399 = vst.msk [vmem:[#allocation2 + $0x60] sm:$0xff] %vm326_vm0, %v397_v30 }
  0x9b   : > { %806 = vmatpush1.bf16.msra.mxu0 %v805_v31  ;;  %859 = vmatpush1.bf16.msra.mxu1 %v805_v31 }
  0x9c   : > { %v403_v33 = vpop.permute.xlu0 %402  ;;  %807 = vmatprep.subr.bf16.mxu0 %v940_v0  ;;  %844 = vmatprep.subr.bf16.mxu1 %v940_v0  ;;  %v517_v34 = vld [vmem:[#allocation2 + $0x48] sm:$0xff]  ;;  %v409_v35 = vpop.permute.xlu1 %408  ;;  %v518_v37 = vld [vmem:[#allocation2 + $0x50] sm:$0xff] }
  0x9d   : > { %405 = vst.msk [vmem:[#allocation2 + $0x68] sm:$0xff] %vm326_vm0, %v403_v33  ;;  %v808_v36 = vpack.c.bf16 %v517_v34, %v516_v32  ;;  %411 = vst.msk [vmem:[#allocation2 + $0x70] sm:$0xff] %vm326_vm0, %v409_v35 }
  0x9f   : > { %809 = vmatpush1.bf16.msra.mxu0 %v808_v36  ;;  %860 = vmatpush1.bf16.msra.mxu1 %v808_v36 }
  0xa0   : > { %v415_v38 = vpop.permute.xlu0 %414  ;;  %810 = vmatprep.subr.bf16.mxu0 %v940_v0  ;;  %845 = vmatprep.subr.bf16.mxu1 %v940_v0  ;;  %v519_v39 = vld [vmem:[#allocation2 + $0x58] sm:$0xff]  ;;  %v423_v40 = vpop.permute.xlu1 %422  ;;  %v520_v42 = vld [vmem:[#allocation2 + $0x60] sm:$0xff] }
  0xa1   : > { %417 = vst.msk [vmem:[#allocation2 + $0x78] sm:$0xff] %vm326_vm0, %v415_v38  ;;  %v811_v41 = vpack.c.bf16 %v519_v39, %v518_v37  ;;  %425 = vst.msk [vmem:[#allocation2 + $0x88] sm:$0xff] %vm326_vm0, %v423_v40 }
  0xa3   : > { %812 = vmatpush1.bf16.msra.mxu0 %v811_v41  ;;  %861 = vmatpush1.bf16.msra.mxu1 %v811_v41 }
  0xa4   : > { %813 = vmatprep.subr.bf16.mxu0 %v940_v0  ;;  %846 = vmatprep.subr.bf16.mxu1 %v940_v0  ;;  %v521_v43 = vld [vmem:[#allocation2 + $0x68] sm:$0xff]  ;;  %v435_v44 = vpop.permute.xlu1 %434  ;;  %v429_v45 = vpop.permute.xlu0 %428  ;;  %v522_v47 = vld [vmem:[#allocation2 + $0x70] sm:$0xff] }
  0xa5   : > { %v814_v46 = vpack.c.bf16 %v521_v43, %v520_v42  ;;  %437 = vst.msk [vmem:[#allocation2 + $0x98] sm:$0xff] %vm326_vm0, %v435_v44  ;;  %431 = vst.msk [vmem:[#allocation2 + $0x90] sm:$0xff] %vm326_vm0, %v429_v45 }
  0xa7   : > { %815 = vmatpush1.bf16.msra.mxu0 %v814_v46  ;;  %862 = vmatpush1.bf16.msra.mxu1 %v814_v46 }
  0xa8   : > { %816 = vmatprep.subr.bf16.mxu0 %v940_v0  ;;  %847 = vmatprep.subr.bf16.mxu1 %v940_v0  ;;  %v523_v48 = vld [vmem:[#allocation2 + $0x78] sm:$0xff]  ;;  %v447_v49 = vpop.permute.xlu1 %446  ;;  %v441_v50 = vpop.permute.xlu0 %440  ;;  %v525_v52 = vld [vmem:[#allocation2 + $0x88] sm:$0xff] }
  0xa9   : > { %v817_v53 = vpack.c.bf16 %v523_v48, %v522_v47  ;;  %449 = vst.msk [vmem:[#allocation2 + $0xa8] sm:$0xff] %vm326_vm0, %v447_v49  ;;  %443 = vst.msk [vmem:[#allocation2 + $0xa0] sm:$0xff] %vm326_vm0, %v441_v50  ;;  %v820_v54 = vpack.c.bf16 %v525_v52, %v524_v51 }
  0xab   : > { %818 = vmatpush1.bf16.msra.mxu0 %v817_v53  ;;  %863 = vmatpush1.bf16.msra.mxu1 %v817_v53 }
  0xac   : > { %819 = vmatprep.subr.bf16.mxu0 %v940_v0  ;;  %848 = vmatprep.subr.bf16.mxu1 %v940_v0  ;;  %v459_v55 = vpop.permute.xlu1 %458  ;;  %v453_v56 = vpop.permute.xlu0 %452  ;;  %v526_v57 = vld [vmem:[#allocation2 + $0x90] sm:$0xff]  ;;  %v527_v58 = vld [vmem:[#allocation2 + $0x98] sm:$0xff] }
  0xad   : > { %461 = vst.msk [vmem:[#allocation2 + $0xb8] sm:$0xff] %vm326_vm0, %v459_v55  ;;  %455 = vst.msk [vmem:[#allocation2 + $0xb0] sm:$0xff] %vm326_vm0, %v453_v56  ;;  %v823_v59 = vpack.c.bf16 %v527_v58, %v526_v57 }
  0xaf   : > { %821 = vmatpush1.bf16.msra.mxu0 %v820_v54  ;;  %864 = vmatpush1.bf16.msra.mxu1 %v820_v54 }
  0xb0   : > { %822 = vmatprep.subr.bf16.mxu0 %v940_v0  ;;  %849 = vmatprep.subr.bf16.mxu1 %v940_v0  ;;  %v471_v60 = vpop.permute.xlu1 %470  ;;  %v465_v61 = vpop.permute.xlu0 %464  ;;  %v528_v62 = vld [vmem:[#allocation2 + $0xa0] sm:$0xff]  ;;  %v529_v63 = vld [vmem:[#allocation2 + $0xa8] sm:$0xff] }
  0xb1   : > { %473 = vst.msk [vmem:[#allocation2 + $0xc8] sm:$0xff] %vm326_vm0, %v471_v60  ;;  %467 = vst.msk [vmem:[#allocation2 + $0xc0] sm:$0xff] %vm326_vm0, %v465_v61  ;;  %v826_v1 = vpack.c.bf16 %v529_v63, %v528_v62 }
  0xb3   : > { %824 = vmatpush1.bf16.msra.mxu0 %v823_v59  ;;  %865 = vmatpush1.bf16.msra.mxu1 %v823_v59 }
  0xb4   : > { %825 = vmatprep.subr.bf16.mxu0 %v940_v0  ;;  %850 = vmatprep.subr.bf16.mxu1 %v940_v0  ;;  %v483_v2 = vpop.permute.xlu1 %482  ;;  %v477_v3 = vpop.permute.xlu0 %476  ;;  %v530_v4 = vld [vmem:[#allocation2 + $0xb0] sm:$0xff]  ;;  %v531_v5 = vld [vmem:[#allocation2 + $0xb8] sm:$0xff] }
  0xb5   : > { %485 = vst.msk [vmem:[#allocation2 + $0xd8] sm:$0xff] %vm326_vm0, %v483_v2  ;;  %479 = vst.msk [vmem:[#allocation2 + $0xd0] sm:$0xff] %vm326_vm0, %v477_v3  ;;  %v829_v6 = vpack.c.bf16 %v531_v5, %v530_v4 }
  0xb7   : > { %827 = vmatpush1.bf16.msra.mxu0 %v826_v1  ;;  %866 = vmatpush1.bf16.msra.mxu1 %v826_v1 }
  0xb8   : > { %828 = vmatprep.subr.bf16.mxu0 %v940_v0  ;;  %851 = vmatprep.subr.bf16.mxu1 %v940_v0  ;;  %v495_v7 = vpop.permute.xlu1 %494  ;;  %v489_v8 = vpop.permute.xlu0 %488  ;;  %v532_v9 = vld [vmem:[#allocation2 + $0xc0] sm:$0xff]  ;;  %v533_v10 = vld [vmem:[#allocation2 + $0xc8] sm:$0xff] }
  0xb9   : > { %497 = vst.msk [vmem:[#allocation2 + $0xe8] sm:$0xff] %vm326_vm0, %v495_v7  ;;  %491 = vst.msk [vmem:[#allocation2 + $0xe0] sm:$0xff] %vm326_vm0, %v489_v8  ;;  %v832_v11 = vpack.c.bf16 %v533_v10, %v532_v9 }
  0xbb   : > { %830 = vmatpush1.bf16.msra.mxu0 %v829_v6  ;;  %867 = vmatpush1.bf16.msra.mxu1 %v829_v6 }
  0xbc   : > { %831 = vmatprep.subr.bf16.mxu0 %v940_v0  ;;  %852 = vmatprep.subr.bf16.mxu1 %v940_v0  ;;  %v501_v12 = vpop.permute.xlu0 %500  ;;  %v534_v13 = vld [vmem:[#allocation2 + $0xd0] sm:$0xff]  ;;  %v535_v14 = vld [vmem:[#allocation2 + $0xd8] sm:$0xff] }
  0xbd   : > { %503 = vst.msk [vmem:[#allocation2 + $0xf0] sm:$0xff] %vm326_vm0, %v501_v12  ;;  %v835_v15 = vpack.c.bf16 %v535_v14, %v534_v13 }
  0xbf   : > { %833 = vmatpush1.bf16.msra.mxu0 %v832_v11  ;;  %868 = vmatpush1.bf16.msra.mxu1 %v832_v11 }
  0xc0   : > { %834 = vmatprep.subr.bf16.mxu0 %v940_v0  ;;  %853 = vmatprep.subr.bf16.mxu1 %v940_v0  ;;  %v536_v16 = vld [vmem:[#allocation2 + $0xe0] sm:$0xff]  ;;  %v537_v17 = vld [vmem:[#allocation2 + $0xe8] sm:$0xff] }
  0xc1   : > { %v838_v18 = vpack.c.bf16 %v537_v17, %v536_v16 }
  0xc3   : > { %836 = vmatpush1.bf16.msra.mxu0 %v835_v15  ;;  %869 = vmatpush1.bf16.msra.mxu1 %v835_v15 }
  0xc4   : > { %837 = vmatprep.subr.bf16.mxu0 %v940_v0  ;;  %854 = vmatprep.subr.bf16.mxu1 %v940_v0  ;;  %v538_v20 = vld [vmem:[#allocation2 + $0xf0] sm:$0xff] }
  0xc7   : > { %839 = vmatpush1.bf16.msra.mxu0 %v838_v18  ;;  %870 = vmatpush1.bf16.msra.mxu1 %v838_v18 }
  0xc8   : > { %618 = vmatprep.subr.mxu0 %v957_v19  ;;  %855 = vmatprep.subr.mxu1 %v957_v19 }
  0xc9   : > { %v544_v0 = vpop.permute.xlu1 %543 }
  0xcb   : > { %619 = vmatpush1.msra.mxu0 %v538_v20  ;;  %871 = vmatpush1.msra.mxu1 %v538_v20 }
  0xcc   : > { %623 = vmatmul.mubr.f32.vlgmr.msra.gmra.mrb[0].mxu0 %v504_v21  ;;  %628 = vmatmul.mubr.f32.vlgmr.msra.gmra.mrb[0].mxu1 %v506_v22 }
  0xcd   : > { %v549_v23 = vpop.permute.xlu0 %548 }
 0x19f   : > { %v624_v24 = vpop.f32.mrb[0].mxu0  ;;  %v629_v26 = vpop.f32.mrb[0].mxu1 }
 0x1a0   : > { %v625_v27 = vadd.f32 %v624_v24, %v544_v0  ;;  %v630_v28 = vadd.f32 %v629_v26, %v549_v23  ;;  %v626_v29 = vpop.f32.mrb[1].mxu0  ;;  %v631_v30 = vpop.f32.mrb[1].mxu1 }
 0x1a2   : > { %vm634_vm2 = vcmp.gt.f32.partialorder %v625_v27, 0.0  ;;  %v637_v31 = vmul.f32 %v636_v25, %v625_v27  ;;  %vm635_vm3 = vcmp.gt.f32.partialorder %v630_v28, 0.0  ;;  %v638_v32 = vmul.f32 %v636_v25, %v630_v28 }
 0x1a4   : > { %v639_v33 = vsel %vm634_vm2, %v625_v27, %v637_v31  ;;  %v640_v34 = vsel %vm635_vm3, %v630_v28, %v638_v32 }
 0x1a5   : > { %641 = vst.msk [vmem:[%s323_s14] sm:$0xff] %vm326_vm0, %v639_v33  ;;  %642 = vst.msk [vmem:[%s323_s14 + $0x8] sm:$0xff] %vm326_vm0, %v640_v34 }
 0x1a6 PF: > { %s16_s22 = sadd.s32 1, %s938_s22   ;;  %s1126_s20 = smov %s934_s21 }
 0x1a7   : > { %p13_p5 = scmp.ge.s32.totalorder %s16_s22, 4   ;;  %s1127_s21 = smov %s1129_s4 }
 0x1a9   :  { %15 = sbr.rel (!%p13_p5) target bundleno = 2 (0x2), region = 79 }

// kernel: segan_generator_forward.6
= control target key start
LH: loop header
LB: loop body
LE: loop exit
PB: predicated region body
PF: predicated region fallthrough
CT: control target
= control target key end

     0   :  { %s1000_s20 = smov 0   ;;  %s1002_s21 = smov 0   ;;  %s1092_s0 = inlined_call_operand.vmem [shape: f32[2,1,23], index: 0, kind: input, shape index: {}]   ;;  %s1093_s1 = inlined_call_operand.vmem [shape: f32[2,1,23], index: 1, kind: input, shape index: {}]   ;;  %s1094_s2 = inlined_call_operand.vmem [shape: f32[4,31], index: 2, kind: input, shape index: {}]   ;;  %s1095_s3 = inlined_call_operand.vmem [shape: f32[4,1], index: 3, kind: input, shape index: {}]   ;;  %s1096_s4 = inlined_call_operand.<no memory space> [shape: f32[1], index: 4, kind: input, shape index: {}]   ;;  %s1097_s5 = inlined_call_operand.vmem [shape: f32[2,4,8], index: 5, kind: output, shape index: {}]  }
   0x1   :  { %10 = sst [smem:[#allocation3]] %s1096_s4  ;;  %s1004_s22 = smov 0  }
   0x2 LB: > { %s31_s4 = sadd.s32 1, %s941_s21  ;;  %p819_p0 = scmp.ge.s32.totalorder %s945_s22, 1  ;;  %s945_s22 = sphi %s1004_s22, %s16_s22   ;;  %s941_s21 = sphi %s1002_s21, %s1099_s21   ;;  %s937_s20 = sphi %s1000_s20, %s1098_s20  }
   0x3   : > { %p33_p1 = scmp.ge.s32.totalorder %s31_s4, 2  ;;  %p235_p2 = scmp.lt.s32.totalorder %s945_s22, 3 }
   0x5   : > { %s1101_s4 = smov (%p33_p1, %s31_s4), 0  ;;  %p236_p3 = pnand %p819_p0, %p235_p2 }
   0x6   : > { %p277_p4 = scmp.lt.s32.totalorder (!%p236_p3), %s937_s20, 1  ;;  %vm302_vm0 = vcmask (!%p236_p3), 57344   ;;  %s947_s26 = smov (!%p236_p3), 125   ;;  %v961_v3 = vmov (!%p236_p3), 0.0|0.0   ;;  %vm963_vm1 = vmmov (!%p236_p3), 0   ;;  %v964_v5 = vmov (!%p236_p3), 0.0  }
   0x7   : > { %239 = sbr.rel (%p236_p3) target bundleno = 419 (0x1a3), region = 40  ;;  %s948_s27 = smov (!%p236_p3), 127   ;;  %870 = vmatprep.subr.bf16.mxu0 (!%p236_p3), %v961_v3  ;;  %867 = vmatprep.mubr.msk.f32.mxu0 (!%p236_p3), %vm963_vm1, %v964_v5  ;;  %v601_v6 = vld [vmem:[%s1095_s3] sm:$0xf] (!%p236_p3)  ;;  %v965_v7 = vmov (!%p236_p3), 0   ;;  %vm611_vm2 = vcmask (!%p236_p3), 1046528  }
   0x8   : > { %s949_s28 = smov (!%p236_p3), 124   ;;  %s950_s29 = smov (!%p236_p3), 126   ;;  %921 = vset.pattern.permute.xlu1 (!%p236_p3), %v965_v7  ;;  %922 = vset.pattern.permute.xlu0 (!%p236_p3), %v965_v7  ;;  %vm966_vm3 = vmmov (!%p236_p3), 1   ;;  %v596_v43 = vld [vmem:[%s1094_s2] sm:$0xf] (!%p236_p3)  ;;  %vm607_vm5 = vcmask (!%p236_p3), 252928  }
   0x9   : > { %s951_s30 = smov (!%p236_p3), 122   ;;  %s952_s6 = smov (!%p236_p3), 123   ;;  %vm875_vm4 = vmpackc.low (!%p236_p3), %vm611_vm2, %vm966_vm3  ;;  %vm690_vm7 = vcmask (!%p236_p3), 60416  }
   0xa   : > { %s953_s7 = smov (!%p236_p3), 120   ;;  %s954_s8 = smov (!%p236_p3), 121  }
   0xb   : > { %s955_s9 = smov (!%p236_p3), 118   ;;  %s956_s10 = smov (!%p236_p3), 119  }
   0xc   : > { %s957_s11 = smov (!%p236_p3), 116   ;;  %s958_s12 = smov (!%p236_p3), 117  }
   0xd   : > { %s959_s16 = smov (!%p236_p3), 114   ;;  %s960_s17 = smov (!%p236_p3), 115  }
   0xe   : > { %s1103_s20 = smov (!%p277_p4, %s937_s20), 1  ;;  %s962_s18 = smov 113  }
   0xf   : > { %s279_s25 = scalar_lea.vmem %s1092_s0, %s1103_s20  ;;  %s282_s15 = scalar_lea.vmem %s1093_s1, %s1103_s20 }
  0x10   : > { %v823_v0 = vld [vmem:[%s279_s25] ss:$0 sm:$0xff] }
  0x11   : > { %v301_v1 = vld [vmem:[%s279_s25] sm:$0x1]  ;;  %330 = vrot.lane.b32.xlu1 %v823_v0, %s947_s26  ;;  %310 = vrot.lane.b32.xlu0 %v823_v0, %s948_s27 }
  0x12   : > { %303 = vst.msk [vmem:[#allocation2] sm:$0x1] %vm302_vm0, %v301_v1  ;;  %v836_v2 = vld [vmem:[%s282_s15] ss:$0 sm:$0xff] }
  0x13   : > { %v454_v4 = vld [vmem:[%s282_s15] sm:$0x1] }
  0x14   : > { %455 = vst.msk [vmem:[#allocation2 + $0x10] sm:$0x1] %vm302_vm0, %v454_v4 }
  0x15   : > { %340 = vrot.lane.b32.xlu1 %v823_v0, %s949_s28  ;;  %320 = vrot.lane.b32.xlu0 %v823_v0, %s950_s29 }
  0x19   : > { %360 = vrot.lane.b32.xlu1 %v823_v0, %s951_s30  ;;  %350 = vrot.lane.b32.xlu0 %v823_v0, %s952_s6 }
  0x1d   : > { %380 = vrot.lane.b32.xlu1 %v823_v0, %s953_s7  ;;  %370 = vrot.lane.b32.xlu0 %v823_v0, %s954_s8 }
  0x21   : > { %400 = vrot.lane.b32.xlu1 %v823_v0, %s955_s9  ;;  %390 = vrot.lane.b32.xlu0 %v823_v0, %s956_s10 }
  0x25   : > { %420 = vrot.lane.b32.xlu1 %v823_v0, %s957_s11  ;;  %410 = vrot.lane.b32.xlu0 %v823_v0, %s958_s12 }
  0x29   : > { %440 = vrot.lane.b32.xlu1 %v823_v0, %s959_s16  ;;  %430 = vrot.lane.b32.xlu0 %v823_v0, %s960_s17 }
  0x2d   : > { %462 = vrot.lane.b32.xlu1 %v836_v2, %s948_s27  ;;  %450 = vrot.lane.b32.xlu0 %v823_v0, %s962_s18  ;;  %s820_s27 = sshll.u32 %s1103_s20, 2 }
  0x31   : > { %482 = vrot.lane.b32.xlu1 %v836_v2, %s947_s26  ;;  %472 = vrot.lane.b32.xlu0 %v836_v2, %s950_s29  ;;  %s685_s26 = sld [smem:[#allocation3]] }
  0x35   : > { %502 = vrot.lane.b32.xlu1 %v836_v2, %s952_s6  ;;  %492 = vrot.lane.b32.xlu0 %v836_v2, %s949_s28 }
  0x37   : > { %v687_v46 = vstv %s685_s26 }
  0x39   : > { %522 = vrot.lane.b32.xlu1 %v836_v2, %s954_s8  ;;  %512 = vrot.lane.b32.xlu0 %v836_v2, %s951_s30  ;;  %s300_s30 = scalar_lea.vmem %s1097_s5, %s820_s27 }
  0x3d   : > { %532 = vrot.lane.b32.xlu0 %v836_v2, %s953_s7  ;;  %542 = vrot.lane.b32.xlu1 %v836_v2, %s956_s10 }
  0x41   : > { %552 = vrot.lane.b32.xlu0 %v836_v2, %s955_s9  ;;  %562 = vrot.lane.b32.xlu1 %v836_v2, %s958_s12 }
  0x45   : > { %572 = vrot.lane.b32.xlu0 %v836_v2, %s957_s11  ;;  %582 = vrot.lane.b32.xlu1 %v836_v2, %s960_s17 }
  0x49   : > { %592 = vrot.lane.b32.xlu0 %v836_v2, %s959_s16  ;;  %604 = vperm.xlu1 %921, %v601_v6  }
  0x83   : > { %v331_v8 = vpop.permute.xlu1 %330  ;;  %v311_v9 = vpop.permute.xlu0 %310 }
  0x84   : > { %333 = vst.msk [vmem:[#allocation2 + $0x3] sm:$0x1] %vm302_vm0, %v331_v8  ;;  %313 = vst.msk [vmem:[#allocation2 + $0x1] sm:$0x1] %vm302_vm0, %v311_v9 }
  0x87   : > { %v341_v10 = vpop.permute.xlu1 %340  ;;  %v321_v11 = vpop.permute.xlu0 %320 }
  0x88   : > { %343 = vst.msk [vmem:[#allocation2 + $0x4] sm:$0x1] %vm302_vm0, %v341_v10  ;;  %323 = vst.msk [vmem:[#allocation2 + $0x2] sm:$0x1] %vm302_vm0, %v321_v11 }
  0x8b   : > { %v361_v12 = vpop.permute.xlu1 %360  ;;  %v351_v13 = vpop.permute.xlu0 %350 }
  0x8c   : > { %363 = vst.msk [vmem:[#allocation2 + $0x6] sm:$0x1] %vm302_vm0, %v361_v12  ;;  %353 = vst.msk [vmem:[#allocation2 + $0x5] sm:$0x1] %vm302_vm0, %v351_v13 }
  0x8f   : > { %v381_v14 = vpop.permute.xlu1 %380  ;;  %v371_v15 = vpop.permute.xlu0 %370 }
  0x90   : > { %383 = vst.msk [vmem:[#allocation2 + $0x8] sm:$0x1] %vm302_vm0, %v381_v14  ;;  %373 = vst.msk [vmem:[#allocation2 + $0x7] sm:$0x1] %vm302_vm0, %v371_v15 }
  0x93   : > { %v401_v16 = vpop.permute.xlu1 %400  ;;  %v391_v17 = vpop.permute.xlu0 %390 }
  0x94   : > { %403 = vst.msk [vmem:[#allocation2 + $0xa] sm:$0x1] %vm302_vm0, %v401_v16  ;;  %393 = vst.msk [vmem:[#allocation2 + $0x9] sm:$0x1] %vm302_vm0, %v391_v17 }
  0x97   : > { %v421_v18 = vpop.permute.xlu1 %420  ;;  %v411_v19 = vpop.permute.xlu0 %410  ;;  %v597_v28 = vld [vmem:[#allocation2] sm:$0xff] }
  0x98   : > { %423 = vst.msk [vmem:[#allocation2 + $0xc] sm:$0x1] %vm302_vm0, %v421_v18  ;;  %413 = vst.msk [vmem:[#allocation2 + $0xb] sm:$0x1] %vm302_vm0, %v411_v19 }
  0x9b   : > { %v441_v20 = vpop.permute.xlu1 %440  ;;  %v431_v21 = vpop.permute.xlu0 %430 }
  0x9c   : > { %443 = vst.msk [vmem:[#allocation2 + $0xe] sm:$0x1] %vm302_vm0, %v441_v20  ;;  %433 = vst.msk [vmem:[#allocation2 + $0xd] sm:$0x1] %vm302_vm0, %v431_v21 }
  0x9f   : > { %v463_v22 = vpop.permute.xlu1 %462  ;;  %v451_v23 = vpop.permute.xlu0 %450 }
  0xa0   : > { %465 = vst.msk [vmem:[#allocation2 + $0x11] sm:$0x1] %vm302_vm0, %v463_v22  ;;  %453 = vst.msk [vmem:[#allocation2 + $0xf] sm:$0x1] %vm302_vm0, %v451_v23 }
  0xa3   : > { %v483_v24 = vpop.permute.xlu1 %482  ;;  %v473_v25 = vpop.permute.xlu0 %472 }
  0xa4   : > { %485 = vst.msk [vmem:[#allocation2 + $0x13] sm:$0x1] %vm302_vm0, %v483_v24  ;;  %475 = vst.msk [vmem:[#allocation2 + $0x12] sm:$0x1] %vm302_vm0, %v473_v25 }
  0xa7   : > { %v503_v26 = vpop.permute.xlu1 %502  ;;  %v493_v27 = vpop.permute.xlu0 %492  ;;  %v598_v29 = vld [vmem:[#allocation2 + $0x8] sm:$0xff] }
  0xa8   : > { %505 = vst.msk [vmem:[#allocation2 + $0x15] sm:$0x1] %vm302_vm0, %v503_v26  ;;  %495 = vst.msk [vmem:[#allocation2 + $0x14] sm:$0x1] %vm302_vm0, %v493_v27  ;;  %v871_v30 = vpack.c.bf16 %v598_v29, %v597_v28 }
  0xaa   : > { %872 = vmatpush3.bf16.msra.mxu0 %v871_v30 }
  0xab   : > { %v523_v31 = vpop.permute.xlu1 %522  ;;  %v513_v32 = vpop.permute.xlu0 %512  ;;  %873 = vmatprep.subr.bf16.mxu0 %v961_v3 }
  0xac   : > { %525 = vst.msk [vmem:[#allocation2 + $0x17] sm:$0x1] %vm302_vm0, %v523_v31  ;;  %515 = vst.msk [vmem:[#allocation2 + $0x16] sm:$0x1] %vm302_vm0, %v513_v32 }
  0xaf   : > { %v533_v33 = vpop.permute.xlu0 %532  ;;  %v543_v34 = vpop.permute.xlu1 %542 }
  0xb0   : > { %535 = vst.msk [vmem:[#allocation2 + $0x18] sm:$0x1] %vm302_vm0, %v533_v33  ;;  %545 = vst.msk [vmem:[#allocation2 + $0x19] sm:$0x1] %vm302_vm0, %v543_v34 }
  0xb3   : > { %v553_v35 = vpop.permute.xlu0 %552  ;;  %v563_v36 = vpop.permute.xlu1 %562  ;;  %v599_v40 = vld [vmem:[#allocation2 + $0x10] sm:$0xff] }
  0xb4   : > { %555 = vst.msk [vmem:[#allocation2 + $0x1a] sm:$0x1] %vm302_vm0, %v553_v35  ;;  %565 = vst.msk [vmem:[#allocation2 + $0x1b] sm:$0x1] %vm302_vm0, %v563_v36 }
  0xb7   : > { %v573_v37 = vpop.permute.xlu0 %572  ;;  %v583_v38 = vpop.permute.xlu1 %582 }
  0xb8   : > { %575 = vst.msk [vmem:[#allocation2 + $0x1c] sm:$0x1] %vm302_vm0, %v573_v37  ;;  %585 = vst.msk [vmem:[#allocation2 + $0x1d] sm:$0x1] %vm302_vm0, %v583_v38 }
  0xbb   : > { %v593_v39 = vpop.permute.xlu0 %592 }
  0xbc   : > { %595 = vst.msk [vmem:[#allocation2 + $0x1e] sm:$0x1] %vm302_vm0, %v593_v39 }
  0xc3   : > { %v600_v41 = vld [vmem:[#allocation2 + $0x18] sm:$0x7f] }
  0xc4   : > { %v874_v42 = vpack.c.bf16 %v600_v41, %v599_v40 }
  0xc6   : > { %876 = vmatpush3.bf16.msk.msra.mxu0 %vm875_vm4, %v874_v42 }
  0xc8   : > { %v605_v44 = vpop.permute.xlu1 %604 }
  0xc9   : > { %868 = vmatmul.mubr.msk.f32.vlgmr.msra.gmra.mrb[0].mxu0 %vm607_vm5, %v596_v43 }
 0x19c   : > { %v681_v45 = vpop.f32.mrb[0].mxu0 }
 0x19d   : > { %v682_v47 = vadd.f32 %v681_v45, %v605_v44  ;;  %v869_v48 = vpop.f32.mrb[1].mxu0 }
 0x19f   : > { %vm686_vm6 = vcmp.gt.f32.partialorder %v682_v47, 0.0  ;;  %v688_v49 = vmul.f32 %v687_v46, %v682_v47 }
 0x1a1   : > { %v689_v50 = vsel %vm686_vm6, %v682_v47, %v688_v49 }
 0x1a2   : > { %691 = vst.msk [vmem:[%s300_s30] sm:$0xf] %vm690_vm7, %v689_v50 }
 0x1a3 PF: > { %s16_s22 = sadd.s32 1, %s945_s22   ;;  %s1098_s20 = smov %s941_s21 }
 0x1a4   : > { %p13_p5 = scmp.ge.s32.totalorder %s16_s22, 4   ;;  %s1099_s21 = smov %s1101_s4 }
 0x1a6   :  { %15 = sbr.rel (!%p13_p5) target bundleno = 2 (0x2), region = 79 }

// kernel: segan_generator_forward.7
= control target key start
LH: loop header
LB: loop body
LE: loop exit
PB: predicated region body
PF: predicated region fallthrough
CT: control target
= control target key end

     0   :  { %s935_s20 = smov 0   ;;  %s937_s21 = smov 0   ;;  %s1085_s0 = inlined_call_operand.vmem [shape: f32[2,4,19], index: 0, kind: input, shape index: {}]   ;;  %s1086_s1 = inlined_call_operand.vmem [shape: f32[2,4,19], index: 1, kind: input, shape index: {}]   ;;  %s1087_s2 = inlined_call_operand.vmem [shape: f32[8,124], index: 2, kind: input, shape index: {}]   ;;  %s1088_s3 = inlined_call_operand.vmem [shape: f32[8,1], index: 3, kind: input, shape index: {}]   ;;  %s1089_s4 = inlined_call_operand.<no memory space> [shape: f32[1], index: 4, kind: input, shape index: {}]   ;;  %s1090_s5 = inlined_call_operand.vmem [shape: f32[2,8,4], index: 5, kind: output, shape index: {}]  }
   0x1   :  { %10 = sst [smem:[#allocation3]] %s1089_s4  ;;  %s939_s22 = smov 0  }
   0x2 LB: > { %s31_s4 = sadd.s32 1, %s876_s21  ;;  %p727_p0 = scmp.ge.s32.totalorder %s880_s22, 1  ;;  %s880_s22 = sphi %s939_s22, %s16_s22   ;;  %s876_s21 = sphi %s937_s21, %s1092_s21   ;;  %s872_s20 = sphi %s935_s20, %s1091_s20  }
   0x3   : > { %p33_p1 = scmp.ge.s32.totalorder %s31_s4, 2  ;;  %p237_p2 = scmp.lt.s32.totalorder %s880_s22, 3 }
   0x5   : > { %s1094_s4 = smov (%p33_p1, %s31_s4), 0  ;;  %p238_p3 = pnand %p727_p0, %p237_p2 }
   0x6   : > { %p281_p4 = scmp.lt.s32.totalorder (!%p238_p3), %s872_s20, 1  ;;  %s882_s27 = smov (!%p238_p3), 125   ;;  %vm308_vm0 = vcmask (!%p238_p3), 27648   ;;  %v888_v8 = vmov (!%p238_p3), 0.0|0.0   ;;  %vm898_vm1 = vmmov (!%p238_p3), 0   ;;  %v899_v32 = vmov (!%p238_p3), 0.0  }
   0x7   : > { %241 = sbr.rel (%p238_p3) target bundleno = 421 (0x1a5), region = 40  ;;  %s883_s28 = smov (!%p238_p3), 127   ;;  %787 = vmatprep.subr.bf16.mxu0 (!%p238_p3), %v888_v8  ;;  %784 = vmatprep.mubr.msk.f32.mxu0 (!%p238_p3), %vm898_vm1, %v899_v32  ;;  %v503_v33 = vld [vmem:[%s1088_s3] sm:$0xff] (!%p238_p3)  ;;  %v900_v34 = vmov (!%p238_p3), 0   ;;  %vm513_vm2 = vcmask (!%p238_p3), 1043456   ;;  %vm901_vm3 = vmmov (!%p238_p3), 1  }
   0x8   : > { %s884_s29 = smov (!%p238_p3), 124   ;;  %s885_s30 = smov (!%p238_p3), 126   ;;  %856 = vset.pattern.permute.xlu1 (!%p238_p3), %v900_v34  ;;  %857 = vset.pattern.permute.xlu0 (!%p238_p3), %v900_v34  ;;  %vm810_vm4 = vmpackc.low (!%p238_p3), %vm513_vm2, %vm901_vm3  ;;  %vm509_vm5 = vcmask (!%p238_p3), 1014784   ;;  %vm592_vm7 = vcmask (!%p238_p3), 31744  }
   0x9   : > { %s886_s6 = smov (!%p238_p3), 122   ;;  %s887_s7 = smov (!%p238_p3), 123  }
   0xa   : > { %s889_s8 = smov (!%p238_p3), 120   ;;  %s890_s9 = smov (!%p238_p3), 121  }
   0xb   : > { %s891_s10 = smov (!%p238_p3), 118   ;;  %s892_s11 = smov (!%p238_p3), 119  }
   0xc   : > { %s893_s15 = smov (!%p238_p3), 116   ;;  %s894_s16 = smov (!%p238_p3), 117  }
   0xd   : > { %s895_s17 = smov (!%p238_p3), 114   ;;  %s896_s18 = smov (!%p238_p3), 115  }
   0xe   : > { %s1096_s20 = smov (!%p281_p4, %s872_s20), 1  ;;  %s897_s19 = smov 113  }
   0xf   : > { %s728_s23 = sshll.u32 %s1096_s20, 2 }
  0x10   : > { %s961_s26 = scalar_lea.vmem %s1085_s0, %s728_s23  ;;  %s991_s14 = scalar_lea.vmem %s1086_s1, %s728_s23 }
  0x11   : > { %v322_v0 = vld [vmem:[%s961_s26] sm:$0xf] }
  0x12   : > { %v310_v1 = vld [vmem:[%s961_s26] sm:$0xf]  ;;  %324 = vrot.lane.b32.xlu1 %v322_v0, %s882_s27 }
  0x13   : > { %312 = vrot.lane.b32.xlu0 %v310_v1, %s883_s28  ;;  %v328_v2 = vld [vmem:[%s961_s26] sm:$0xf] }
  0x14   : > { %v316_v3 = vld [vmem:[%s961_s26] sm:$0xf] }
  0x15   : > { %v340_v4 = vld [vmem:[%s961_s26] sm:$0xf] }
  0x16   : > { %330 = vrot.lane.b32.xlu1 %v328_v2, %s884_s29  ;;  %v334_v5 = vld [vmem:[%s961_s26] sm:$0xf] }
  0x17   : > { %318 = vrot.lane.b32.xlu0 %v316_v3, %s885_s30  ;;  %v352_v6 = vld [vmem:[%s961_s26] sm:$0xf] }
  0x18   : > { %v346_v7 = vld [vmem:[%s961_s26] sm:$0xf] }
  0x19   : > { %v307_v9 = vld [vmem:[%s961_s26] sm:$0xf] }
  0x1a   : > { %342 = vrot.lane.b32.xlu1 %v340_v4, %s886_s6  ;;  %309 = vst.msk [vmem:[#allocation2] sm:$0xf] %vm308_vm0, %v307_v9  ;;  %v364_v10 = vld [vmem:[%s961_s26] sm:$0xf] }
  0x1b   : > { %336 = vrot.lane.b32.xlu0 %v334_v5, %s887_s7  ;;  %v358_v11 = vld [vmem:[%s961_s26] sm:$0xf] }
  0x1c   : > { %v376_v12 = vld [vmem:[%s961_s26] sm:$0xf] }
  0x1d   : > { %v370_v13 = vld [vmem:[%s961_s26] sm:$0xf] }
  0x1e   : > { %354 = vrot.lane.b32.xlu1 %v352_v6, %s889_s8  ;;  %v400_v14 = vld [vmem:[%s991_s14] sm:$0xf] }
  0x1f   : > { %348 = vrot.lane.b32.xlu0 %v346_v7, %s890_s9  ;;  %401 = vst.msk [vmem:[#allocation2 + $0x40] sm:$0xf] %vm308_vm0, %v400_v14  ;;  %v388_v15 = vld [vmem:[%s961_s26] sm:$0xf] }
  0x20   : > { %v382_v16 = vld [vmem:[%s961_s26] sm:$0xf] }
  0x21   : > { %v402_v17 = vld [vmem:[%s991_s14] sm:$0xf] }
  0x22   : > { %366 = vrot.lane.b32.xlu1 %v364_v10, %s891_s10  ;;  %v394_v18 = vld [vmem:[%s961_s26] sm:$0xf] }
  0x23   : > { %360 = vrot.lane.b32.xlu0 %v358_v11, %s892_s11  ;;  %v414_v19 = vld [vmem:[%s991_s14] sm:$0xf] }
  0x24   : > { %v408_v20 = vld [vmem:[%s991_s14] sm:$0xf] }
  0x25   : > { %v426_v21 = vld [vmem:[%s991_s14] sm:$0xf] }
  0x26   : > { %378 = vrot.lane.b32.xlu1 %v376_v12, %s893_s15  ;;  %v420_v22 = vld [vmem:[%s991_s14] sm:$0xf] }
  0x27   : > { %372 = vrot.lane.b32.xlu0 %v370_v13, %s894_s16  ;;  %v438_v23 = vld [vmem:[%s991_s14] sm:$0xf] }
  0x28   : > { %v432_v24 = vld [vmem:[%s991_s14] sm:$0xf] }
  0x29   : > { %v450_v25 = vld [vmem:[%s991_s14] sm:$0xf] }
  0x2a   : > { %390 = vrot.lane.b32.xlu1 %v388_v15, %s895_s17  ;;  %v444_v26 = vld [vmem:[%s991_s14] sm:$0xf] }
  0x2b   : > { %384 = vrot.lane.b32.xlu0 %v382_v16, %s896_s18  ;;  %v462_v27 = vld [vmem:[%s991_s14] sm:$0xf] }
  0x2c   : > { %v456_v28 = vld [vmem:[%s991_s14] sm:$0xf] }
  0x2d   : > { %v474_v29 = vld [vmem:[%s991_s14] sm:$0xf] }
  0x2e   : > { %404 = vrot.lane.b32.xlu1 %v402_v17, %s883_s28  ;;  %v468_v30 = vld [vmem:[%s991_s14] sm:$0xf]  ;;  %s730_s28 = sshll.u32 %s1096_s20, 3 }
  0x2f   : > { %396 = vrot.lane.b32.xlu0 %v394_v18, %s897_s19  ;;  %v480_v31 = vld [vmem:[%s991_s14] sm:$0xf] }
  0x32   : > { %416 = vrot.lane.b32.xlu1 %v414_v19, %s882_s27  ;;  %s587_s27 = sld [smem:[#allocation3]] }
  0x33   : > { %410 = vrot.lane.b32.xlu0 %v408_v20, %s885_s30 }
  0x36   : > { %428 = vrot.lane.b32.xlu1 %v426_v21, %s887_s7 }
  0x37   : > { %422 = vrot.lane.b32.xlu0 %v420_v22, %s884_s29 }
  0x3a   : > { %440 = vrot.lane.b32.xlu1 %v438_v23, %s890_s9 }
  0x3b   : > { %434 = vrot.lane.b32.xlu0 %v432_v24, %s886_s6  ;;  %s306_s6 = scalar_lea.vmem %s1090_s5, %s730_s28 }
  0x3e   : > { %452 = vrot.lane.b32.xlu1 %v450_v25, %s892_s11  ;;  %v486_v25 = vld [vmem:[%s1087_s2] sm:$0xff] }
  0x3f   : > { %446 = vrot.lane.b32.xlu0 %v444_v26, %s889_s8 }
  0x42   : > { %464 = vrot.lane.b32.xlu1 %v462_v27, %s894_s16 }
  0x43   : > { %458 = vrot.lane.b32.xlu0 %v456_v28, %s891_s10  ;;  %v589_v28 = vstv %s587_s27 }
  0x46   : > { %476 = vrot.lane.b32.xlu1 %v474_v29, %s896_s18 }
  0x47   : > { %470 = vrot.lane.b32.xlu0 %v468_v30, %s893_s15 }
  0x4a   : > { %506 = vperm.xlu1 %856, %v503_v33  }
  0x4b   : > { %482 = vrot.lane.b32.xlu0 %v480_v31, %s895_s17 }
  0x84   : > { %v325_v35 = vpop.permute.xlu1 %324 }
  0x85   : > { %v313_v36 = vpop.permute.xlu0 %312  ;;  %327 = vst.msk [vmem:[#allocation2 + $0xc] sm:$0xf] %vm308_vm0, %v325_v35 }
  0x86   : > { %315 = vst.msk [vmem:[#allocation2 + $0x4] sm:$0xf] %vm308_vm0, %v313_v36 }
  0x88   : > { %v331_v37 = vpop.permute.xlu1 %330 }
  0x89   : > { %v319_v38 = vpop.permute.xlu0 %318  ;;  %333 = vst.msk [vmem:[#allocation2 + $0x10] sm:$0xf] %vm308_vm0, %v331_v37 }
  0x8a   : > { %321 = vst.msk [vmem:[#allocation2 + $0x8] sm:$0xf] %vm308_vm0, %v319_v38 }
  0x8c   : > { %v343_v39 = vpop.permute.xlu1 %342 }
  0x8d   : > { %v337_v40 = vpop.permute.xlu0 %336  ;;  %345 = vst.msk [vmem:[#allocation2 + $0x18] sm:$0xf] %vm308_vm0, %v343_v39  ;;  %v487_v43 = vld [vmem:[#allocation2] sm:$0xff] }
  0x8e   : > { %339 = vst.msk [vmem:[#allocation2 + $0x14] sm:$0xf] %vm308_vm0, %v337_v40 }
  0x90   : > { %v355_v41 = vpop.permute.xlu1 %354 }
  0x91   : > { %v349_v42 = vpop.permute.xlu0 %348  ;;  %v488_v44 = vld [vmem:[#allocation2 + $0x8] sm:$0xff]  ;;  %357 = vst.msk [vmem:[#allocation2 + $0x20] sm:$0xf] %vm308_vm0, %v355_v41 }
  0x92   : > { %351 = vst.msk [vmem:[#allocation2 + $0x1c] sm:$0xf] %vm308_vm0, %v349_v42  ;;  %v788_v45 = vpack.c.bf16 %v488_v44, %v487_v43 }
  0x94   : > { %789 = vmatpush3.bf16.msra.mxu0 %v788_v45  ;;  %v367_v46 = vpop.permute.xlu1 %366 }
  0x95   : > { %v361_v47 = vpop.permute.xlu0 %360  ;;  %790 = vmatprep.subr.bf16.mxu0 %v888_v8  ;;  %369 = vst.msk [vmem:[#allocation2 + $0x28] sm:$0xf] %vm308_vm0, %v367_v46  ;;  %v489_v50 = vld [vmem:[#allocation2 + $0x10] sm:$0xff] }
  0x96   : > { %363 = vst.msk [vmem:[#allocation2 + $0x24] sm:$0xf] %vm308_vm0, %v361_v47 }
  0x98   : > { %v379_v48 = vpop.permute.xlu1 %378 }
  0x99   : > { %v373_v49 = vpop.permute.xlu0 %372  ;;  %v490_v51 = vld [vmem:[#allocation2 + $0x18] sm:$0xff]  ;;  %381 = vst.msk [vmem:[#allocation2 + $0x30] sm:$0xf] %vm308_vm0, %v379_v48 }
  0x9a   : > { %375 = vst.msk [vmem:[#allocation2 + $0x2c] sm:$0xf] %vm308_vm0, %v373_v49  ;;  %v791_v52 = vpack.c.bf16 %v490_v51, %v489_v50 }
  0x9c   : > { %792 = vmatpush3.bf16.msra.mxu0 %v791_v52  ;;  %v391_v53 = vpop.permute.xlu1 %390 }
  0x9d   : > { %v385_v54 = vpop.permute.xlu0 %384  ;;  %793 = vmatprep.subr.bf16.mxu0 %v888_v8  ;;  %393 = vst.msk [vmem:[#allocation2 + $0x38] sm:$0xf] %vm308_vm0, %v391_v53  ;;  %v491_v57 = vld [vmem:[#allocation2 + $0x20] sm:$0xff] }
  0x9e   : > { %387 = vst.msk [vmem:[#allocation2 + $0x34] sm:$0xf] %vm308_vm0, %v385_v54 }
  0xa0   : > { %v405_v55 = vpop.permute.xlu1 %404 }
  0xa1   : > { %v397_v56 = vpop.permute.xlu0 %396  ;;  %v492_v58 = vld [vmem:[#allocation2 + $0x28] sm:$0xff]  ;;  %407 = vst.msk [vmem:[#allocation2 + $0x44] sm:$0xf] %vm308_vm0, %v405_v55 }
  0xa2   : > { %399 = vst.msk [vmem:[#allocation2 + $0x3c] sm:$0xf] %vm308_vm0, %v397_v56  ;;  %v794_v59 = vpack.c.bf16 %v492_v58, %v491_v57 }
  0xa4   : > { %795 = vmatpush3.bf16.msra.mxu0 %v794_v59  ;;  %v417_v60 = vpop.permute.xlu1 %416 }
  0xa5   : > { %v411_v61 = vpop.permute.xlu0 %410  ;;  %796 = vmatprep.subr.bf16.mxu0 %v888_v8  ;;  %419 = vst.msk [vmem:[#allocation2 + $0x4c] sm:$0xf] %vm308_vm0, %v417_v60  ;;  %v493_v0 = vld [vmem:[#allocation2 + $0x30] sm:$0xff] }
  0xa6   : > { %413 = vst.msk [vmem:[#allocation2 + $0x48] sm:$0xf] %vm308_vm0, %v411_v61 }
  0xa8   : > { %v429_v62 = vpop.permute.xlu1 %428  ;;  %v495_v3 = vld [vmem:[#allocation2 + $0x40] sm:$0xff] }
  0xa9   : > { %v423_v63 = vpop.permute.xlu0 %422  ;;  %v494_v1 = vld [vmem:[#allocation2 + $0x38] sm:$0xff]  ;;  %431 = vst.msk [vmem:[#allocation2 + $0x54] sm:$0xf] %vm308_vm0, %v429_v62 }
  0xaa   : > { %425 = vst.msk [vmem:[#allocation2 + $0x50] sm:$0xf] %vm308_vm0, %v423_v63  ;;  %v797_v2 = vpack.c.bf16 %v494_v1, %v493_v0 }
  0xac   : > { %798 = vmatpush3.bf16.msra.mxu0 %v797_v2  ;;  %v441_v4 = vpop.permute.xlu1 %440 }
  0xad   : > { %v435_v5 = vpop.permute.xlu0 %434  ;;  %799 = vmatprep.subr.bf16.mxu0 %v888_v8  ;;  %v496_v6 = vld [vmem:[#allocation2 + $0x48] sm:$0xff]  ;;  %443 = vst.msk [vmem:[#allocation2 + $0x5c] sm:$0xf] %vm308_vm0, %v441_v4 }
  0xae   : > { %437 = vst.msk [vmem:[#allocation2 + $0x58] sm:$0xf] %vm308_vm0, %v435_v5  ;;  %v800_v7 = vpack.c.bf16 %v496_v6, %v495_v3 }
  0xb0   : > { %801 = vmatpush3.bf16.msra.mxu0 %v800_v7  ;;  %v453_v9 = vpop.permute.xlu1 %452 }
  0xb1   : > { %v447_v10 = vpop.permute.xlu0 %446  ;;  %802 = vmatprep.subr.bf16.mxu0 %v888_v8  ;;  %455 = vst.msk [vmem:[#allocation2 + $0x64] sm:$0xf] %vm308_vm0, %v453_v9  ;;  %v497_v13 = vld [vmem:[#allocation2 + $0x50] sm:$0xff] }
  0xb2   : > { %449 = vst.msk [vmem:[#allocation2 + $0x60] sm:$0xf] %vm308_vm0, %v447_v10 }
  0xb4   : > { %v465_v11 = vpop.permute.xlu1 %464 }
  0xb5   : > { %v459_v12 = vpop.permute.xlu0 %458  ;;  %v498_v14 = vld [vmem:[#allocation2 + $0x58] sm:$0xff]  ;;  %467 = vst.msk [vmem:[#allocation2 + $0x6c] sm:$0xf] %vm308_vm0, %v465_v11 }
  0xb6   : > { %461 = vst.msk [vmem:[#allocation2 + $0x68] sm:$0xf] %vm308_vm0, %v459_v12  ;;  %v803_v15 = vpack.c.bf16 %v498_v14, %v497_v13 }
  0xb8   : > { %804 = vmatpush3.bf16.msra.mxu0 %v803_v15  ;;  %v477_v16 = vpop.permute.xlu1 %476 }
  0xb9   : > { %v471_v17 = vpop.permute.xlu0 %470  ;;  %805 = vmatprep.subr.bf16.mxu0 %v888_v8  ;;  %479 = vst.msk [vmem:[#allocation2 + $0x74] sm:$0xf] %vm308_vm0, %v477_v16  ;;  %v499_v19 = vld [vmem:[#allocation2 + $0x60] sm:$0xff] }
  0xba   : > { %473 = vst.msk [vmem:[#allocation2 + $0x70] sm:$0xf] %vm308_vm0, %v471_v17 }
  0xbd   : > { %v483_v18 = vpop.permute.xlu0 %482  ;;  %v500_v20 = vld [vmem:[#allocation2 + $0x68] sm:$0xff] }
  0xbe   : > { %485 = vst.msk [vmem:[#allocation2 + $0x78] sm:$0xf] %vm308_vm0, %v483_v18  ;;  %v806_v21 = vpack.c.bf16 %v500_v20, %v499_v19 }
  0xc0   : > { %807 = vmatpush3.bf16.msra.mxu0 %v806_v21 }
  0xc1   : > { %808 = vmatprep.subr.bf16.mxu0 %v888_v8  ;;  %v501_v22 = vld [vmem:[#allocation2 + $0x70] sm:$0xff] }
  0xc5   : > { %v502_v23 = vld [vmem:[#allocation2 + $0x78] sm:$0xf] }
  0xc6   : > { %v809_v24 = vpack.c.bf16 %v502_v23, %v501_v22 }
  0xc8   : > { %811 = vmatpush3.bf16.msk.msra.mxu0 %vm810_vm4, %v809_v24 }
  0xc9   : > { %v507_v26 = vpop.permute.xlu1 %506 }
  0xcb   : > { %785 = vmatmul.mubr.msk.f32.vlgmr.msra.gmra.mrb[0].mxu0 %vm509_vm5, %v486_v25 }
 0x19e   : > { %v583_v27 = vpop.f32.mrb[0].mxu0 }
 0x19f   : > { %v584_v29 = vadd.f32 %v583_v27, %v507_v26  ;;  %v786_v8 = vpop.f32.mrb[1].mxu0 }
 0x1a1   : > { %vm588_vm6 = vcmp.gt.f32.partialorder %v584_v29, 0.0  ;;  %v590_v30 = vmul.f32 %v589_v28, %v584_v29 }
 0x1a3   : > { %v591_v31 = vsel %vm588_vm6, %v584_v29, %v590_v30 }
 0x1a4   : > { %593 = vst.msk [vmem:[%s306_s6] sm:$0xff] %vm592_vm7, %v591_v31 }
 0x1a5 PF: > { %s16_s22 = sadd.s32 1, %s880_s22   ;;  %s1091_s20 = smov %s876_s21 }
 0x1a6   : > { %p13_p5 = scmp.ge.s32.totalorder %s16_s22, 4   ;;  %s1092_s21 = smov %s1094_s4 }
 0x1a8   :  { %15 = sbr.rel (!%p13_p5) target bundleno = 2 (0x2), region = 79 }

// kernel: segan_generator_forward.9
= control target key start
LH: loop header
LB: loop body
LE: loop exit
PB: predicated region body
PF: predicated region fallthrough
CT: control target
= control target key end

     0   :  { %s1757_s26 = smov 0   ;;  %s1759_s27 = smov 0   ;;  %s2077_s0 = inlined_call_operand.vmem [shape: f32[2,16,17], index: 0, kind: input, shape index: {}]   ;;  %s2078_s1 = inlined_call_operand.vmem [shape: f32[2,16,17], index: 1, kind: input, shape index: {}]   ;;  %s2079_s2 = inlined_call_operand.vmem [shape: f32[8,512], index: 2, kind: input, shape index: {}]   ;;  %s2080_s3 = inlined_call_operand.vmem [shape: f32[8,512], index: 3, kind: input, shape index: {}]   ;;  %s2081_s4 = inlined_call_operand.vmem [shape: f32[8,1], index: 4, kind: input, shape index: {}]   ;;  %s2082_s5 = inlined_call_operand.<no memory space> [shape: f32[1], index: 5, kind: input, shape index: {}]   ;;  %s2083_s6 = inlined_call_operand.vmem [shape: f32[2,8,2], index: 6, kind: output, shape index: {0}]   ;;  %s2084_s7 = inlined_call_operand.vmem [shape: f32[2,8,2], index: 7, kind: output, shape index: {1}]  }
   0x1   :  { %13 = sst [smem:[#allocation3]] %s2082_s5  ;;  %s1761_s28 = smov 0  }
   0x2 LB: > { %s34_s5 = sadd.s32 1, %s1692_s27  ;;  %p1354_p0 = scmp.ge.s32.totalorder %s1696_s28, 1  ;;  %s1696_s28 = sphi %s1761_s28, %s19_s28   ;;  %s1692_s27 = sphi %s1759_s27, %s2086_s27   ;;  %s1688_s26 = sphi %s1757_s26, %s2085_s26  }
   0x3   : > { %p36_p1 = scmp.ge.s32.totalorder %s34_s5, 2  ;;  %p307_p2 = scmp.lt.s32.totalorder %s1696_s28, 3 }
   0x5   : > { %s2088_s5 = smov (%p36_p1, %s34_s5), 0  ;;  %p308_p3 = pnand %p1354_p0, %p307_p2 }
   0x6   : > { %p373_p4 = scmp.lt.s32.totalorder (!%p308_p3), %s1688_s26, 1  ;;  %vm419_vm0 = vcmask (!%p308_p3), 15360   ;;  %s1698_s13 = smov (!%p308_p3), 116   ;;  %v787_v4 = vld [vmem:[%s2079_s2 + $0x8] sm:$0xff] (!%p308_p3)  ;;  %v789_v7 = vld [vmem:[%s2079_s2 + $0x18] sm:$0xff] (!%p308_p3)  ;;  %v858_v51 = vld [vmem:[%s2081_s4] sm:$0xff] (!%p308_p3) }
   0x7   : > { %311 = sbr.rel (%p308_p3) target bundleno = 515 (0x203), region = 44  ;;  %s1699_s14 = smov (!%p308_p3), 124   ;;  %929 = vmatprep.mubr.f32.mxu0 (!%p308_p3), %v787_v4  ;;  %999 = vmatprep.mubr.f32.mxu1 (!%p308_p3), %v789_v7  ;;  %v1713_v52 = vmov (!%p308_p3), 0  }
   0x8   : > { %s1700_s15 = smov (!%p308_p3), 120   ;;  %s1701_s16 = smov (!%p308_p3), 123   ;;  %1673 = vset.pattern.permute.xlu0 (!%p308_p3), %v1713_v52 }
   0x9   : > { %s1702_s17 = smov (!%p308_p3), 127   ;;  %s1703_s18 = smov (!%p308_p3), 115  }
   0xa   : > { %s1704_s19 = smov (!%p308_p3), 119   ;;  %s1705_s20 = smov (!%p308_p3), 122  }
   0xb   : > { %s1706_s21 = smov (!%p308_p3), 126   ;;  %s1707_s22 = smov (!%p308_p3), 114  }
   0xc   : > { %s1708_s23 = smov (!%p308_p3), 118   ;;  %s1709_s24 = smov (!%p308_p3), 121  }
   0xd   : > { %s1710_s25 = smov (!%p308_p3), 125   ;;  %s1712_s30 = smov (!%p308_p3), 117  }
   0xe   : > { %s2090_s26 = smov (!%p373_p4, %s1688_s26), 1 }
   0xf   : > { %s1363_s29 = sshll.u32 %s2090_s26, 4 }
  0x10   : > { %s377_s9 = scalar_lea.vmem %s2077_s0, %s1363_s29  ;;  %s382_s12 = scalar_lea.vmem %s2078_s1, %s1363_s29 }
  0x11   : > { %v1784_v0 = vld [vmem:[%s377_s9] sm:$0xff]  ;;  %v1786_v1 = vld [vmem:[%s377_s9 + $0x8] sm:$0xff]  ;;  %s1711_s29 = smov 113  }
  0x12   : > { %v1788_v2 = vld [vmem:[%s382_s12 + $0x8] sm:$0xff]  ;;  %694 = vrot.lane.b32.xlu1 %v1784_v0, %s1698_s13  ;;  %502 = vrot.lane.b32.xlu0 %v1784_v0, %s1699_s14  ;;  %v1792_v3 = vld [vmem:[%s382_s12] sm:$0xff]  ;;  %420 = vst.msk [vmem:[#allocation2] sm:$0xff] %vm419_vm0, %v1784_v0  ;;  %421 = vst.msk [vmem:[#allocation2 + $0x8] sm:$0xff] %vm419_vm0, %v1786_v1 }
  0x13   : > { %425 = vst.msk [vmem:[#allocation2 + $0x18] sm:$0xff] %vm419_vm0, %v1788_v2  ;;  %424 = vst.msk [vmem:[#allocation2 + $0x10] sm:$0xff] %vm419_vm0, %v1792_v3 }
  0x16   : > { %696 = vrot.lane.b32.xlu1 %v1786_v1, %s1698_s13  ;;  %504 = vrot.lane.b32.xlu0 %v1786_v1, %s1699_s14 }
  0x19   : > { %v790_v12 = vld [vmem:[#allocation2] sm:$0xff]  ;;  %v791_v13 = vld [vmem:[#allocation2 + $0x8] sm:$0xff] }
  0x1a   : > { %600 = vrot.lane.b32.xlu1 %v1786_v1, %s1700_s15  ;;  %598 = vrot.lane.b32.xlu0 %v1784_v0, %s1700_s15  ;;  %v1872_v20 = vpack.c.bf16 %v791_v13, %v790_v12  ;;  %v792_v28 = vld [vmem:[#allocation2 + $0x10] sm:$0xff]  ;;  %v793_v29 = vld [vmem:[#allocation2 + $0x18] sm:$0xff] }
  0x1b   : > { %v1888_v34 = vpack.c.bf16 %v793_v29, %v792_v28 }
  0x1e   : > { %516 = vrot.lane.b32.xlu1 %v1788_v2, %s1699_s14  ;;  %514 = vrot.lane.b32.xlu0 %v1792_v3, %s1699_s14 }
  0x22   : > { %708 = vrot.lane.b32.xlu1 %v1788_v2, %s1698_s13  ;;  %706 = vrot.lane.b32.xlu0 %v1792_v3, %s1698_s13 }
  0x26   : > { %612 = vrot.lane.b32.xlu1 %v1788_v2, %s1700_s15  ;;  %610 = vrot.lane.b32.xlu0 %v1792_v3, %s1700_s15 }
  0x2a   : > { %528 = vrot.lane.b32.xlu1 %v1786_v1, %s1701_s16  ;;  %526 = vrot.lane.b32.xlu0 %v1784_v0, %s1701_s16 }
  0x2e   : > { %432 = vrot.lane.b32.xlu1 %v1786_v1, %s1702_s17  ;;  %430 = vrot.lane.b32.xlu0 %v1784_v0, %s1702_s17 }
  0x32   : > { %720 = vrot.lane.b32.xlu1 %v1786_v1, %s1703_s18  ;;  %718 = vrot.lane.b32.xlu0 %v1784_v0, %s1703_s18 }
  0x36   : > { %624 = vrot.lane.b32.xlu1 %v1786_v1, %s1704_s19  ;;  %622 = vrot.lane.b32.xlu0 %v1784_v0, %s1704_s19 }
  0x3a   : > { %540 = vrot.lane.b32.xlu1 %v1788_v2, %s1701_s16  ;;  %538 = vrot.lane.b32.xlu0 %v1792_v3, %s1701_s16 }
  0x3e   : > { %444 = vrot.lane.b32.xlu1 %v1788_v2, %s1702_s17  ;;  %442 = vrot.lane.b32.xlu0 %v1792_v3, %s1702_s17 }
  0x42   : > { %732 = vrot.lane.b32.xlu1 %v1788_v2, %s1703_s18  ;;  %730 = vrot.lane.b32.xlu0 %v1792_v3, %s1703_s18 }
  0x46   : > { %636 = vrot.lane.b32.xlu1 %v1788_v2, %s1704_s19  ;;  %634 = vrot.lane.b32.xlu0 %v1792_v3, %s1704_s19 }
  0x4a   : > { %552 = vrot.lane.b32.xlu1 %v1786_v1, %s1705_s20  ;;  %550 = vrot.lane.b32.xlu0 %v1784_v0, %s1705_s20 }
  0x4e   : > { %456 = vrot.lane.b32.xlu1 %v1786_v1, %s1706_s21  ;;  %454 = vrot.lane.b32.xlu0 %v1784_v0, %s1706_s21 }
  0x52   : > { %744 = vrot.lane.b32.xlu1 %v1786_v1, %s1707_s22  ;;  %742 = vrot.lane.b32.xlu0 %v1784_v0, %s1707_s22 }
  0x56   : > { %648 = vrot.lane.b32.xlu1 %v1786_v1, %s1708_s23  ;;  %646 = vrot.lane.b32.xlu0 %v1784_v0, %s1708_s23 }
  0x5a   : > { %564 = vrot.lane.b32.xlu1 %v1788_v2, %s1705_s20  ;;  %562 = vrot.lane.b32.xlu0 %v1792_v3, %s1705_s20 }
  0x5e   : > { %468 = vrot.lane.b32.xlu1 %v1788_v2, %s1706_s21  ;;  %466 = vrot.lane.b32.xlu0 %v1792_v3, %s1706_s21 }
  0x62   : > { %756 = vrot.lane.b32.xlu1 %v1788_v2, %s1707_s22  ;;  %754 = vrot.lane.b32.xlu0 %v1792_v3, %s1707_s22 }
  0x66   : > { %660 = vrot.lane.b32.xlu1 %v1788_v2, %s1708_s23  ;;  %658 = vrot.lane.b32.xlu0 %v1792_v3, %s1708_s23 }
  0x6a   : > { %576 = vrot.lane.b32.xlu1 %v1786_v1, %s1709_s24  ;;  %574 = vrot.lane.b32.xlu0 %v1784_v0, %s1709_s24 }
  0x6e   : > { %480 = vrot.lane.b32.xlu1 %v1786_v1, %s1710_s25  ;;  %478 = vrot.lane.b32.xlu0 %v1784_v0, %s1710_s25 }
  0x72   : > { %768 = vrot.lane.b32.xlu1 %v1786_v1, %s1711_s29  ;;  %766 = vrot.lane.b32.xlu0 %v1784_v0, %s1711_s29 }
  0x76   : > { %672 = vrot.lane.b32.xlu1 %v1786_v1, %s1712_s30  ;;  %670 = vrot.lane.b32.xlu0 %v1784_v0, %s1712_s30 }
  0x7a   : > { %588 = vrot.lane.b32.xlu1 %v1788_v2, %s1709_s24  ;;  %586 = vrot.lane.b32.xlu0 %v1792_v3, %s1709_s24 }
  0x7e   : > { %492 = vrot.lane.b32.xlu1 %v1788_v2, %s1710_s25  ;;  %490 = vrot.lane.b32.xlu0 %v1792_v3, %s1710_s25 }
  0x82   : > { %780 = vrot.lane.b32.xlu1 %v1788_v2, %s1711_s29  ;;  %778 = vrot.lane.b32.xlu0 %v1792_v3, %s1711_s29  ;;  %s859_s29 = sld [smem:[#allocation3]] }
  0x84   : > { %v695_v5 = vpop.permute.xlu1 %694  ;;  %v503_v6 = vpop.permute.xlu0 %502 }
  0x85   : > { %700 = vst.msk [vmem:[#allocation2 + $0x180] sm:$0xff] %vm419_vm0, %v695_v5  ;;  %508 = vst.msk [vmem:[#allocation2 + $0x80] sm:$0xff] %vm419_vm0, %v503_v6 }
  0x86   : > { %684 = vrot.lane.b32.xlu1 %v1788_v2, %s1712_s30  ;;  %682 = vrot.lane.b32.xlu0 %v1792_v3, %s1712_s30  ;;  %s1359_s30 = sshll.u32 %s2090_s26, 3 }
  0x87   : > { %s406_s10 = scalar_lea.vmem %s2083_s6, %s1359_s30  ;;  %s416_s12 = scalar_lea.vmem %s2084_s7, %s1359_s30 }
  0x88   : > { %v697_v8 = vpop.permute.xlu1 %696  ;;  %v505_v9 = vpop.permute.xlu0 %504 }
  0x89   : > { %701 = vst.msk [vmem:[#allocation2 + $0x188] sm:$0xff] %vm419_vm0, %v697_v8  ;;  %509 = vst.msk [vmem:[#allocation2 + $0x88] sm:$0xff] %vm419_vm0, %v505_v9 }
  0x8a   : > { %862 = vperm.xlu0 %1673, %v858_v51  }
  0x8c   : > { %v601_v10 = vpop.permute.xlu1 %600  ;;  %v599_v11 = vpop.permute.xlu0 %598  ;;  %v806_v14 = vld [vmem:[#allocation2 + $0x80] sm:$0xff] }
  0x8d   : > { %605 = vst.msk [vmem:[#allocation2 + $0x108] sm:$0xff] %vm419_vm0, %v601_v10  ;;  %604 = vst.msk [vmem:[#allocation2 + $0x100] sm:$0xff] %vm419_vm0, %v599_v11  ;;  %v838_v18 = vld [vmem:[#allocation2 + $0x180] sm:$0xff] }
  0x90   : > { %v517_v15 = vpop.permute.xlu1 %516  ;;  %v515_v16 = vpop.permute.xlu0 %514  ;;  %v807_v17 = vld [vmem:[#allocation2 + $0x88] sm:$0xff] }
  0x91   : > { %v839_v19 = vld [vmem:[#allocation2 + $0x188] sm:$0xff]  ;;  %521 = vst.msk [vmem:[#allocation2 + $0x98] sm:$0xff] %vm419_vm0, %v517_v15  ;;  %520 = vst.msk [vmem:[#allocation2 + $0x90] sm:$0xff] %vm419_vm0, %v515_v16  ;;  %v1876_v21 = vpack.c.bf16 %v807_v17, %v806_v14 }
  0x92   : > { %v1878_v22 = vpack.c.bf16 %v839_v19, %v838_v18 }
  0x93   : > { %1506 = vmatprep.subr.bf16.mxu0 %v1876_v21 }
  0x94   : > { %1538 = vmatprep.subr.bf16.mxu1 %v1878_v22  ;;  %v709_v23 = vpop.permute.xlu1 %708  ;;  %v707_v24 = vpop.permute.xlu0 %706  ;;  %v822_v25 = vld [vmem:[#allocation2 + $0x100] sm:$0xff]  ;;  %v823_v26 = vld [vmem:[#allocation2 + $0x108] sm:$0xff]  ;;  %1508 = vmatpush3.bf16.msra.mxu0 %v1872_v20 }
  0x95   : > { %713 = vst.msk [vmem:[#allocation2 + $0x198] sm:$0xff] %vm419_vm0, %v709_v23  ;;  %712 = vst.msk [vmem:[#allocation2 + $0x190] sm:$0xff] %vm419_vm0, %v707_v24  ;;  %v1885_v27 = vpack.c.bf16 %v823_v26, %v822_v25 }
  0x97   : > { %1540 = vmatpush3.bf16.msra.mxu1 %v1885_v27 }
  0x98   : > { %v613_v30 = vpop.permute.xlu1 %612  ;;  %v611_v31 = vpop.permute.xlu0 %610  ;;  %v808_v32 = vld [vmem:[#allocation2 + $0x90] sm:$0xff]  ;;  %v809_v33 = vld [vmem:[#allocation2 + $0x98] sm:$0xff] }
  0x99   : > { %617 = vst.msk [vmem:[#allocation2 + $0x118] sm:$0xff] %vm419_vm0, %v613_v30  ;;  %616 = vst.msk [vmem:[#allocation2 + $0x110] sm:$0xff] %vm419_vm0, %v611_v31  ;;  %v1892_v35 = vpack.c.bf16 %v809_v33, %v808_v32 }
  0x9b   : > { %1510 = vmatprep.subr.bf16.mxu0 %v1892_v35 }
  0x9c   : > { %v529_v36 = vpop.permute.xlu1 %528  ;;  %v527_v37 = vpop.permute.xlu0 %526  ;;  %v840_v38 = vld [vmem:[#allocation2 + $0x190] sm:$0xff]  ;;  %v841_v39 = vld [vmem:[#allocation2 + $0x198] sm:$0xff]  ;;  %1512 = vmatpush3.bf16.msra.mxu0 %v1888_v34 }
  0x9d   : > { %533 = vst.msk [vmem:[#allocation2 + $0xa8] sm:$0xff] %vm419_vm0, %v529_v36  ;;  %532 = vst.msk [vmem:[#allocation2 + $0xa0] sm:$0xff] %vm419_vm0, %v527_v37  ;;  %v1898_v40 = vpack.c.bf16 %v841_v39, %v840_v38 }
  0x9f   : > { %1542 = vmatprep.subr.bf16.mxu1 %v1898_v40 }
  0xa0   : > { %v433_v41 = vpop.permute.xlu1 %432  ;;  %v431_v42 = vpop.permute.xlu0 %430  ;;  %v824_v43 = vld [vmem:[#allocation2 + $0x110] sm:$0xff]  ;;  %v825_v44 = vld [vmem:[#allocation2 + $0x118] sm:$0xff] }
  0xa1   : > { %437 = vst.msk [vmem:[#allocation2 + $0x28] sm:$0xff] %vm419_vm0, %v433_v41  ;;  %436 = vst.msk [vmem:[#allocation2 + $0x20] sm:$0xff] %vm419_vm0, %v431_v42  ;;  %v1903_v45 = vpack.c.bf16 %v825_v44, %v824_v43 }
  0xa3   : > { %1544 = vmatpush3.bf16.msra.mxu1 %v1903_v45 }
  0xa4   : > { %v721_v46 = vpop.permute.xlu1 %720  ;;  %v719_v47 = vpop.permute.xlu0 %718  ;;  %v810_v48 = vld [vmem:[#allocation2 + $0xa0] sm:$0xff]  ;;  %v811_v49 = vld [vmem:[#allocation2 + $0xa8] sm:$0xff] }
  0xa5   : > { %725 = vst.msk [vmem:[#allocation2 + $0x1a8] sm:$0xff] %vm419_vm0, %v721_v46  ;;  %724 = vst.msk [vmem:[#allocation2 + $0x1a0] sm:$0xff] %vm419_vm0, %v719_v47  ;;  %v1908_v50 = vpack.c.bf16 %v811_v49, %v810_v48 }
  0xa7   : > { %1514 = vmatprep.subr.bf16.mxu0 %v1908_v50 }
  0xa8   : > { %v625_v53 = vpop.permute.xlu1 %624  ;;  %v623_v54 = vpop.permute.xlu0 %622  ;;  %v794_v55 = vld [vmem:[#allocation2 + $0x20] sm:$0xff]  ;;  %v795_v56 = vld [vmem:[#allocation2 + $0x28] sm:$0xff] }
  0xa9   : > { %629 = vst.msk [vmem:[#allocation2 + $0x128] sm:$0xff] %vm419_vm0, %v625_v53  ;;  %628 = vst.msk [vmem:[#allocation2 + $0x120] sm:$0xff] %vm419_vm0, %v623_v54  ;;  %v1916_v57 = vpack.c.bf16 %v795_v56, %v794_v55 }
  0xab   : > { %1516 = vmatpush3.bf16.msra.mxu0 %v1916_v57 }
  0xac   : > { %v541_v58 = vpop.permute.xlu1 %540  ;;  %v539_v59 = vpop.permute.xlu0 %538  ;;  %v842_v60 = vld [vmem:[#allocation2 + $0x1a0] sm:$0xff]  ;;  %v843_v61 = vld [vmem:[#allocation2 + $0x1a8] sm:$0xff] }
  0xad   : > { %545 = vst.msk [vmem:[#allocation2 + $0xb8] sm:$0xff] %vm419_vm0, %v541_v58  ;;  %544 = vst.msk [vmem:[#allocation2 + $0xb0] sm:$0xff] %vm419_vm0, %v539_v59  ;;  %v1921_v62 = vpack.c.bf16 %v843_v61, %v842_v60 }
  0xaf   : > { %1546 = vmatprep.subr.bf16.mxu1 %v1921_v62 }
  0xb0   : > { %v445_v63 = vpop.permute.xlu1 %444  ;;  %v443_v0 = vpop.permute.xlu0 %442  ;;  %v826_v1 = vld [vmem:[#allocation2 + $0x120] sm:$0xff]  ;;  %v827_v2 = vld [vmem:[#allocation2 + $0x128] sm:$0xff] }
  0xb1   : > { %449 = vst.msk [vmem:[#allocation2 + $0x38] sm:$0xff] %vm419_vm0, %v445_v63  ;;  %448 = vst.msk [vmem:[#allocation2 + $0x30] sm:$0xff] %vm419_vm0, %v443_v0  ;;  %v1926_v3 = vpack.c.bf16 %v827_v2, %v826_v1 }
  0xb3   : > { %1548 = vmatpush3.bf16.msra.mxu1 %v1926_v3 }
  0xb4   : > { %v733_v4 = vpop.permute.xlu1 %732  ;;  %v731_v5 = vpop.permute.xlu0 %730  ;;  %v812_v6 = vld [vmem:[#allocation2 + $0xb0] sm:$0xff]  ;;  %v813_v7 = vld [vmem:[#allocation2 + $0xb8] sm:$0xff] }
  0xb5   : > { %737 = vst.msk [vmem:[#allocation2 + $0x1b8] sm:$0xff] %vm419_vm0, %v733_v4  ;;  %736 = vst.msk [vmem:[#allocation2 + $0x1b0] sm:$0xff] %vm419_vm0, %v731_v5  ;;  %v1931_v8 = vpack.c.bf16 %v813_v7, %v812_v6 }
  0xb7   : > { %1518 = vmatprep.subr.bf16.mxu0 %v1931_v8 }
  0xb8   : > { %v637_v9 = vpop.permute.xlu1 %636  ;;  %v635_v10 = vpop.permute.xlu0 %634  ;;  %v796_v11 = vld [vmem:[#allocation2 + $0x30] sm:$0xff]  ;;  %v797_v12 = vld [vmem:[#allocation2 + $0x38] sm:$0xff] }
  0xb9   : > { %641 = vst.msk [vmem:[#allocation2 + $0x138] sm:$0xff] %vm419_vm0, %v637_v9  ;;  %640 = vst.msk [vmem:[#allocation2 + $0x130] sm:$0xff] %vm419_vm0, %v635_v10  ;;  %v1936_v13 = vpack.c.bf16 %v797_v12, %v796_v11 }
  0xbb   : > { %1520 = vmatpush3.bf16.msra.mxu0 %v1936_v13 }
  0xbc   : > { %v553_v14 = vpop.permute.xlu1 %552  ;;  %v551_v15 = vpop.permute.xlu0 %550  ;;  %v844_v16 = vld [vmem:[#allocation2 + $0x1b0] sm:$0xff]  ;;  %v845_v17 = vld [vmem:[#allocation2 + $0x1b8] sm:$0xff] }
  0xbd   : > { %557 = vst.msk [vmem:[#allocation2 + $0xc8] sm:$0xff] %vm419_vm0, %v553_v14  ;;  %556 = vst.msk [vmem:[#allocation2 + $0xc0] sm:$0xff] %vm419_vm0, %v551_v15  ;;  %v1941_v18 = vpack.c.bf16 %v845_v17, %v844_v16 }
  0xbf   : > { %1550 = vmatprep.subr.bf16.mxu1 %v1941_v18 }
  0xc0   : > { %v457_v19 = vpop.permute.xlu1 %456  ;;  %v455_v23 = vpop.permute.xlu0 %454  ;;  %v828_v24 = vld [vmem:[#allocation2 + $0x130] sm:$0xff]  ;;  %v829_v25 = vld [vmem:[#allocation2 + $0x138] sm:$0xff] }
  0xc1   : > { %461 = vst.msk [vmem:[#allocation2 + $0x48] sm:$0xff] %vm419_vm0, %v457_v19  ;;  %460 = vst.msk [vmem:[#allocation2 + $0x40] sm:$0xff] %vm419_vm0, %v455_v23  ;;  %v1946_v26 = vpack.c.bf16 %v829_v25, %v828_v24 }
  0xc3   : > { %1552 = vmatpush3.bf16.msra.mxu1 %v1946_v26 }
  0xc4   : > { %v745_v28 = vpop.permute.xlu1 %744  ;;  %v743_v29 = vpop.permute.xlu0 %742  ;;  %v814_v30 = vld [vmem:[#allocation2 + $0xc0] sm:$0xff]  ;;  %v815_v31 = vld [vmem:[#allocation2 + $0xc8] sm:$0xff] }
  0xc5   : > { %749 = vst.msk [vmem:[#allocation2 + $0x1c8] sm:$0xff] %vm419_vm0, %v745_v28  ;;  %748 = vst.msk [vmem:[#allocation2 + $0x1c0] sm:$0xff] %vm419_vm0, %v743_v29  ;;  %v1951_v32 = vpack.c.bf16 %v815_v31, %v814_v30 }
  0xc7   : > { %1522 = vmatprep.subr.bf16.mxu0 %v1951_v32 }
  0xc8   : > { %v649_v33 = vpop.permute.xlu1 %648  ;;  %v647_v36 = vpop.permute.xlu0 %646  ;;  %v798_v37 = vld [vmem:[#allocation2 + $0x40] sm:$0xff]  ;;  %v799_v38 = vld [vmem:[#allocation2 + $0x48] sm:$0xff] }
  0xc9   : > { %653 = vst.msk [vmem:[#allocation2 + $0x148] sm:$0xff] %vm419_vm0, %v649_v33  ;;  %652 = vst.msk [vmem:[#allocation2 + $0x140] sm:$0xff] %vm419_vm0, %v647_v36  ;;  %v1956_v39 = vpack.c.bf16 %v799_v38, %v798_v37 }
  0xcb   : > { %1524 = vmatpush3.bf16.msra.mxu0 %v1956_v39 }
  0xcc   : > { %v565_v41 = vpop.permute.xlu1 %564  ;;  %v563_v42 = vpop.permute.xlu0 %562  ;;  %v846_v43 = vld [vmem:[#allocation2 + $0x1c0] sm:$0xff]  ;;  %v847_v44 = vld [vmem:[#allocation2 + $0x1c8] sm:$0xff] }
  0xcd   : > { %569 = vst.msk [vmem:[#allocation2 + $0xd8] sm:$0xff] %vm419_vm0, %v565_v41  ;;  %568 = vst.msk [vmem:[#allocation2 + $0xd0] sm:$0xff] %vm419_vm0, %v563_v42  ;;  %v1961_v46 = vpack.c.bf16 %v847_v44, %v846_v43 }
  0xcf   : > { %1554 = vmatprep.subr.bf16.mxu1 %v1961_v46 }
  0xd0   : > { %v469_v47 = vpop.permute.xlu1 %468  ;;  %v467_v48 = vpop.permute.xlu0 %466  ;;  %v830_v49 = vld [vmem:[#allocation2 + $0x140] sm:$0xff]  ;;  %v831_v51 = vld [vmem:[#allocation2 + $0x148] sm:$0xff] }
  0xd1   : > { %473 = vst.msk [vmem:[#allocation2 + $0x58] sm:$0xff] %vm419_vm0, %v469_v47  ;;  %472 = vst.msk [vmem:[#allocation2 + $0x50] sm:$0xff] %vm419_vm0, %v467_v48  ;;  %v1966_v52 = vpack.c.bf16 %v831_v51, %v830_v49 }
  0xd3   : > { %1556 = vmatpush3.bf16.msra.mxu1 %v1966_v52 }
  0xd4   : > { %v757_v53 = vpop.permute.xlu1 %756  ;;  %v755_v54 = vpop.permute.xlu0 %754  ;;  %v816_v55 = vld [vmem:[#allocation2 + $0xd0] sm:$0xff]  ;;  %v817_v56 = vld [vmem:[#allocation2 + $0xd8] sm:$0xff] }
  0xd5   : > { %761 = vst.msk [vmem:[#allocation2 + $0x1d8] sm:$0xff] %vm419_vm0, %v757_v53  ;;  %760 = vst.msk [vmem:[#allocation2 + $0x1d0] sm:$0xff] %vm419_vm0, %v755_v54  ;;  %v1971_v58 = vpack.c.bf16 %v817_v56, %v816_v55 }
  0xd7   : > { %1526 = vmatprep.subr.bf16.mxu0 %v1971_v58 }
  0xd8   : > { %v661_v59 = vpop.permute.xlu1 %660  ;;  %v659_v60 = vpop.permute.xlu0 %658  ;;  %v800_v61 = vld [vmem:[#allocation2 + $0x50] sm:$0xff]  ;;  %v801_v63 = vld [vmem:[#allocation2 + $0x58] sm:$0xff] }
  0xd9   : > { %665 = vst.msk [vmem:[#allocation2 + $0x158] sm:$0xff] %vm419_vm0, %v661_v59  ;;  %664 = vst.msk [vmem:[#allocation2 + $0x150] sm:$0xff] %vm419_vm0, %v659_v60  ;;  %v1976_v0 = vpack.c.bf16 %v801_v63, %v800_v61  ;;  %v786_v61 = vld [vmem:[%s2079_s2] sm:$0xff] }
  0xdb   : > { %1528 = vmatpush3.bf16.msra.mxu0 %v1976_v0 }
  0xdc   : > { %v577_v1 = vpop.permute.xlu1 %576  ;;  %v575_v2 = vpop.permute.xlu0 %574  ;;  %v848_v4 = vld [vmem:[#allocation2 + $0x1d0] sm:$0xff]  ;;  %v849_v5 = vld [vmem:[#allocation2 + $0x1d8] sm:$0xff] }
  0xdd   : > { %581 = vst.msk [vmem:[#allocation2 + $0xe8] sm:$0xff] %vm419_vm0, %v577_v1  ;;  %580 = vst.msk [vmem:[#allocation2 + $0xe0] sm:$0xff] %vm419_vm0, %v575_v2  ;;  %v1981_v6 = vpack.c.bf16 %v849_v5, %v848_v4  ;;  %v855_v4 = vld [vmem:[%s2080_s3 + $0x8] sm:$0xff] }
  0xdf   : > { %1558 = vmatprep.subr.bf16.mxu1 %v1981_v6 }
  0xe0   : > { %v481_v7 = vpop.permute.xlu1 %480  ;;  %v479_v9 = vpop.permute.xlu0 %478  ;;  %v832_v10 = vld [vmem:[#allocation2 + $0x150] sm:$0xff]  ;;  %v833_v11 = vld [vmem:[#allocation2 + $0x158] sm:$0xff] }
  0xe1   : > { %485 = vst.msk [vmem:[#allocation2 + $0x68] sm:$0xff] %vm419_vm0, %v481_v7  ;;  %484 = vst.msk [vmem:[#allocation2 + $0x60] sm:$0xff] %vm419_vm0, %v479_v9  ;;  %v1986_v12 = vpack.c.bf16 %v833_v11, %v832_v10 }
  0xe3   : > { %1560 = vmatpush3.bf16.msra.mxu1 %v1986_v12 }
  0xe4   : > { %v769_v14 = vpop.permute.xlu1 %768  ;;  %v767_v15 = vpop.permute.xlu0 %766  ;;  %v818_v16 = vld [vmem:[#allocation2 + $0xe0] sm:$0xff]  ;;  %v819_v17 = vld [vmem:[#allocation2 + $0xe8] sm:$0xff] }
  0xe5   : > { %773 = vst.msk [vmem:[#allocation2 + $0x1e8] sm:$0xff] %vm419_vm0, %v769_v14  ;;  %772 = vst.msk [vmem:[#allocation2 + $0x1e0] sm:$0xff] %vm419_vm0, %v767_v15  ;;  %v1991_v19 = vpack.c.bf16 %v819_v17, %v818_v16 }
  0xe7   : > { %1530 = vmatprep.subr.bf16.mxu0 %v1991_v19 }
  0xe8   : > { %v673_v23 = vpop.permute.xlu1 %672  ;;  %v671_v24 = vpop.permute.xlu0 %670  ;;  %v802_v25 = vld [vmem:[#allocation2 + $0x60] sm:$0xff]  ;;  %v803_v28 = vld [vmem:[#allocation2 + $0x68] sm:$0xff] }
  0xe9   : > { %677 = vst.msk [vmem:[#allocation2 + $0x168] sm:$0xff] %vm419_vm0, %v673_v23  ;;  %676 = vst.msk [vmem:[#allocation2 + $0x160] sm:$0xff] %vm419_vm0, %v671_v24  ;;  %v1996_v29 = vpack.c.bf16 %v803_v28, %v802_v25 }
  0xeb   : > { %1532 = vmatpush3.bf16.msra.mxu0 %v1996_v29 }
  0xec   : > { %v589_v30 = vpop.permute.xlu1 %588  ;;  %v587_v31 = vpop.permute.xlu0 %586  ;;  %v850_v33 = vld [vmem:[#allocation2 + $0x1e0] sm:$0xff]  ;;  %v851_v36 = vld [vmem:[#allocation2 + $0x1e8] sm:$0xff] }
  0xed   : > { %593 = vst.msk [vmem:[#allocation2 + $0xf8] sm:$0xff] %vm419_vm0, %v589_v30  ;;  %592 = vst.msk [vmem:[#allocation2 + $0xf0] sm:$0xff] %vm419_vm0, %v587_v31  ;;  %v2001_v37 = vpack.c.bf16 %v851_v36, %v850_v33 }
  0xef   : > { %1562 = vmatprep.subr.bf16.mxu1 %v2001_v37 }
  0xf0   : > { %v493_v38 = vpop.permute.xlu1 %492  ;;  %v491_v41 = vpop.permute.xlu0 %490  ;;  %v834_v42 = vld [vmem:[#allocation2 + $0x160] sm:$0xff]  ;;  %v835_v43 = vld [vmem:[#allocation2 + $0x168] sm:$0xff] }
  0xf1   : > { %497 = vst.msk [vmem:[#allocation2 + $0x78] sm:$0xff] %vm419_vm0, %v493_v38  ;;  %496 = vst.msk [vmem:[#allocation2 + $0x70] sm:$0xff] %vm419_vm0, %v491_v41  ;;  %v2006_v44 = vpack.c.bf16 %v835_v43, %v834_v42 }
  0xf3   : > { %1564 = vmatpush3.bf16.msra.mxu1 %v2006_v44 }
  0xf4   : > { %v781_v47 = vpop.permute.xlu1 %780  ;;  %v779_v48 = vpop.permute.xlu0 %778  ;;  %v820_v49 = vld [vmem:[#allocation2 + $0xf0] sm:$0xff]  ;;  %v821_v51 = vld [vmem:[#allocation2 + $0xf8] sm:$0xff] }
  0xf5   : > { %785 = vst.msk [vmem:[#allocation2 + $0x1f8] sm:$0xff] %vm419_vm0, %v781_v47  ;;  %784 = vst.msk [vmem:[#allocation2 + $0x1f0] sm:$0xff] %vm419_vm0, %v779_v48  ;;  %v1533_v53 = vpack.c.bf16 %v821_v51, %v820_v49 }
  0xf7   : > { %1534 = vmatprep.subr.bf16.mxu0 %v1533_v53 }
  0xf8   : > { %v685_v54 = vpop.permute.xlu1 %684  ;;  %v683_v55 = vpop.permute.xlu0 %682  ;;  %v804_v56 = vld [vmem:[#allocation2 + $0x70] sm:$0xff]  ;;  %v805_v59 = vld [vmem:[#allocation2 + $0x78] sm:$0xff] }
  0xf9   : > { %689 = vst.msk [vmem:[#allocation2 + $0x178] sm:$0xff] %vm419_vm0, %v685_v54  ;;  %688 = vst.msk [vmem:[#allocation2 + $0x170] sm:$0xff] %vm419_vm0, %v683_v55  ;;  %v1535_v60 = vpack.c.bf16 %v805_v59, %v804_v56 }
  0xfb   : > { %1536 = vmatpush3.bf16.msra.mxu0 %v1535_v60 }
  0xfc   : > { %1570 = vmatprep.subr.bf16.mxu0 %v1876_v21  ;;  %v852_v63 = vld [vmem:[#allocation2 + $0x1f0] sm:$0xff]  ;;  %v853_v1 = vld [vmem:[#allocation2 + $0x1f8] sm:$0xff] }
  0xfd   : > { %v1565_v2 = vpack.c.bf16 %v853_v1, %v852_v63  ;;  %v788_v21 = vld [vmem:[%s2079_s2 + $0x10] sm:$0xff] }
  0xfe   : > { %930 = vmatmul.mubr.f32.vlgmr.msra.gmra.mrb[0].mxu0 %v786_v61 }
  0xff   : > { %1566 = vmatprep.subr.bf16.mxu1 %v1565_v2  ;;  %1572 = vmatpush3.bf16.msra.mxu0 %v1872_v20  ;;  %v857_v20 = vld [vmem:[%s2080_s3 + $0x18] sm:$0xff] }
 0x100   : > { %1574 = vmatprep.subr.bf16.mxu0 %v1892_v35  ;;  %v836_v5 = vld [vmem:[#allocation2 + $0x170] sm:$0xff]  ;;  %v837_v7 = vld [vmem:[#allocation2 + $0x178] sm:$0xff]  ;;  %1069 = vmatprep.mubr.f32.mxu0 %v855_v4 }
 0x101   : > { %v1567_v9 = vpack.c.bf16 %v837_v7, %v836_v5 }
 0x103   : > { %1568 = vmatpush3.bf16.msra.mxu1 %v1567_v9  ;;  %1576 = vmatpush3.bf16.msra.mxu0 %v1888_v34 }
 0x104   : > { %1578 = vmatprep.subr.bf16.mxu0 %v1908_v50  ;;  %1602 = vmatprep.subr.bf16.mxu1 %v1878_v22  ;;  %v854_v22 = vld [vmem:[%s2080_s3] sm:$0xff] }
 0x106   : > { %1000 = vmatmul.mubr.f32.vlgmr.msra.gmra.mrb[0].mxu1 %v788_v21 }
 0x107   : > { %1580 = vmatpush3.bf16.msra.mxu0 %v1916_v57  ;;  %1604 = vmatpush3.bf16.msra.mxu1 %v1885_v27  ;;  %v856_v27 = vld [vmem:[%s2080_s3 + $0x10] sm:$0xff] }
 0x108   : > { %1582 = vmatprep.subr.bf16.mxu0 %v1931_v8  ;;  %1606 = vmatprep.subr.bf16.mxu1 %v1898_v40  ;;  %v1146_v8 = vstv %s859_s29 }
 0x109   : > { %1139 = vmatprep.mubr.f32.mxu1 %v857_v20 }
 0x10b   : > { %1584 = vmatpush3.bf16.msra.mxu0 %v1936_v13  ;;  %1608 = vmatpush3.bf16.msra.mxu1 %v1903_v45  ;;  %v863_v45 = vpop.permute.xlu0 %862 }
 0x10c   : > { %1586 = vmatprep.subr.bf16.mxu0 %v1951_v32  ;;  %1610 = vmatprep.subr.bf16.mxu1 %v1921_v62 }
 0x10f   : > { %1588 = vmatpush3.bf16.msra.mxu0 %v1956_v39  ;;  %1612 = vmatpush3.bf16.msra.mxu1 %v1926_v3 }
 0x110   : > { %1590 = vmatprep.subr.bf16.mxu0 %v1971_v58  ;;  %1614 = vmatprep.subr.bf16.mxu1 %v1941_v18 }
 0x113   : > { %1592 = vmatpush3.bf16.msra.mxu0 %v1976_v0  ;;  %1616 = vmatpush3.bf16.msra.mxu1 %v1946_v26 }
 0x114   : > { %1594 = vmatprep.subr.bf16.mxu0 %v1991_v19  ;;  %1618 = vmatprep.subr.bf16.mxu1 %v1961_v46 }
 0x117   : > { %1596 = vmatpush3.bf16.msra.mxu0 %v1996_v29  ;;  %1620 = vmatpush3.bf16.msra.mxu1 %v1966_v52 }
 0x118   : > { %1598 = vmatprep.subr.bf16.mxu0 %v1533_v53  ;;  %1622 = vmatprep.subr.bf16.mxu1 %v1981_v6 }
 0x11b   : > { %1600 = vmatpush3.bf16.msra.mxu0 %v1535_v60  ;;  %1624 = vmatpush3.bf16.msra.mxu1 %v1986_v12 }
 0x11c   : > { %1626 = vmatprep.subr.bf16.mxu1 %v2001_v37 }
 0x11e   : > { %1070 = vmatmul.mubr.f32.vlgmr.msra.gmra.mrb[2].mxu0 %v854_v22 }
 0x11f   : > { %1628 = vmatpush3.bf16.msra.mxu1 %v2006_v44 }
 0x120   : > { %1630 = vmatprep.subr.bf16.mxu1 %v1565_v2 }
 0x123   : > { %1632 = vmatpush3.bf16.msra.mxu1 %v1567_v9 }
 0x126   : > { %1140 = vmatmul.mubr.f32.vlgmr.msra.gmra.mrb[2].mxu1 %v856_v27 }
 0x1d1   : > { %v1397_v34 = vpop.f32.mrb[0].mxu0 }
 0x1d2   : > { %v1398_v35 = vpop.f32.mrb[1].mxu0 }
 0x1d3   : > { %v1399_v40 = vadd.f32 %v1398_v35, %v1397_v34 }
 0x1d5   : > { %v932_v57 = vadd.f32 %v1399_v40, %v863_v45 }
 0x1d9   : > { %v1432_v50 = vpop.f32.mrb[0].mxu1 }
 0x1da   : > { %v1433_v62 = vpop.f32.mrb[1].mxu1 }
 0x1db   : > { %v1434_v3 = vadd.f32 %v1433_v62, %v1432_v50 }
 0x1dd   : > { %v1002_v13 = vadd.f32 %v1434_v3, %v932_v57 }
 0x1df   : > { %vm1145_vm1 = vcmp.gt.f32.partialorder %v1002_v13, 0.0  ;;  %v1147_v18 = vmul.f32 %v1146_v8, %v1002_v13 }
 0x1e1   : > { %v1148_v26 = vsel %vm1145_vm1, %v1002_v13, %v1147_v18 }
 0x1e2   : > { %1149 = vst.msk [vmem:[%s406_s10] sm:$0xff] %vm419_vm0, %v1148_v26 }
 0x1f1   : > { %v1467_v32 = vpop.f32.mrb[2].mxu0 }
 0x1f2   : > { %v1468_v39 = vpop.f32.mrb[3].mxu0 }
 0x1f3   : > { %v1469_v46 = vadd.f32 %v1468_v39, %v1467_v32 }
 0x1f5   : > { %v1072_v52 = vadd.f32 %v1469_v46, %v863_v45 }
 0x1f9   : > { %v1502_v58 = vpop.f32.mrb[2].mxu1 }
 0x1fa   : > { %v1503_v0 = vpop.f32.mrb[3].mxu1 }
 0x1fb   : > { %v1504_v6 = vadd.f32 %v1503_v0, %v1502_v58 }
 0x1fd   : > { %v1142_v10 = vadd.f32 %v1504_v6, %v1072_v52 }
 0x1ff   : > { %vm1150_vm2 = vcmp.gt.f32.partialorder %v1142_v10, 0.0  ;;  %v1151_v11 = vmul.f32 %v1146_v8, %v1142_v10 }
 0x201   : > { %v1152_v12 = vsel %vm1150_vm2, %v1142_v10, %v1151_v11 }
 0x202   : > { %1153 = vst.msk [vmem:[%s416_s12] sm:$0xff] %vm419_vm0, %v1152_v12 }
 0x203 PF: > { %s19_s28 = sadd.s32 1, %s1696_s28   ;;  %s2085_s26 = smov %s1692_s27 }
 0x204   : > { %p16_p5 = scmp.ge.s32.totalorder %s19_s28, 4   ;;  %s2086_s27 = smov %s2088_s5 }
 0x206   :  { %18 = sbr.rel (!%p16_p5) target bundleno = 2 (0x2), region = 98 }

// kernel: segan_generator_forward.10
= control target key start
LH: loop header
LB: loop body
LE: loop exit
PB: predicated region body
PF: predicated region fallthrough
CT: control target
= control target key end

     0   :  { %s1260_s26 = smov 0   ;;  %s1262_s27 = smov 0   ;;  %s1354_s0 = inlined_call_operand.vmem [shape: f32[2,8,19], index: 0, kind: input, shape index: {}]   ;;  %s1355_s1 = inlined_call_operand.vmem [shape: f32[2,8,19], index: 1, kind: input, shape index: {}]   ;;  %s1356_s2 = inlined_call_operand.vmem [shape: f32[4,256], index: 2, kind: input, shape index: {}]   ;;  %s1357_s3 = inlined_call_operand.vmem [shape: f32[4,256], index: 3, kind: input, shape index: {}]   ;;  %s1358_s4 = inlined_call_operand.vmem [shape: f32[4,1], index: 4, kind: input, shape index: {}]   ;;  %s1359_s5 = inlined_call_operand.<no memory space> [shape: f32[1], index: 5, kind: input, shape index: {}]   ;;  %s1360_s6 = inlined_call_operand.vmem [shape: f32[2,4,4], index: 6, kind: output, shape index: {0}]   ;;  %s1361_s7 = inlined_call_operand.vmem [shape: f32[2,4,4], index: 7, kind: output, shape index: {1}]  }
   0x1   :  { %13 = sst [smem:[#allocation3]] %s1359_s5  ;;  %s1264_s28 = smov 0  }
   0x2 LB: > { %s34_s5 = sadd.s32 1, %s1195_s27  ;;  %p993_p0 = scmp.ge.s32.totalorder %s1199_s28, 1  ;;  %s1199_s28 = sphi %s1264_s28, %s19_s28   ;;  %s1195_s27 = sphi %s1262_s27, %s1363_s27   ;;  %s1191_s26 = sphi %s1260_s26, %s1362_s26  }
   0x3   : > { %p36_p1 = scmp.ge.s32.totalorder %s34_s5, 2  ;;  %p305_p2 = scmp.lt.s32.totalorder %s1199_s28, 3 }
   0x5   : > { %s1365_s5 = smov (%p36_p1, %s34_s5), 0  ;;  %p306_p3 = pnand %p993_p0, %p305_p2 }
   0x6   : > { %p369_p4 = scmp.lt.s32.totalorder (!%p306_p3), %s1191_s26, 1  ;;  %vm412_vm0 = vcmask (!%p306_p3), 31744   ;;  %s1201_s13 = smov (!%p306_p3), 119   ;;  %v1292_v2 = vld [vmem:[%s1356_s2] sm:$0xff] (!%p306_p3)  ;;  %v1216_v6 = vmov (!%p306_p3), 0   ;;  %vm787_vm1 = vcmask (!%p306_p3), 27648  }
   0x7   : > { %309 = sbr.rel (%p306_p3) target bundleno = 423 (0x1a7), region = 44  ;;  %s1202_s14 = smov (!%p306_p3), 120   ;;  %v1297_v3 = vld [vmem:[%s1357_s3] sm:$0xff] (!%p306_p3)  ;;  %v638_v4 = vcombine.high (!%p306_p3), %v1292_v2, %v1292_v2  ;;  %1174 = vset.pattern.permute.xlu0 (!%p306_p3), %v1216_v6 }
   0x8   : > { %s1203_s15 = smov (!%p306_p3), 127   ;;  %s1204_s16 = smov (!%p306_p3), 118   ;;  %v711_v5 = vcombine.high (!%p306_p3), %v1297_v3, %v1297_v3  ;;  %v630_v7 = vld [vmem:[%s1358_s4] sm:$0xf] (!%p306_p3) }
   0x9   : > { %s1205_s17 = smov (!%p306_p3), 126   ;;  %s1206_s18 = smov (!%p306_p3), 117   ;;  %704 = vmatprep.mubr.f32.mxu0 (!%p306_p3), %v638_v4 }
   0xa   : > { %s1207_s19 = smov (!%p306_p3), 125   ;;  %s1208_s20 = smov (!%p306_p3), 116   ;;  %777 = vmatprep.mubr.f32.mxu1 (!%p306_p3), %v711_v5 }
   0xb   : > { %s1209_s21 = smov (!%p306_p3), 124   ;;  %s1210_s22 = smov (!%p306_p3), 115  }
   0xc   : > { %s1211_s23 = smov (!%p306_p3), 123   ;;  %s1212_s24 = smov (!%p306_p3), 114  }
   0xd   : > { %s1213_s25 = smov (!%p306_p3), 122   ;;  %s1215_s11 = smov (!%p306_p3), 121  }
   0xe   : > { %s1367_s26 = smov (!%p369_p4, %s1191_s26), 1 }
   0xf   : > { %s994_s29 = sshll.u32 %s1367_s26, 3 }
  0x10   : > { %s372_s9 = scalar_lea.vmem %s1354_s0, %s994_s29  ;;  %s376_s12 = scalar_lea.vmem %s1355_s1, %s994_s29 }
  0x11   : > { %v512_v0 = vld [vmem:[%s372_s9] sm:$0xff]  ;;  %s1214_s29 = smov 113  }
  0x12   : > { %v518_v1 = vld [vmem:[%s376_s12] sm:$0xff]  ;;  %514 = vrot.lane.b32.xlu1 %v512_v0, %s1201_s13  ;;  %502 = vrot.lane.b32.xlu0 %v512_v0, %s1202_s14  ;;  %413 = vst.msk [vmem:[#allocation2] sm:$0xff] %vm412_vm0, %v512_v0 }
  0x13   : > { %415 = vst.msk [vmem:[#allocation2 + $0x8] sm:$0xff] %vm412_vm0, %v518_v1 }
  0x16   : > { %520 = vrot.lane.b32.xlu1 %v518_v1, %s1201_s13  ;;  %508 = vrot.lane.b32.xlu0 %v518_v1, %s1202_s14  ;;  %s631_s14 = sld [smem:[#allocation3]] }
  0x19   : > { %v597_v14 = vld [vmem:[#allocation2] sm:$0xff] }
  0x1a   : > { %424 = vrot.lane.b32.xlu1 %v518_v1, %s1203_s15  ;;  %418 = vrot.lane.b32.xlu0 %v512_v0, %s1203_s15  ;;  %v598_v15 = vld [vmem:[#allocation2 + $0x8] sm:$0xff]  ;;  %s996_s15 = sshll.u32 %s1367_s26, 2 }
  0x1b   : > { %v1072_v20 = vpack.c.bf16 %v598_v15, %v597_v14 }
  0x1e   : > { %532 = vrot.lane.b32.xlu1 %v518_v1, %s1204_s16  ;;  %526 = vrot.lane.b32.xlu0 %v512_v0, %s1204_s16 }
  0x22   : > { %436 = vrot.lane.b32.xlu1 %v518_v1, %s1205_s17  ;;  %430 = vrot.lane.b32.xlu0 %v512_v0, %s1205_s17 }
  0x26   : > { %544 = vrot.lane.b32.xlu1 %v518_v1, %s1206_s18  ;;  %538 = vrot.lane.b32.xlu0 %v512_v0, %s1206_s18  ;;  %s400_s18 = scalar_lea.vmem %s1360_s6, %s996_s15 }
  0x2a   : > { %448 = vrot.lane.b32.xlu1 %v518_v1, %s1207_s19  ;;  %442 = vrot.lane.b32.xlu0 %v512_v0, %s1207_s19 }
  0x2e   : > { %556 = vrot.lane.b32.xlu1 %v518_v1, %s1208_s20  ;;  %550 = vrot.lane.b32.xlu0 %v512_v0, %s1208_s20 }
  0x32   : > { %460 = vrot.lane.b32.xlu1 %v518_v1, %s1209_s21  ;;  %454 = vrot.lane.b32.xlu0 %v512_v0, %s1209_s21  ;;  %s410_s21 = scalar_lea.vmem %s1361_s7, %s996_s15 }
  0x36   : > { %568 = vrot.lane.b32.xlu1 %v518_v1, %s1210_s22  ;;  %562 = vrot.lane.b32.xlu0 %v512_v0, %s1210_s22 }
  0x3a   : > { %472 = vrot.lane.b32.xlu1 %v518_v1, %s1211_s23  ;;  %466 = vrot.lane.b32.xlu0 %v512_v0, %s1211_s23 }
  0x3e   : > { %580 = vrot.lane.b32.xlu1 %v518_v1, %s1212_s24  ;;  %574 = vrot.lane.b32.xlu0 %v512_v0, %s1212_s24 }
  0x42   : > { %484 = vrot.lane.b32.xlu1 %v518_v1, %s1213_s25  ;;  %478 = vrot.lane.b32.xlu0 %v512_v0, %s1213_s25 }
  0x46   : > { %592 = vrot.lane.b32.xlu1 %v518_v1, %s1214_s29  ;;  %586 = vrot.lane.b32.xlu0 %v512_v0, %s1214_s29 }
  0x4a   : > { %496 = vrot.lane.b32.xlu1 %v518_v1, %s1215_s11  ;;  %490 = vrot.lane.b32.xlu0 %v512_v0, %s1215_s11 }
  0x4e   : > { %634 = vperm.xlu0 %1174, %v630_v7  }
  0x84   : > { %v515_v8 = vpop.permute.xlu1 %514  ;;  %v503_v9 = vpop.permute.xlu0 %502 }
  0x85   : > { %517 = vst.msk [vmem:[#allocation2 + $0x90] sm:$0xff] %vm412_vm0, %v515_v8  ;;  %505 = vst.msk [vmem:[#allocation2 + $0x80] sm:$0xff] %vm412_vm0, %v503_v9 }
  0x88   : > { %v521_v10 = vpop.permute.xlu1 %520  ;;  %v509_v11 = vpop.permute.xlu0 %508 }
  0x89   : > { %523 = vst.msk [vmem:[#allocation2 + $0x98] sm:$0xff] %vm412_vm0, %v521_v10  ;;  %511 = vst.msk [vmem:[#allocation2 + $0x88] sm:$0xff] %vm412_vm0, %v509_v11 }
  0x8c   : > { %v425_v12 = vpop.permute.xlu1 %424  ;;  %v419_v13 = vpop.permute.xlu0 %418  ;;  %v613_v18 = vld [vmem:[#allocation2 + $0x80] sm:$0xff]  ;;  %v615_v23 = vld [vmem:[#allocation2 + $0x90] sm:$0xff] }
  0x8d   : > { %427 = vst.msk [vmem:[#allocation2 + $0x18] sm:$0xff] %vm412_vm0, %v425_v12  ;;  %421 = vst.msk [vmem:[#allocation2 + $0x10] sm:$0xff] %vm412_vm0, %v419_v13 }
  0x90   : > { %v533_v16 = vpop.permute.xlu1 %532  ;;  %v527_v17 = vpop.permute.xlu0 %526  ;;  %v614_v19 = vld [vmem:[#allocation2 + $0x88] sm:$0xff]  ;;  %v616_v21 = vld [vmem:[#allocation2 + $0x98] sm:$0xff] }
  0x91   : > { %535 = vst.msk [vmem:[#allocation2 + $0xa8] sm:$0xff] %vm412_vm0, %v533_v16  ;;  %529 = vst.msk [vmem:[#allocation2 + $0xa0] sm:$0xff] %vm412_vm0, %v527_v17  ;;  %v1070_v22 = vpack.c.bf16 %v614_v19, %v613_v18  ;;  %v1074_v24 = vpack.c.bf16 %v616_v21, %v615_v23 }
  0x93   : > { %1071 = vmatprep.subr.bf16.mxu0 %v1070_v22  ;;  %1103 = vmatprep.subr.bf16.mxu1 %v1070_v22 }
  0x94   : > { %v437_v25 = vpop.permute.xlu1 %436  ;;  %v431_v26 = vpop.permute.xlu0 %430  ;;  %1073 = vmatpush3.bf16.msra.mxu0 %v1072_v20  ;;  %1105 = vmatpush3.bf16.msra.mxu1 %v1072_v20  ;;  %v599_v27 = vld [vmem:[#allocation2 + $0x10] sm:$0xff]  ;;  %v600_v28 = vld [vmem:[#allocation2 + $0x18] sm:$0xff] }
  0x95   : > { %439 = vst.msk [vmem:[#allocation2 + $0x28] sm:$0xff] %vm412_vm0, %v437_v25  ;;  %433 = vst.msk [vmem:[#allocation2 + $0x20] sm:$0xff] %vm412_vm0, %v431_v26  ;;  %1075 = vmatprep.subr.bf16.mxu0 %v1074_v24  ;;  %1107 = vmatprep.subr.bf16.mxu1 %v1074_v24  ;;  %v1076_v29 = vpack.c.bf16 %v600_v28, %v599_v27 }
  0x98   : > { %v545_v30 = vpop.permute.xlu1 %544  ;;  %v539_v31 = vpop.permute.xlu0 %538  ;;  %1077 = vmatpush3.bf16.msra.mxu0 %v1076_v29  ;;  %1109 = vmatpush3.bf16.msra.mxu1 %v1076_v29  ;;  %v617_v32 = vld [vmem:[#allocation2 + $0xa0] sm:$0xff]  ;;  %v618_v33 = vld [vmem:[#allocation2 + $0xa8] sm:$0xff] }
  0x99   : > { %547 = vst.msk [vmem:[#allocation2 + $0xb8] sm:$0xff] %vm412_vm0, %v545_v30  ;;  %541 = vst.msk [vmem:[#allocation2 + $0xb0] sm:$0xff] %vm412_vm0, %v539_v31  ;;  %v1078_v34 = vpack.c.bf16 %v618_v33, %v617_v32  ;;  %v784_v31 = vstv %s631_s14 }
  0x9b   : > { %1079 = vmatprep.subr.bf16.mxu0 %v1078_v34  ;;  %1111 = vmatprep.subr.bf16.mxu1 %v1078_v34 }
  0x9c   : > { %v449_v35 = vpop.permute.xlu1 %448  ;;  %v443_v36 = vpop.permute.xlu0 %442  ;;  %v601_v37 = vld [vmem:[#allocation2 + $0x20] sm:$0xff]  ;;  %v602_v38 = vld [vmem:[#allocation2 + $0x28] sm:$0xff] }
  0x9d   : > { %451 = vst.msk [vmem:[#allocation2 + $0x38] sm:$0xff] %vm412_vm0, %v449_v35  ;;  %445 = vst.msk [vmem:[#allocation2 + $0x30] sm:$0xff] %vm412_vm0, %v443_v36  ;;  %v1080_v39 = vpack.c.bf16 %v602_v38, %v601_v37 }
  0x9f   : > { %1081 = vmatpush3.bf16.msra.mxu0 %v1080_v39  ;;  %1113 = vmatpush3.bf16.msra.mxu1 %v1080_v39 }
  0xa0   : > { %v557_v40 = vpop.permute.xlu1 %556  ;;  %v551_v41 = vpop.permute.xlu0 %550  ;;  %v619_v42 = vld [vmem:[#allocation2 + $0xb0] sm:$0xff]  ;;  %v620_v43 = vld [vmem:[#allocation2 + $0xb8] sm:$0xff] }
  0xa1   : > { %559 = vst.msk [vmem:[#allocation2 + $0xc8] sm:$0xff] %vm412_vm0, %v557_v40  ;;  %553 = vst.msk [vmem:[#allocation2 + $0xc0] sm:$0xff] %vm412_vm0, %v551_v41  ;;  %v1082_v44 = vpack.c.bf16 %v620_v43, %v619_v42 }
  0xa3   : > { %1083 = vmatprep.subr.bf16.mxu0 %v1082_v44  ;;  %1115 = vmatprep.subr.bf16.mxu1 %v1082_v44 }
  0xa4   : > { %v461_v45 = vpop.permute.xlu1 %460  ;;  %v455_v46 = vpop.permute.xlu0 %454  ;;  %v603_v47 = vld [vmem:[#allocation2 + $0x30] sm:$0xff]  ;;  %v604_v48 = vld [vmem:[#allocation2 + $0x38] sm:$0xff] }
  0xa5   : > { %463 = vst.msk [vmem:[#allocation2 + $0x48] sm:$0xff] %vm412_vm0, %v461_v45  ;;  %457 = vst.msk [vmem:[#allocation2 + $0x40] sm:$0xff] %vm412_vm0, %v455_v46  ;;  %v1084_v49 = vpack.c.bf16 %v604_v48, %v603_v47 }
  0xa7   : > { %1085 = vmatpush3.bf16.msra.mxu0 %v1084_v49  ;;  %1117 = vmatpush3.bf16.msra.mxu1 %v1084_v49 }
  0xa8   : > { %v569_v50 = vpop.permute.xlu1 %568  ;;  %v563_v51 = vpop.permute.xlu0 %562  ;;  %v621_v52 = vld [vmem:[#allocation2 + $0xc0] sm:$0xff]  ;;  %v622_v53 = vld [vmem:[#allocation2 + $0xc8] sm:$0xff] }
  0xa9   : > { %571 = vst.msk [vmem:[#allocation2 + $0xd8] sm:$0xff] %vm412_vm0, %v569_v50  ;;  %565 = vst.msk [vmem:[#allocation2 + $0xd0] sm:$0xff] %vm412_vm0, %v563_v51  ;;  %v1086_v54 = vpack.c.bf16 %v622_v53, %v621_v52 }
  0xab   : > { %1087 = vmatprep.subr.bf16.mxu0 %v1086_v54  ;;  %1119 = vmatprep.subr.bf16.mxu1 %v1086_v54 }
  0xac   : > { %v473_v55 = vpop.permute.xlu1 %472  ;;  %v467_v56 = vpop.permute.xlu0 %466  ;;  %v605_v57 = vld [vmem:[#allocation2 + $0x40] sm:$0xff]  ;;  %v606_v58 = vld [vmem:[#allocation2 + $0x48] sm:$0xff] }
  0xad   : > { %475 = vst.msk [vmem:[#allocation2 + $0x58] sm:$0xff] %vm412_vm0, %v473_v55  ;;  %469 = vst.msk [vmem:[#allocation2 + $0x50] sm:$0xff] %vm412_vm0, %v467_v56  ;;  %v1088_v59 = vpack.c.bf16 %v606_v58, %v605_v57 }
  0xaf   : > { %1089 = vmatpush3.bf16.msra.mxu0 %v1088_v59  ;;  %1121 = vmatpush3.bf16.msra.mxu1 %v1088_v59 }
  0xb0   : > { %v581_v60 = vpop.permute.xlu1 %580  ;;  %v575_v61 = vpop.permute.xlu0 %574  ;;  %v623_v62 = vld [vmem:[#allocation2 + $0xd0] sm:$0xff]  ;;  %v624_v63 = vld [vmem:[#allocation2 + $0xd8] sm:$0xff] }
  0xb1   : > { %583 = vst.msk [vmem:[#allocation2 + $0xe8] sm:$0xff] %vm412_vm0, %v581_v60  ;;  %577 = vst.msk [vmem:[#allocation2 + $0xe0] sm:$0xff] %vm412_vm0, %v575_v61  ;;  %v1090_v0 = vpack.c.bf16 %v624_v63, %v623_v62 }
  0xb3   : > { %1091 = vmatprep.subr.bf16.mxu0 %v1090_v0  ;;  %1123 = vmatprep.subr.bf16.mxu1 %v1090_v0 }
  0xb4   : > { %v485_v1 = vpop.permute.xlu1 %484  ;;  %v479_v4 = vpop.permute.xlu0 %478  ;;  %v607_v5 = vld [vmem:[#allocation2 + $0x50] sm:$0xff]  ;;  %v608_v6 = vld [vmem:[#allocation2 + $0x58] sm:$0xff] }
  0xb5   : > { %487 = vst.msk [vmem:[#allocation2 + $0x68] sm:$0xff] %vm412_vm0, %v485_v1  ;;  %481 = vst.msk [vmem:[#allocation2 + $0x60] sm:$0xff] %vm412_vm0, %v479_v4  ;;  %v1092_v7 = vpack.c.bf16 %v608_v6, %v607_v5 }
  0xb7   : > { %1093 = vmatpush3.bf16.msra.mxu0 %v1092_v7  ;;  %1125 = vmatpush3.bf16.msra.mxu1 %v1092_v7 }
  0xb8   : > { %v593_v8 = vpop.permute.xlu1 %592  ;;  %v587_v9 = vpop.permute.xlu0 %586  ;;  %v625_v10 = vld [vmem:[#allocation2 + $0xe0] sm:$0xff]  ;;  %v626_v11 = vld [vmem:[#allocation2 + $0xe8] sm:$0xff] }
  0xb9   : > { %595 = vst.msk [vmem:[#allocation2 + $0xf8] sm:$0xff] %vm412_vm0, %v593_v8  ;;  %589 = vst.msk [vmem:[#allocation2 + $0xf0] sm:$0xff] %vm412_vm0, %v587_v9  ;;  %v1094_v12 = vpack.c.bf16 %v626_v11, %v625_v10 }
  0xbb   : > { %1095 = vmatprep.subr.bf16.mxu0 %v1094_v12  ;;  %1127 = vmatprep.subr.bf16.mxu1 %v1094_v12 }
  0xbc   : > { %v497_v13 = vpop.permute.xlu1 %496  ;;  %v491_v14 = vpop.permute.xlu0 %490  ;;  %v609_v15 = vld [vmem:[#allocation2 + $0x60] sm:$0xff]  ;;  %v610_v16 = vld [vmem:[#allocation2 + $0x68] sm:$0xff] }
  0xbd   : > { %499 = vst.msk [vmem:[#allocation2 + $0x78] sm:$0xff] %vm412_vm0, %v497_v13  ;;  %493 = vst.msk [vmem:[#allocation2 + $0x70] sm:$0xff] %vm412_vm0, %v491_v14  ;;  %v1096_v17 = vpack.c.bf16 %v610_v16, %v609_v15 }
  0xbf   : > { %1097 = vmatpush3.bf16.msra.mxu0 %v1096_v17  ;;  %1129 = vmatpush3.bf16.msra.mxu1 %v1096_v17 }
  0xc0   : > { %v627_v18 = vld [vmem:[#allocation2 + $0xf0] sm:$0xff]  ;;  %v628_v19 = vld [vmem:[#allocation2 + $0xf8] sm:$0xff] }
  0xc1   : > { %v1098_v20 = vpack.c.bf16 %v628_v19, %v627_v18 }
  0xc3   : > { %1099 = vmatprep.subr.bf16.mxu0 %v1098_v20  ;;  %1131 = vmatprep.subr.bf16.mxu1 %v1098_v20 }
  0xc4   : > { %v611_v21 = vld [vmem:[#allocation2 + $0x70] sm:$0xff]  ;;  %v612_v22 = vld [vmem:[#allocation2 + $0x78] sm:$0xff] }
  0xc5   : > { %v1100_v23 = vpack.c.bf16 %v612_v22, %v611_v21 }
  0xc7   : > { %1101 = vmatpush3.bf16.msra.mxu0 %v1100_v23  ;;  %1133 = vmatpush3.bf16.msra.mxu1 %v1100_v23 }
  0xca   : > { %705 = vmatmul.mubr.f32.vlgmr.msra.gmra.mrb[0].mxu0 %v1292_v2  ;;  %778 = vmatmul.mubr.f32.vlgmr.msra.gmra.mrb[0].mxu1 %v1297_v3 }
  0xcd   : > { %v635_v24 = vpop.permute.xlu0 %634 }
 0x19d   : > { %v1032_v25 = vpop.f32.mrb[0].mxu0  ;;  %v1067_v26 = vpop.f32.mrb[0].mxu1 }
 0x19e   : > { %v1033_v27 = vpop.f32.mrb[1].mxu0  ;;  %v1068_v28 = vpop.f32.mrb[1].mxu1 }
 0x19f   : > { %v1034_v29 = vadd.f32 %v1033_v27, %v1032_v25  ;;  %v1069_v30 = vadd.f32 %v1068_v28, %v1067_v26 }
 0x1a1   : > { %v707_v32 = vadd.f32 %v1034_v29, %v635_v24  ;;  %v780_v33 = vadd.f32 %v1069_v30, %v635_v24 }
 0x1a3   : > { %vm783_vm2 = vcmp.gt.f32.partialorder %v707_v32, 0.0  ;;  %v785_v2 = vmul.f32 %v784_v31, %v707_v32  ;;  %vm789_vm3 = vcmp.gt.f32.partialorder %v780_v33, 0.0  ;;  %v790_v3 = vmul.f32 %v784_v31, %v780_v33 }
 0x1a5   : > { %v786_v34 = vsel %vm783_vm2, %v707_v32, %v785_v2  ;;  %v791_v35 = vsel %vm789_vm3, %v780_v33, %v790_v3 }
 0x1a6   : > { %788 = vst.msk [vmem:[%s400_s18] sm:$0xf] %vm787_vm1, %v786_v34  ;;  %792 = vst.msk [vmem:[%s410_s21] sm:$0xf] %vm787_vm1, %v791_v35 }
 0x1a7 PF: > { %s19_s28 = sadd.s32 1, %s1199_s28   ;;  %s1362_s26 = smov %s1195_s27 }
 0x1a8   : > { %p16_p5 = scmp.ge.s32.totalorder %s19_s28, 4   ;;  %s1363_s27 = smov %s1365_s5 }
 0x1aa   :  { %18 = sbr.rel (!%p16_p5) target bundleno = 2 (0x2), region = 98 }

// kernel: segan_generator_forward.11
= control target key start
LH: loop header
LB: loop body
LE: loop exit
PB: predicated region body
PF: predicated region fallthrough
CT: control target
= control target key end

     0   :  { %s1227_s28 = smov 0   ;;  %s1229_s29 = smov 0   ;;  %s1361_s0 = inlined_call_operand.vmem [shape: f32[2,4,23], index: 0, kind: input, shape index: {}]   ;;  %s1362_s1 = inlined_call_operand.vmem [shape: f32[2,4,23], index: 1, kind: input, shape index: {}]   ;;  %s1363_s2 = inlined_call_operand.vmem [shape: f32[1,128], index: 2, kind: input, shape index: {}]   ;;  %s1364_s3 = inlined_call_operand.vmem [shape: f32[1,128], index: 3, kind: input, shape index: {}]   ;;  %s1365_s4 = inlined_call_operand.<no memory space> [shape: f32[1,1], index: 4, kind: input, shape index: {}]   ;;  %s1366_s5 = inlined_call_operand.<no memory space> [shape: f32[1], index: 5, kind: input, shape index: {}]   ;;  %s1367_s6 = inlined_call_operand.vmem [shape: f32[2,1,8], index: 6, kind: output, shape index: {0}]   ;;  %s1368_s7 = inlined_call_operand.vmem [shape: f32[2,1,8], index: 7, kind: output, shape index: {1}]  }
   0x1   :  { %v13_v0 = vstv %s1365_s4  ;;  %15 = sst [smem:[#allocation4]] %s1366_s5  ;;  %s1231_s30 = smov 0  }
   0x2   :  { %14 = vst [vmem:[#allocation3] sm:$0x1] %v13_v0 }
   0x3 LB: > { %s36_s4 = sadd.s32 1, %s1156_s29  ;;  %p937_p0 = scmp.ge.s32.totalorder %s1160_s30, 1  ;;  %s1160_s30 = sphi %s1231_s30, %s21_s30   ;;  %s1156_s29 = sphi %s1229_s29, %s1370_s29   ;;  %s1152_s28 = sphi %s1227_s28, %s1369_s28  }
   0x4   : > { %p38_p1 = scmp.ge.s32.totalorder %s36_s4, 2  ;;  %p302_p2 = scmp.lt.s32.totalorder %s1160_s30, 3 }
   0x6   : > { %s1372_s4 = smov (%p38_p1, %s36_s4), 0  ;;  %p303_p3 = pnand %p937_p0, %p302_p2 }
   0x7   : > { %p359_p4 = scmp.lt.s32.totalorder (!%p303_p3), %s1152_s28, 1  ;;  %s1162_s14 = smov (!%p303_p3), 126   ;;  %vm395_vm0 = vcmask (!%p303_p3), 60416   ;;  %v1165_v9 = vmov (!%p303_p3), 0.0|0.0   ;;  %vm1177_vm1 = vmmov (!%p303_p3), 0   ;;  %v1178_v34 = vmov (!%p303_p3), 0.0  }
   0x8   : > { %306 = sbr.rel (%p303_p3) target bundleno = 422 (0x1a6), region = 44  ;;  %s1163_s15 = smov (!%p303_p3), 127   ;;  %1046 = vmatprep.subr.bf16.mxu0 (!%p303_p3), %v1165_v9  ;;  %1070 = vmatprep.subr.bf16.mxu1 (!%p303_p3), %v1165_v9  ;;  %v1180_v35 = vmov (!%p303_p3), 0   ;;  %vm752_vm2 = vcmask (!%p303_p3), 57344  }
   0x9   : > { %s1164_s16 = smov (!%p303_p3), 125   ;;  %s1166_s17 = smov (!%p303_p3), 124   ;;  %1008 = vmatprep.mubr.msk.f32.mxu0 (!%p303_p3), %vm1177_vm1, %v1178_v34  ;;  %1043 = vmatprep.mubr.msk.f32.mxu1 (!%p303_p3), %vm1177_vm1, %v1178_v34  ;;  %v597_v36 = vld [vmem:[#allocation3] sm:$0x1] (!%p303_p3) }
   0xa   : > { %s1167_s18 = smov (!%p303_p3), 123   ;;  %s1168_s19 = smov (!%p303_p3), 122   ;;  %1137 = vset.pattern.permute.xlu0 (!%p303_p3), %v1180_v35 }
   0xb   : > { %s1169_s20 = smov (!%p303_p3), 121   ;;  %s1170_s21 = smov (!%p303_p3), 120  }
   0xc   : > { %s1171_s22 = smov (!%p303_p3), 119   ;;  %s1172_s23 = smov (!%p303_p3), 118  }
   0xd   : > { %s1173_s24 = smov (!%p303_p3), 117   ;;  %s1174_s25 = smov (!%p303_p3), 116  }
   0xe   : > { %s1175_s26 = smov (!%p303_p3), 115   ;;  %s1176_s27 = smov (!%p303_p3), 114  }
   0xf   : > { %s1374_s28 = smov (!%p359_p4, %s1152_s28), 1  ;;  %s598_s12 = sld [smem:[#allocation4]] }
  0x10   : > { %s938_s5 = sshll.u32 %s1374_s28, 2 }
  0x11   : > { %s1251_s10 = scalar_lea.vmem %s1361_s0, %s938_s5  ;;  %s1256_s13 = scalar_lea.vmem %s1362_s1, %s938_s5 }
  0x12   : > { %v411_v1 = vld [vmem:[%s1251_s10] sm:$0xf]  ;;  %s1179_s5 = smov 113  }
  0x13   : > { %v399_v2 = vld [vmem:[%s1251_s10] sm:$0xf]  ;;  %413 = vrot.lane.b32.xlu1 %v411_v1, %s1162_s14 }
  0x14   : > { %401 = vrot.lane.b32.xlu0 %v399_v2, %s1163_s15  ;;  %v417_v3 = vld [vmem:[%s1256_s13] sm:$0xf] }
  0x15   : > { %v405_v4 = vld [vmem:[%s1256_s13] sm:$0xf]  ;;  %v749_v35 = vstv %s598_s12 }
  0x16   : > { %v429_v5 = vld [vmem:[%s1256_s13] sm:$0xf] }
  0x17   : > { %419 = vrot.lane.b32.xlu1 %v417_v3, %s1162_s14  ;;  %v423_v6 = vld [vmem:[%s1251_s10] sm:$0xf] }
  0x18   : > { %407 = vrot.lane.b32.xlu0 %v405_v4, %s1163_s15  ;;  %v441_v7 = vld [vmem:[%s1256_s13] sm:$0xf]  ;;  %s384_s15 = scalar_lea.vmem %s1367_s6, %s1374_s28 }
  0x19   : > { %v435_v8 = vld [vmem:[%s1251_s10] sm:$0xf] }
  0x1a   : > { %v394_v10 = vld [vmem:[%s1251_s10] sm:$0xf] }
  0x1b   : > { %431 = vrot.lane.b32.xlu1 %v429_v5, %s1164_s16  ;;  %396 = vst.msk [vmem:[#allocation2] sm:$0xf] %vm395_vm0, %v394_v10  ;;  %v397_v11 = vld [vmem:[%s1256_s13] sm:$0xf] }
  0x1c   : > { %425 = vrot.lane.b32.xlu0 %v423_v6, %s1164_s16  ;;  %398 = vst.msk [vmem:[#allocation2 + $0x4] sm:$0xf] %vm395_vm0, %v397_v11  ;;  %v453_v12 = vld [vmem:[%s1256_s13] sm:$0xf] }
  0x1d   : > { %v447_v13 = vld [vmem:[%s1251_s10] sm:$0xf] }
  0x1e   : > { %v465_v14 = vld [vmem:[%s1256_s13] sm:$0xf] }
  0x1f   : > { %443 = vrot.lane.b32.xlu1 %v441_v7, %s1166_s17  ;;  %v459_v15 = vld [vmem:[%s1251_s10] sm:$0xf] }
  0x20   : > { %437 = vrot.lane.b32.xlu0 %v435_v8, %s1166_s17  ;;  %v477_v16 = vld [vmem:[%s1256_s13] sm:$0xf] }
  0x21   : > { %v471_v17 = vld [vmem:[%s1251_s10] sm:$0xf] }
  0x22   : > { %v489_v18 = vld [vmem:[%s1256_s13] sm:$0xf] }
  0x23   : > { %455 = vrot.lane.b32.xlu1 %v453_v12, %s1167_s18  ;;  %v483_v19 = vld [vmem:[%s1251_s10] sm:$0xf] }
  0x24   : > { %449 = vrot.lane.b32.xlu0 %v447_v13, %s1167_s18  ;;  %v501_v20 = vld [vmem:[%s1256_s13] sm:$0xf]  ;;  %s393_s18 = scalar_lea.vmem %s1368_s7, %s1374_s28 }
  0x25   : > { %v495_v21 = vld [vmem:[%s1251_s10] sm:$0xf] }
  0x26   : > { %v513_v22 = vld [vmem:[%s1256_s13] sm:$0xf] }
  0x27   : > { %467 = vrot.lane.b32.xlu1 %v465_v14, %s1168_s19  ;;  %v507_v23 = vld [vmem:[%s1251_s10] sm:$0xf] }
  0x28   : > { %461 = vrot.lane.b32.xlu0 %v459_v15, %s1168_s19  ;;  %v525_v24 = vld [vmem:[%s1256_s13] sm:$0xf] }
  0x29   : > { %v519_v25 = vld [vmem:[%s1251_s10] sm:$0xf] }
  0x2a   : > { %v537_v26 = vld [vmem:[%s1256_s13] sm:$0xf] }
  0x2b   : > { %479 = vrot.lane.b32.xlu1 %v477_v16, %s1169_s20  ;;  %v531_v27 = vld [vmem:[%s1251_s10] sm:$0xf] }
  0x2c   : > { %473 = vrot.lane.b32.xlu0 %v471_v17, %s1169_s20  ;;  %v549_v28 = vld [vmem:[%s1256_s13] sm:$0xf] }
  0x2d   : > { %v543_v29 = vld [vmem:[%s1251_s10] sm:$0xf] }
  0x2e   : > { %v561_v30 = vld [vmem:[%s1256_s13] sm:$0xf] }
  0x2f   : > { %491 = vrot.lane.b32.xlu1 %v489_v18, %s1170_s21  ;;  %v555_v31 = vld [vmem:[%s1251_s10] sm:$0xf] }
  0x30   : > { %485 = vrot.lane.b32.xlu0 %v483_v19, %s1170_s21  ;;  %v573_v32 = vld [vmem:[%s1256_s13] sm:$0xf] }
  0x31   : > { %v567_v33 = vld [vmem:[%s1251_s10] sm:$0xf] }
  0x32   : > { %v580_v43 = vld [vmem:[#allocation2] sm:$0xff] }
  0x33   : > { %503 = vrot.lane.b32.xlu1 %v501_v20, %s1171_s22 }
  0x34   : > { %497 = vrot.lane.b32.xlu0 %v495_v21, %s1171_s22 }
  0x37   : > { %515 = vrot.lane.b32.xlu1 %v513_v22, %s1172_s23 }
  0x38   : > { %509 = vrot.lane.b32.xlu0 %v507_v23, %s1172_s23 }
  0x3b   : > { %527 = vrot.lane.b32.xlu1 %v525_v24, %s1173_s24 }
  0x3c   : > { %521 = vrot.lane.b32.xlu0 %v519_v25, %s1173_s24 }
  0x3f   : > { %539 = vrot.lane.b32.xlu1 %v537_v26, %s1174_s25 }
  0x40   : > { %533 = vrot.lane.b32.xlu0 %v531_v27, %s1174_s25 }
  0x43   : > { %551 = vrot.lane.b32.xlu1 %v549_v28, %s1175_s26  ;;  %v579_v28 = vld [vmem:[%s1363_s2] sm:$0x1] }
  0x44   : > { %545 = vrot.lane.b32.xlu0 %v543_v29, %s1175_s26  ;;  %v596_v29 = vld [vmem:[%s1364_s3] sm:$0x1] }
  0x47   : > { %563 = vrot.lane.b32.xlu1 %v561_v30, %s1176_s27  ;;  %v604_v30 = vlaneseq }
  0x48   : > { %557 = vrot.lane.b32.xlu0 %v555_v31, %s1176_s27 }
  0x49   : > { %v605_v31 = vshrl.u32 %v604_v30, 7 }
  0x4b   : > { %575 = vrot.lane.b32.xlu1 %v573_v32, %s1179_s5 }
  0x4c   : > { %569 = vrot.lane.b32.xlu0 %v567_v33, %s1179_s5 }
  0x50   : > { %601 = vperm.xlu0 %1137, %v597_v36  }
  0x85   : > { %v414_v37 = vpop.permute.xlu1 %413 }
  0x86   : > { %v402_v38 = vpop.permute.xlu0 %401  ;;  %416 = vst.msk [vmem:[#allocation2 + $0x10] sm:$0xf] %vm395_vm0, %v414_v37 }
  0x87   : > { %404 = vst.msk [vmem:[#allocation2 + $0x8] sm:$0xf] %vm395_vm0, %v402_v38 }
  0x89   : > { %v420_v39 = vpop.permute.xlu1 %419 }
  0x8a   : > { %v408_v40 = vpop.permute.xlu0 %407  ;;  %422 = vst.msk [vmem:[#allocation2 + $0x14] sm:$0xf] %vm395_vm0, %v420_v39 }
  0x8b   : > { %410 = vst.msk [vmem:[#allocation2 + $0xc] sm:$0xf] %vm395_vm0, %v408_v40 }
  0x8d   : > { %v432_v41 = vpop.permute.xlu1 %431 }
  0x8e   : > { %v426_v42 = vpop.permute.xlu0 %425  ;;  %434 = vst.msk [vmem:[#allocation2 + $0x1c] sm:$0xf] %vm395_vm0, %v432_v41 }
  0x8f   : > { %428 = vst.msk [vmem:[#allocation2 + $0x18] sm:$0xf] %vm395_vm0, %v426_v42 }
  0x91   : > { %v444_v44 = vpop.permute.xlu1 %443  ;;  %v582_v50 = vld [vmem:[#allocation2 + $0x10] sm:$0xff] }
  0x92   : > { %v438_v45 = vpop.permute.xlu0 %437  ;;  %v581_v46 = vld [vmem:[#allocation2 + $0x8] sm:$0xff]  ;;  %446 = vst.msk [vmem:[#allocation2 + $0x24] sm:$0xf] %vm395_vm0, %v444_v44 }
  0x93   : > { %440 = vst.msk [vmem:[#allocation2 + $0x20] sm:$0xf] %vm395_vm0, %v438_v45  ;;  %v1047_v47 = vpack.c.bf16 %v581_v46, %v580_v43 }
  0x95   : > { %1048 = vmatpush3.bf16.msra.mxu0 %v1047_v47  ;;  %1072 = vmatpush3.bf16.msra.mxu1 %v1047_v47  ;;  %v456_v48 = vpop.permute.xlu1 %455 }
  0x96   : > { %v450_v49 = vpop.permute.xlu0 %449  ;;  %1049 = vmatprep.subr.bf16.mxu0 %v1165_v9  ;;  %1073 = vmatprep.subr.bf16.mxu1 %v1165_v9  ;;  %v583_v51 = vld [vmem:[#allocation2 + $0x18] sm:$0xff]  ;;  %458 = vst.msk [vmem:[#allocation2 + $0x2c] sm:$0xf] %vm395_vm0, %v456_v48 }
  0x97   : > { %452 = vst.msk [vmem:[#allocation2 + $0x28] sm:$0xf] %vm395_vm0, %v450_v49  ;;  %v1050_v52 = vpack.c.bf16 %v583_v51, %v582_v50 }
  0x99   : > { %1051 = vmatpush3.bf16.msra.mxu0 %v1050_v52  ;;  %1075 = vmatpush3.bf16.msra.mxu1 %v1050_v52  ;;  %v468_v53 = vpop.permute.xlu1 %467 }
  0x9a   : > { %v462_v54 = vpop.permute.xlu0 %461  ;;  %1052 = vmatprep.subr.bf16.mxu0 %v1165_v9  ;;  %1076 = vmatprep.subr.bf16.mxu1 %v1165_v9  ;;  %470 = vst.msk [vmem:[#allocation2 + $0x34] sm:$0xf] %vm395_vm0, %v468_v53  ;;  %v584_v57 = vld [vmem:[#allocation2 + $0x20] sm:$0xff] }
  0x9b   : > { %464 = vst.msk [vmem:[#allocation2 + $0x30] sm:$0xf] %vm395_vm0, %v462_v54 }
  0x9d   : > { %v480_v55 = vpop.permute.xlu1 %479 }
  0x9e   : > { %v474_v56 = vpop.permute.xlu0 %473  ;;  %v585_v58 = vld [vmem:[#allocation2 + $0x28] sm:$0xff]  ;;  %482 = vst.msk [vmem:[#allocation2 + $0x3c] sm:$0xf] %vm395_vm0, %v480_v55 }
  0x9f   : > { %476 = vst.msk [vmem:[#allocation2 + $0x38] sm:$0xf] %vm395_vm0, %v474_v56  ;;  %v1053_v59 = vpack.c.bf16 %v585_v58, %v584_v57 }
  0xa1   : > { %1054 = vmatpush3.bf16.msra.mxu0 %v1053_v59  ;;  %1078 = vmatpush3.bf16.msra.mxu1 %v1053_v59  ;;  %v492_v60 = vpop.permute.xlu1 %491 }
  0xa2   : > { %v486_v61 = vpop.permute.xlu0 %485  ;;  %1055 = vmatprep.subr.bf16.mxu0 %v1165_v9  ;;  %1079 = vmatprep.subr.bf16.mxu1 %v1165_v9  ;;  %494 = vst.msk [vmem:[#allocation2 + $0x44] sm:$0xf] %vm395_vm0, %v492_v60  ;;  %v586_v0 = vld [vmem:[#allocation2 + $0x30] sm:$0xff] }
  0xa3   : > { %488 = vst.msk [vmem:[#allocation2 + $0x40] sm:$0xf] %vm395_vm0, %v486_v61 }
  0xa5   : > { %v504_v62 = vpop.permute.xlu1 %503 }
  0xa6   : > { %v498_v63 = vpop.permute.xlu0 %497  ;;  %v587_v1 = vld [vmem:[#allocation2 + $0x38] sm:$0xff]  ;;  %506 = vst.msk [vmem:[#allocation2 + $0x4c] sm:$0xf] %vm395_vm0, %v504_v62 }
  0xa7   : > { %500 = vst.msk [vmem:[#allocation2 + $0x48] sm:$0xf] %vm395_vm0, %v498_v63  ;;  %v1056_v2 = vpack.c.bf16 %v587_v1, %v586_v0 }
  0xa9   : > { %1057 = vmatpush3.bf16.msra.mxu0 %v1056_v2  ;;  %1081 = vmatpush3.bf16.msra.mxu1 %v1056_v2  ;;  %v516_v3 = vpop.permute.xlu1 %515 }
  0xaa   : > { %v510_v4 = vpop.permute.xlu0 %509  ;;  %1058 = vmatprep.subr.bf16.mxu0 %v1165_v9  ;;  %1082 = vmatprep.subr.bf16.mxu1 %v1165_v9  ;;  %518 = vst.msk [vmem:[#allocation2 + $0x54] sm:$0xf] %vm395_vm0, %v516_v3  ;;  %v588_v7 = vld [vmem:[#allocation2 + $0x40] sm:$0xff] }
  0xab   : > { %512 = vst.msk [vmem:[#allocation2 + $0x50] sm:$0xf] %vm395_vm0, %v510_v4 }
  0xad   : > { %v528_v5 = vpop.permute.xlu1 %527 }
  0xae   : > { %v522_v6 = vpop.permute.xlu0 %521  ;;  %v589_v8 = vld [vmem:[#allocation2 + $0x48] sm:$0xff]  ;;  %530 = vst.msk [vmem:[#allocation2 + $0x5c] sm:$0xf] %vm395_vm0, %v528_v5 }
  0xaf   : > { %524 = vst.msk [vmem:[#allocation2 + $0x58] sm:$0xf] %vm395_vm0, %v522_v6  ;;  %v1059_v10 = vpack.c.bf16 %v589_v8, %v588_v7 }
  0xb1   : > { %1060 = vmatpush3.bf16.msra.mxu0 %v1059_v10  ;;  %1084 = vmatpush3.bf16.msra.mxu1 %v1059_v10  ;;  %v540_v11 = vpop.permute.xlu1 %539 }
  0xb2   : > { %v534_v12 = vpop.permute.xlu0 %533  ;;  %1061 = vmatprep.subr.bf16.mxu0 %v1165_v9  ;;  %1085 = vmatprep.subr.bf16.mxu1 %v1165_v9  ;;  %542 = vst.msk [vmem:[#allocation2 + $0x64] sm:$0xf] %vm395_vm0, %v540_v11  ;;  %v590_v15 = vld [vmem:[#allocation2 + $0x50] sm:$0xff] }
  0xb3   : > { %536 = vst.msk [vmem:[#allocation2 + $0x60] sm:$0xf] %vm395_vm0, %v534_v12 }
  0xb5   : > { %v552_v13 = vpop.permute.xlu1 %551 }
  0xb6   : > { %v546_v14 = vpop.permute.xlu0 %545  ;;  %v591_v16 = vld [vmem:[#allocation2 + $0x58] sm:$0xff]  ;;  %554 = vst.msk [vmem:[#allocation2 + $0x6c] sm:$0xf] %vm395_vm0, %v552_v13 }
  0xb7   : > { %548 = vst.msk [vmem:[#allocation2 + $0x68] sm:$0xf] %vm395_vm0, %v546_v14  ;;  %v1062_v17 = vpack.c.bf16 %v591_v16, %v590_v15 }
  0xb9   : > { %1063 = vmatpush3.bf16.msra.mxu0 %v1062_v17  ;;  %1087 = vmatpush3.bf16.msra.mxu1 %v1062_v17  ;;  %v564_v18 = vpop.permute.xlu1 %563 }
  0xba   : > { %v558_v19 = vpop.permute.xlu0 %557  ;;  %1064 = vmatprep.subr.bf16.mxu0 %v1165_v9  ;;  %1088 = vmatprep.subr.bf16.mxu1 %v1165_v9  ;;  %566 = vst.msk [vmem:[#allocation2 + $0x74] sm:$0xf] %vm395_vm0, %v564_v18  ;;  %v592_v22 = vld [vmem:[#allocation2 + $0x60] sm:$0xff] }
  0xbb   : > { %560 = vst.msk [vmem:[#allocation2 + $0x70] sm:$0xf] %vm395_vm0, %v558_v19 }
  0xbd   : > { %v576_v20 = vpop.permute.xlu1 %575 }
  0xbe   : > { %v570_v21 = vpop.permute.xlu0 %569  ;;  %v593_v23 = vld [vmem:[#allocation2 + $0x68] sm:$0xff]  ;;  %578 = vst.msk [vmem:[#allocation2 + $0x7c] sm:$0xf] %vm395_vm0, %v576_v20 }
  0xbf   : > { %572 = vst.msk [vmem:[#allocation2 + $0x78] sm:$0xf] %vm395_vm0, %v570_v21  ;;  %v1065_v24 = vpack.c.bf16 %v593_v23, %v592_v22 }
  0xc1   : > { %1066 = vmatpush3.bf16.msra.mxu0 %v1065_v24  ;;  %1090 = vmatpush3.bf16.msra.mxu1 %v1065_v24 }
  0xc2   : > { %1067 = vmatprep.subr.bf16.mxu0 %v1165_v9  ;;  %1091 = vmatprep.subr.bf16.mxu1 %v1165_v9  ;;  %v594_v25 = vld [vmem:[#allocation2 + $0x70] sm:$0xff]  ;;  %v606_v9 = vsub.s32 0, %v605_v31 }
  0xc6   : > { %v595_v26 = vld [vmem:[#allocation2 + $0x78] sm:$0xff] }
  0xc7   : > { %v1068_v27 = vpack.c.bf16 %v595_v26, %v594_v25 }
  0xc9   : > { %1069 = vmatpush3.bf16.msra.mxu0 %v1068_v27  ;;  %1093 = vmatpush3.bf16.msra.mxu1 %v1068_v27 }
  0xcc   : > { %1009 = vmatmul.mubr.f32.vlgmr.msra.gmra.mrb[0].mxu0 %v579_v28  ;;  %1044 = vmatmul.mubr.f32.vlgmr.msra.gmra.mrb[0].mxu1 %v596_v29 }
  0xcf   : > { %v602_v32 = vpop.permute.xlu0 %601 }
  0xd0   : > { %v607_v33 = vrot.slane %v602_v32, %v606_v9 }
 0x19f   : > { %v674_v34 = vpop.f32.mrb[0].mxu0  ;;  %v744_v36 = vpop.f32.mrb[0].mxu1 }
 0x1a0   : > { %v675_v37 = vadd.f32 %v674_v34, %v607_v33  ;;  %v745_v38 = vadd.f32 %v744_v36, %v607_v33  ;;  %v1010_v39 = vpop.f32.mrb[1].mxu0  ;;  %v1045_v40 = vpop.f32.mrb[1].mxu1 }
 0x1a2   : > { %vm748_vm3 = vcmp.gt.f32.partialorder %v675_v37, 0.0  ;;  %v750_v41 = vmul.f32 %v749_v35, %v675_v37  ;;  %vm754_vm4 = vcmp.gt.f32.partialorder %v745_v38, 0.0  ;;  %v755_v42 = vmul.f32 %v749_v35, %v745_v38 }
 0x1a4   : > { %v751_v43 = vsel %vm748_vm3, %v675_v37, %v750_v41  ;;  %v756_v44 = vsel %vm754_vm4, %v745_v38, %v755_v42 }
 0x1a5   : > { %753 = vst.msk [vmem:[%s384_s15] sm:$0x1] %vm752_vm2, %v751_v43  ;;  %757 = vst.msk [vmem:[%s393_s18] sm:$0x1] %vm752_vm2, %v756_v44 }
 0x1a6 PF: > { %s21_s30 = sadd.s32 1, %s1160_s30   ;;  %s1369_s28 = smov %s1156_s29 }
 0x1a7   : > { %p18_p5 = scmp.ge.s32.totalorder %s21_s30, 4   ;;  %s1370_s29 = smov %s1372_s4 }
 0x1a9   :  { %20 = sbr.rel (!%p18_p5) target bundleno = 3 (0x3), region = 98 }

</bundles_post_ra>
